<compile_context>
chip_gen: v5e
topology: v5e:2x2
jax: 0.10.0
libtpu: 0.0.40
codegen_flags: <defaults>
</compile_context>

<pallas_src>
import functools

import jax
import jax.numpy as jnp
import numpy as np
from jax.experimental import pallas as pl
from jax.experimental.pallas import tpu as pltpu


def spatial_attention_kernel(w_ref, x_ref, o_ref,
                             pad_ref, tmp2d_ref, flat_ref, stats_ref,
                             *, C, H, W, K):
    """One image per grid step.

    w_ref:     SMEM (2*K*K,) f32        conv1 weights flattened in (cin, kh, kw) order
    x_ref:     VMEM (C, H*W)            one image, channels x flattened spatial (lane-dense)
    o_ref:     VMEM (C, H*W)            output block
    pad_ref:   VMEM (2, H+K-1, W+K-1)   zero-padded [avg; max] map (f32)
    tmp2d_ref: VMEM (H+K-1, W)          kw-shifted conv window / 2-D attention map (f32)
    flat_ref:  VMEM (1, H*W)            flattened sigmoid(conv) attention map (f32)
    stats_ref: VMEM (2, H*W)            flat [mean; max] channel statistics (f32)
    """
    P = K // 2
    HW = H * W
    HP = H + K - 1
    WP = W + K - 1

    # ---- fused channel mean + max: ONE pass over x_ref in 8-sublane chunks ----
    s = jnp.zeros((1, HW), jnp.float32)
    m = jnp.full((1, HW), -jnp.inf, jnp.float32)
    for c0 in range(0, C, 8):
        ch = min(8, C - c0)
        blk = x_ref[c0:c0 + ch, :].astype(jnp.float32)           # (ch, HW)
        s = s + jnp.sum(blk, axis=0, keepdims=True)
        m = jnp.maximum(m, jnp.max(blk, axis=0, keepdims=True))
    stats_ref[0:1, :] = s * (1.0 / C)                            # mean (1/C folded)
    stats_ref[1:2, :] = m

    # ---- zero only the (K-1)-wide border of the padded map ----
    # (interior fully overwritten below; NOT gated on program_id==0 because scratch
    #  is per-core under 'parallel' dimension semantics)
    pad_ref[:, 0:P, :] = jnp.zeros((2, P, WP), jnp.float32)
    pad_ref[:, P + H:P + H + P, :] = jnp.zeros((2, P, WP), jnp.float32)
    pad_ref[:, :, 0:P] = jnp.zeros((2, HP, P), jnp.float32)
    pad_ref[:, :, P + W:P + W + P] = jnp.zeros((2, HP, P), jnp.float32)

    # ---- scatter flat stats rows into the padded (H, W) interior ----
    # Static lane offsets only (touches just the tiny 2xHxW map; guaranteed lowering).
    # TODO(synk): re-evaluate lax.fori_loop / value-level reshape for this relayout.
    for h in range(H):
        pad_ref[0, P + h:P + h + 1, P:P + W] = stats_ref[0:1, h * W:(h + 1) * W]
        pad_ref[1, P + h:P + h + 1, P:P + W] = stats_ref[1:2, h * W:(h + 1) * W]

    # ---- 2-channel KxK conv (bias=False) on the small map, VPU scalar FMAs ----
    # kw lane shift hoisted out of the kh loop: 2*K lane-offset window copies, then
    # K cheap sublane-addressed ref loads each (98 -> 14 lane relayouts).
    acc = jnp.zeros((H, W), jnp.float32)
    for c in range(2):
        for kw in range(K):
            tmp2d_ref[...] = pad_ref[c, :, kw:kw + W]            # (HP, W)
            for kh in range(K):
                wgt = w_ref[c * K * K + kh * K + kw]             # scalar from SMEM
                acc = acc + tmp2d_ref[kh:kh + H, :] * wgt

    # ---- sigmoid, then flatten the attention map back to (1, HW) ----
    tmp2d_ref[0:H, :] = jax.nn.sigmoid(acc)
    for h in range(H):
        flat_ref[0:1, h * W:(h + 1) * W] = tmp2d_ref[h:h + 1, :]

    # ---- lane-dense broadcast multiply; re-read x_ref (no big live f32 value) ----
    att = flat_ref[...].astype(x_ref.dtype)                      # (1, HW), input dtype
    o_ref[...] = (x_ref[...] * att).astype(o_ref.dtype)


@jax.jit
def spatial_attention_forward(x_nchw, w_conv):
    """x_nchw: (N, C, H, W); w_conv: (1, 2, K, K) PyTorch-layout conv1 weight."""
    N, C, H, W = x_nchw.shape
    K = w_conv.shape[-1]
    HW = H * W
    HP, WP = H + K - 1, W + K - 1
    itemsize = x_nchw.dtype.itemsize

    x_flat = x_nchw.reshape(N, C, HW)                  # free reshape (lane-dense stream)
    w_flat = w_conv.reshape(-1).astype(jnp.float32)    # (2*K*K,) scalars -> SMEM

    kernel = functools.partial(spatial_attention_kernel, C=C, H=H, W=W, K=K)

    # Explicit VMEM budget: double-buffered in + out blocks, scratch, live temps.
    block_bytes = C * HW * itemsize
    scratch_bytes = 4 * (2 * HP * WP + HP * W + HW + 2 * HW)
    temp_bytes = 4 * (10 * HW + 2 * H * W)             # stats chunk + accumulators
    budget = 4 * block_bytes + scratch_bytes + temp_bytes + (4 << 20)
    vmem_limit = int(min(max(budget, 32 << 20), 64 << 20))

    cost = pl.CostEstimate(
        flops=int(N * HW * (2 * C + 4 * K * K + 2)),   # stats + conv MACs + multiply
        transcendentals=int(N * HW),                   # sigmoid
        bytes_accessed=int(2 * N * C * HW * itemsize), # read(x) + write(out)
    )

    out = pl.pallas_call(
        kernel,
        out_shape=jax.ShapeDtypeStruct((N, C, HW), x_nchw.dtype),
        grid_spec=pltpu.PrefetchScalarGridSpec(
            num_scalar_prefetch=0,
            grid=(N,),
            in_specs=[
                pl.BlockSpec(memory_space=pltpu.MemorySpace.SMEM),   # conv weights
                pl.BlockSpec((None, C, HW), lambda n: (n, 0, 0)),    # x (per image)
            ],
            out_specs=pl.BlockSpec((None, C, HW), lambda n: (n, 0, 0)),
            scratch_shapes=[
                pltpu.VMEM((2, HP, WP), jnp.float32),   # padded [avg; max] map
                pltpu.VMEM((HP, W), jnp.float32),       # kw-shifted window / 2-D att
                pltpu.VMEM((1, HW), jnp.float32),       # flat attention map
                pltpu.VMEM((2, HW), jnp.float32),       # flat channel stats
            ],
        ),
        compiler_params=pltpu.CompilerParams(
            dimension_semantics=("parallel",),
            vmem_limit_bytes=vmem_limit,
        ),
        cost_estimate=cost,
    )(w_flat, x_flat)

    return out.reshape(N, C, H, W)


def spatial_attention_reference(x, w_conv):
    """Plain-JAX reference matching the PyTorch module."""
    K = w_conv.shape[-1]
    P = K // 2
    avgout = jnp.mean(x, axis=1, keepdims=True)
    maxout = jnp.max(x, axis=1, keepdims=True)
    x1 = jnp.concatenate([avgout, maxout], axis=1)               # (N, 2, H, W)
    y = jax.lax.conv_general_dilated(
        x1, w_conv, window_strides=(1, 1), padding=((P, P), (P, P)),
        dimension_numbers=('NCHW', 'OIHW', 'NCHW'),
        precision=jax.lax.Precision.HIGHEST)                     # (N, 1, H, W)
    att = jax.nn.sigmoid(y)
    return x * att


if __name__ == "__main__":
    key = jax.random.PRNGKey(0)
    N, C, H, W = 2, 4, 16, 16
    K = 7

    k_x, k_w = jax.random.split(key, 2)
    x = jax.random.normal(k_x, (N, C, H, W), dtype=jnp.float32)
    # nn.Conv2d(2, 1, 7, padding=3, bias=False) weight, PyTorch layout (O, I, kH, kW).
    w_conv = 0.1 * jax.random.normal(k_w, (1, 2, K, K), dtype=jnp.float32)

    out = spatial_attention_forward(x, w_conv)
    out = jax.block_until_ready(out)

    ref = spatial_attention_reference(x, w_conv)
    np.testing.assert_allclose(np.asarray(out), np.asarray(ref),
                               rtol=1e-5, atol=1e-5)
    assert out.shape == (N, C, H, W)
    print("KERNEL_OK")
</pallas_src>

<mosaic_0001>
module attributes {stable_mosaic.version = 11 : i64} {
  func.func @spatial_attention_kernel(%arg0: i32, %arg1: memref<98xf32, #tpu.memory_space<smem>>, %arg2: memref<1x4x256xf32, #tpu.memory_space<vmem>>, %arg3: memref<1x4x256xf32, #tpu.memory_space<vmem>>, %arg4: memref<2x22x22xf32, #tpu.memory_space<vmem>>, %arg5: memref<22x16xf32, #tpu.memory_space<vmem>>, %arg6: memref<1x256xf32, #tpu.memory_space<vmem>>, %arg7: memref<2x256xf32, #tpu.memory_space<vmem>>) attributes {dimension_semantics = [#tpu.dimension_semantics<parallel>], iteration_bounds = array<i64: 2>, scalar_prefetch = 0 : i64, scratch_operands = 4 : i64, tpu.core_type = #tpu.core_type<tc>, window_params = [{transform_indices = @transform_0, window_bounds = array<i64: 98>}, {transform_indices = @transform_1, window_bounds = array<i64: 1, 4, 256>}, {transform_indices = @transform_2, window_bounds = array<i64: 1, 4, 256>}]} {
    %cst = arith.constant 0.000000e+00 : f32
    %0 = vector.broadcast %cst : f32 to vector<1x256xf32>
    %cst_0 = arith.constant 0xFF800000 : f32
    %1 = vector.broadcast %cst_0 : f32 to vector<1x256xf32>
    %c0 = arith.constant 0 : index
    %c0_1 = arith.constant 0 : index
    %c0_2 = arith.constant 0 : index
    %2 = vector.load %arg2[%c0, %c0_1, %c0_2] : memref<1x4x256xf32, #tpu.memory_space<vmem>>, vector<1x4x256xf32>
    %3 = vector.shape_cast %2 : vector<1x4x256xf32> to vector<4x256xf32>
    %cst_3 = arith.constant dense<0.000000e+00> : vector<256xf32>
    %4 = vector.multi_reduction <add>, %3, %cst_3 [0] : vector<4x256xf32> to vector<256xf32>
    %5 = vector.shape_cast %4 : vector<256xf32> to vector<1x256xf32>
    %6 = arith.addf %0, %5 : vector<1x256xf32>
    %cst_4 = arith.constant dense<0xFF800000> : vector<256xf32>
    %7 = vector.multi_reduction <maximumf>, %3, %cst_4 [0] : vector<4x256xf32> to vector<256xf32>
    %8 = vector.shape_cast %7 : vector<256xf32> to vector<1x256xf32>
    %9 = arith.maximumf %1, %8 : vector<1x256xf32>
    %cst_5 = arith.constant 2.500000e-01 : f32
    %10 = vector.broadcast %cst_5 : f32 to vector<1x256xf32>
    %11 = arith.mulf %6, %10 : vector<1x256xf32>
    %c0_6 = arith.constant 0 : index
    %c0_7 = arith.constant 0 : index
    %12 = vector.load %arg7[%c0_6, %c0_7] : memref<2x256xf32, #tpu.memory_space<vmem>>, vector<1x256xf32>
    tpu.vector_store %arg7[%c0_6, %c0_7], %11 {strides = array<i32>} : memref<2x256xf32, #tpu.memory_space<vmem>>, vector<1x256xf32>,
    %c1 = arith.constant 1 : index
    %c0_8 = arith.constant 0 : index
    %13 = vector.load %arg7[%c1, %c0_8] : memref<2x256xf32, #tpu.memory_space<vmem>>, vector<1x256xf32>
    tpu.vector_store %arg7[%c1, %c0_8], %9 {strides = array<i32>} : memref<2x256xf32, #tpu.memory_space<vmem>>, vector<1x256xf32>,
    %cst_9 = arith.constant 0.000000e+00 : f32
    %14 = vector.broadcast %cst_9 : f32 to vector<2x3x22xf32>
    %c0_10 = arith.constant 0 : index
    %c0_11 = arith.constant 0 : index
    %c0_12 = arith.constant 0 : index
    %15 = vector.load %arg4[%c0_10, %c0_11, %c0_12] : memref<2x22x22xf32, #tpu.memory_space<vmem>>, vector<2x3x22xf32>
    tpu.vector_store %arg4[%c0_10, %c0_11, %c0_12], %14 {strides = array<i32>} : memref<2x22x22xf32, #tpu.memory_space<vmem>>, vector<2x3x22xf32>,
    %cst_13 = arith.constant 0.000000e+00 : f32
    %16 = vector.broadcast %cst_13 : f32 to vector<2x3x22xf32>
    %c0_14 = arith.constant 0 : index
    %c19 = arith.constant 19 : index
    %c0_15 = arith.constant 0 : index
    %17 = vector.load %arg4[%c0_14, %c19, %c0_15] : memref<2x22x22xf32, #tpu.memory_space<vmem>>, vector<2x3x22xf32>
    tpu.vector_store %arg4[%c0_14, %c19, %c0_15], %16 {strides = array<i32>} : memref<2x22x22xf32, #tpu.memory_space<vmem>>, vector<2x3x22xf32>,
    %cst_16 = arith.constant 0.000000e+00 : f32
    %18 = vector.broadcast %cst_16 : f32 to vector<2x22x3xf32>
    %c0_17 = arith.constant 0 : index
    %c0_18 = arith.constant 0 : index
    %c0_19 = arith.constant 0 : index
    %19 = vector.load %arg4[%c0_17, %c0_18, %c0_19] : memref<2x22x22xf32, #tpu.memory_space<vmem>>, vector<2x22x3xf32>
    tpu.vector_store %arg4[%c0_17, %c0_18, %c0_19], %18 {strides = array<i32>} : memref<2x22x22xf32, #tpu.memory_space<vmem>>, vector<2x22x3xf32>,
    %cst_20 = arith.constant 0.000000e+00 : f32
    %20 = vector.broadcast %cst_20 : f32 to vector<2x22x3xf32>
    %c0_21 = arith.constant 0 : index
    %c0_22 = arith.constant 0 : index
    %c19_23 = arith.constant 19 : index
    %21 = vector.load %arg4[%c0_21, %c0_22, %c19_23] : memref<2x22x22xf32, #tpu.memory_space<vmem>>, vector<2x22x3xf32>
    tpu.vector_store %arg4[%c0_21, %c0_22, %c19_23], %20 {strides = array<i32>} : memref<2x22x22xf32, #tpu.memory_space<vmem>>, vector<2x22x3xf32>,
    %c0_24 = arith.constant 0 : index
    %c0_25 = arith.constant 0 : index
    %22 = vector.load %arg7[%c0_24, %c0_25] : memref<2x256xf32, #tpu.memory_space<vmem>>, vector<1x16xf32>
    %c0_26 = arith.constant 0 : index
    %c3 = arith.constant 3 : index
    %c3_27 = arith.constant 3 : index
    %23 = vector.load %arg4[%c0_26, %c3, %c3_27] : memref<2x22x22xf32, #tpu.memory_space<vmem>>, vector<1x1x16xf32>
    %24 = vector.shape_cast %23 : vector<1x1x16xf32> to vector<1x16xf32>
    %25 = vector.shape_cast %22 : vector<1x16xf32> to vector<1x1x16xf32>
    tpu.vector_store %arg4[%c0_26, %c3, %c3_27], %25 {strides = array<i32>} : memref<2x22x22xf32, #tpu.memory_space<vmem>>, vector<1x1x16xf32>,
    %c1_28 = arith.constant 1 : index
    %c0_29 = arith.constant 0 : index
    %26 = vector.load %arg7[%c1_28, %c0_29] : memref<2x256xf32, #tpu.memory_space<vmem>>, vector<1x16xf32>
    %c1_30 = arith.constant 1 : index
    %c3_31 = arith.constant 3 : index
    %c3_32 = arith.constant 3 : index
    %27 = vector.load %arg4[%c1_30, %c3_31, %c3_32] : memref<2x22x22xf32, #tpu.memory_space<vmem>>, vector<1x1x16xf32>
    %28 = vector.shape_cast %27 : vector<1x1x16xf32> to vector<1x16xf32>
    %29 = vector.shape_cast %26 : vector<1x16xf32> to vector<1x1x16xf32>
    tpu.vector_store %arg4[%c1_30, %c3_31, %c3_32], %29 {strides = array<i32>} : memref<2x22x22xf32, #tpu.memory_space<vmem>>, vector<1x1x16xf32>,
    %c0_33 = arith.constant 0 : index
    %c16 = arith.constant 16 : index
    %30 = vector.load %arg7[%c0_33, %c16] : memref<2x256xf32, #tpu.memory_space<vmem>>, vector<1x16xf32>
    %c0_34 = arith.constant 0 : index
    %c4 = arith.constant 4 : index
    %c3_35 = arith.constant 3 : index
    %31 = vector.load %arg4[%c0_34, %c4, %c3_35] : memref<2x22x22xf32, #tpu.memory_space<vmem>>, vector<1x1x16xf32>
    %32 = vector.shape_cast %31 : vector<1x1x16xf32> to vector<1x16xf32>
    %33 = vector.shape_cast %30 : vector<1x16xf32> to vector<1x1x16xf32>
    tpu.vector_store %arg4[%c0_34, %c4, %c3_35], %33 {strides = array<i32>} : memref<2x22x22xf32, #tpu.memory_space<vmem>>, vector<1x1x16xf32>,
    %c1_36 = arith.constant 1 : index
    %c16_37 = arith.constant 16 : index
    %34 = vector.load %arg7[%c1_36, %c16_37] : memref<2x256xf32, #tpu.memory_space<vmem>>, vector<1x16xf32>
    %c1_38 = arith.constant 1 : index
    %c4_39 = arith.constant 4 : index
    %c3_40 = arith.constant 3 : index
    %35 = vector.load %arg4[%c1_38, %c4_39, %c3_40] : memref<2x22x22xf32, #tpu.memory_space<vmem>>, vector<1x1x16xf32>
    %36 = vector.shape_cast %35 : vector<1x1x16xf32> to vector<1x16xf32>
    %37 = vector.shape_cast %34 : vector<1x16xf32> to vector<1x1x16xf32>
    tpu.vector_store %arg4[%c1_38, %c4_39, %c3_40], %37 {strides = array<i32>} : memref<2x22x22xf32, #tpu.memory_space<vmem>>, vector<1x1x16xf32>,
    %c0_41 = arith.constant 0 : index
    %c32 = arith.constant 32 : index
    %38 = vector.load %arg7[%c0_41, %c32] : memref<2x256xf32, #tpu.memory_space<vmem>>, vector<1x16xf32>
    %c0_42 = arith.constant 0 : index
    %c5 = arith.constant 5 : index
    %c3_43 = arith.constant 3 : index
    %39 = vector.load %arg4[%c0_42, %c5, %c3_43] : memref<2x22x22xf32, #tpu.memory_space<vmem>>, vector<1x1x16xf32>
    %40 = vector.shape_cast %39 : vector<1x1x16xf32> to vector<1x16xf32>
    %41 = vector.shape_cast %38 : vector<1x16xf32> to vector<1x1x16xf32>
    tpu.vector_store %arg4[%c0_42, %c5, %c3_43], %41 {strides = array<i32>} : memref<2x22x22xf32, #tpu.memory_space<vmem>>, vector<1x1x16xf32>,
    %c1_44 = arith.constant 1 : index
    %c32_45 = arith.constant 32 : index
    %42 = vector.load %arg7[%c1_44, %c32_45] : memref<2x256xf32, #tpu.memory_space<vmem>>, vector<1x16xf32>
    %c1_46 = arith.constant 1 : index
    %c5_47 = arith.constant 5 : index
    %c3_48 = arith.constant 3 : index
    %43 = vector.load %arg4[%c1_46, %c5_47, %c3_48] : memref<2x22x22xf32, #tpu.memory_space<vmem>>, vector<1x1x16xf32>
    %44 = vector.shape_cast %43 : vector<1x1x16xf32> to vector<1x16xf32>
    %45 = vector.shape_cast %42 : vector<1x16xf32> to vector<1x1x16xf32>
    tpu.vector_store %arg4[%c1_46, %c5_47, %c3_48], %45 {strides = array<i32>} : memref<2x22x22xf32, #tpu.memory_space<vmem>>, vector<1x1x16xf32>,
    %c0_49 = arith.constant 0 : index
    %c48 = arith.constant 48 : index
    %46 = vector.load %arg7[%c0_49, %c48] : memref<2x256xf32, #tpu.memory_space<vmem>>, vector<1x16xf32>
    %c0_50 = arith.constant 0 : index
    %c6 = arith.constant 6 : index
    %c3_51 = arith.constant 3 : index
    %47 = vector.load %arg4[%c0_50, %c6, %c3_51] : memref<2x22x22xf32, #tpu.memory_space<vmem>>, vector<1x1x16xf32>
    %48 = vector.shape_cast %47 : vector<1x1x16xf32> to vector<1x16xf32>
    %49 = vector.shape_cast %46 : vector<1x16xf32> to vector<1x1x16xf32>
    tpu.vector_store %arg4[%c0_50, %c6, %c3_51], %49 {strides = array<i32>} : memref<2x22x22xf32, #tpu.memory_space<vmem>>, vector<1x1x16xf32>,
    %c1_52 = arith.constant 1 : index
    %c48_53 = arith.constant 48 : index
    %50 = vector.load %arg7[%c1_52, %c48_53] : memref<2x256xf32, #tpu.memory_space<vmem>>, vector<1x16xf32>
    %c1_54 = arith.constant 1 : index
    %c6_55 = arith.constant 6 : index
    %c3_56 = arith.constant 3 : index
    %51 = vector.load %arg4[%c1_54, %c6_55, %c3_56] : memref<2x22x22xf32, #tpu.memory_space<vmem>>, vector<1x1x16xf32>
    %52 = vector.shape_cast %51 : vector<1x1x16xf32> to vector<1x16xf32>
    %53 = vector.shape_cast %50 : vector<1x16xf32> to vector<1x1x16xf32>
    tpu.vector_store %arg4[%c1_54, %c6_55, %c3_56], %53 {strides = array<i32>} : memref<2x22x22xf32, #tpu.memory_space<vmem>>, vector<1x1x16xf32>,
    %c0_57 = arith.constant 0 : index
    %c64 = arith.constant 64 : index
    %54 = vector.load %arg7[%c0_57, %c64] : memref<2x256xf32, #tpu.memory_space<vmem>>, vector<1x16xf32>
    %c0_58 = arith.constant 0 : index
    %c7 = arith.constant 7 : index
    %c3_59 = arith.constant 3 : index
    %55 = vector.load %arg4[%c0_58, %c7, %c3_59] : memref<2x22x22xf32, #tpu.memory_space<vmem>>, vector<1x1x16xf32>
    %56 = vector.shape_cast %55 : vector<1x1x16xf32> to vector<1x16xf32>
    %57 = vector.shape_cast %54 : vector<1x16xf32> to vector<1x1x16xf32>
    tpu.vector_store %arg4[%c0_58, %c7, %c3_59], %57 {strides = array<i32>} : memref<2x22x22xf32, #tpu.memory_space<vmem>>, vector<1x1x16xf32>,
    %c1_60 = arith.constant 1 : index
    %c64_61 = arith.constant 64 : index
    %58 = vector.load %arg7[%c1_60, %c64_61] : memref<2x256xf32, #tpu.memory_space<vmem>>, vector<1x16xf32>
    %c1_62 = arith.constant 1 : index
    %c7_63 = arith.constant 7 : index
    %c3_64 = arith.constant 3 : index
    %59 = vector.load %arg4[%c1_62, %c7_63, %c3_64] : memref<2x22x22xf32, #tpu.memory_space<vmem>>, vector<1x1x16xf32>
    %60 = vector.shape_cast %59 : vector<1x1x16xf32> to vector<1x16xf32>
    %61 = vector.shape_cast %58 : vector<1x16xf32> to vector<1x1x16xf32>
    tpu.vector_store %arg4[%c1_62, %c7_63, %c3_64], %61 {strides = array<i32>} : memref<2x22x22xf32, #tpu.memory_space<vmem>>, vector<1x1x16xf32>,
    %c0_65 = arith.constant 0 : index
    %c80 = arith.constant 80 : index
    %62 = vector.load %arg7[%c0_65, %c80] : memref<2x256xf32, #tpu.memory_space<vmem>>, vector<1x16xf32>
    %c0_66 = arith.constant 0 : index
    %c8 = arith.constant 8 : index
    %c3_67 = arith.constant 3 : index
    %63 = vector.load %arg4[%c0_66, %c8, %c3_67] : memref<2x22x22xf32, #tpu.memory_space<vmem>>, vector<1x1x16xf32>
    %64 = vector.shape_cast %63 : vector<1x1x16xf32> to vector<1x16xf32>
    %65 = vector.shape_cast %62 : vector<1x16xf32> to vector<1x1x16xf32>
    tpu.vector_store %arg4[%c0_66, %c8, %c3_67], %65 {strides = array<i32>} : memref<2x22x22xf32, #tpu.memory_space<vmem>>, vector<1x1x16xf32>,
    %c1_68 = arith.constant 1 : index
    %c80_69 = arith.constant 80 : index
    %66 = vector.load %arg7[%c1_68, %c80_69] : memref<2x256xf32, #tpu.memory_space<vmem>>, vector<1x16xf32>
    %c1_70 = arith.constant 1 : index
    %c8_71 = arith.constant 8 : index
    %c3_72 = arith.constant 3 : index
    %67 = vector.load %arg4[%c1_70, %c8_71, %c3_72] : memref<2x22x22xf32, #tpu.memory_space<vmem>>, vector<1x1x16xf32>
    %68 = vector.shape_cast %67 : vector<1x1x16xf32> to vector<1x16xf32>
    %69 = vector.shape_cast %66 : vector<1x16xf32> to vector<1x1x16xf32>
    tpu.vector_store %arg4[%c1_70, %c8_71, %c3_72], %69 {strides = array<i32>} : memref<2x22x22xf32, #tpu.memory_space<vmem>>, vector<1x1x16xf32>,
    %c0_73 = arith.constant 0 : index
    %c96 = arith.constant 96 : index
    %70 = vector.load %arg7[%c0_73, %c96] : memref<2x256xf32, #tpu.memory_space<vmem>>, vector<1x16xf32>
    %c0_74 = arith.constant 0 : index
    %c9 = arith.constant 9 : index
    %c3_75 = arith.constant 3 : index
    %71 = vector.load %arg4[%c0_74, %c9, %c3_75] : memref<2x22x22xf32, #tpu.memory_space<vmem>>, vector<1x1x16xf32>
    %72 = vector.shape_cast %71 : vector<1x1x16xf32> to vector<1x16xf32>
    %73 = vector.shape_cast %70 : vector<1x16xf32> to vector<1x1x16xf32>
    tpu.vector_store %arg4[%c0_74, %c9, %c3_75], %73 {strides = array<i32>} : memref<2x22x22xf32, #tpu.memory_space<vmem>>, vector<1x1x16xf32>,
    %c1_76 = arith.constant 1 : index
    %c96_77 = arith.constant 96 : index
    %74 = vector.load %arg7[%c1_76, %c96_77] : memref<2x256xf32, #tpu.memory_space<vmem>>, vector<1x16xf32>
    %c1_78 = arith.constant 1 : index
    %c9_79 = arith.constant 9 : index
    %c3_80 = arith.constant 3 : index
    %75 = vector.load %arg4[%c1_78, %c9_79, %c3_80] : memref<2x22x22xf32, #tpu.memory_space<vmem>>, vector<1x1x16xf32>
    %76 = vector.shape_cast %75 : vector<1x1x16xf32> to vector<1x16xf32>
    %77 = vector.shape_cast %74 : vector<1x16xf32> to vector<1x1x16xf32>
    tpu.vector_store %arg4[%c1_78, %c9_79, %c3_80], %77 {strides = array<i32>} : memref<2x22x22xf32, #tpu.memory_space<vmem>>, vector<1x1x16xf32>,
    %c0_81 = arith.constant 0 : index
    %c112 = arith.constant 112 : index
    %78 = vector.load %arg7[%c0_81, %c112] : memref<2x256xf32, #tpu.memory_space<vmem>>, vector<1x16xf32>
    %c0_82 = arith.constant 0 : index
    %c10 = arith.constant 10 : index
    %c3_83 = arith.constant 3 : index
    %79 = vector.load %arg4[%c0_82, %c10, %c3_83] : memref<2x22x22xf32, #tpu.memory_space<vmem>>, vector<1x1x16xf32>
    %80 = vector.shape_cast %79 : vector<1x1x16xf32> to vector<1x16xf32>
    %81 = vector.shape_cast %78 : vector<1x16xf32> to vector<1x1x16xf32>
    tpu.vector_store %arg4[%c0_82, %c10, %c3_83], %81 {strides = array<i32>} : memref<2x22x22xf32, #tpu.memory_space<vmem>>, vector<1x1x16xf32>,
    %c1_84 = arith.constant 1 : index
    %c112_85 = arith.constant 112 : index
    %82 = vector.load %arg7[%c1_84, %c112_85] : memref<2x256xf32, #tpu.memory_space<vmem>>, vector<1x16xf32>
    %c1_86 = arith.constant 1 : index
    %c10_87 = arith.constant 10 : index
    %c3_88 = arith.constant 3 : index
    %83 = vector.load %arg4[%c1_86, %c10_87, %c3_88] : memref<2x22x22xf32, #tpu.memory_space<vmem>>, vector<1x1x16xf32>
    %84 = vector.shape_cast %83 : vector<1x1x16xf32> to vector<1x16xf32>
    %85 = vector.shape_cast %82 : vector<1x16xf32> to vector<1x1x16xf32>
    tpu.vector_store %arg4[%c1_86, %c10_87, %c3_88], %85 {strides = array<i32>} : memref<2x22x22xf32, #tpu.memory_space<vmem>>, vector<1x1x16xf32>,
    %c0_89 = arith.constant 0 : index
    %c128 = arith.constant 128 : index
    %86 = vector.load %arg7[%c0_89, %c128] : memref<2x256xf32, #tpu.memory_space<vmem>>, vector<1x16xf32>
    %c0_90 = arith.constant 0 : index
    %c11 = arith.constant 11 : index
    %c3_91 = arith.constant 3 : index
    %87 = vector.load %arg4[%c0_90, %c11, %c3_91] : memref<2x22x22xf32, #tpu.memory_space<vmem>>, vector<1x1x16xf32>
    %88 = vector.shape_cast %87 : vector<1x1x16xf32> to vector<1x16xf32>
    %89 = vector.shape_cast %86 : vector<1x16xf32> to vector<1x1x16xf32>
    tpu.vector_store %arg4[%c0_90, %c11, %c3_91], %89 {strides = array<i32>} : memref<2x22x22xf32, #tpu.memory_space<vmem>>, vector<1x1x16xf32>,
    %c1_92 = arith.constant 1 : index
    %c128_93 = arith.constant 128 : index
    %90 = vector.load %arg7[%c1_92, %c128_93] : memref<2x256xf32, #tpu.memory_space<vmem>>, vector<1x16xf32>
    %c1_94 = arith.constant 1 : index
    %c11_95 = arith.constant 11 : index
    %c3_96 = arith.constant 3 : index
    %91 = vector.load %arg4[%c1_94, %c11_95, %c3_96] : memref<2x22x22xf32, #tpu.memory_space<vmem>>, vector<1x1x16xf32>
    %92 = vector.shape_cast %91 : vector<1x1x16xf32> to vector<1x16xf32>
    %93 = vector.shape_cast %90 : vector<1x16xf32> to vector<1x1x16xf32>
    tpu.vector_store %arg4[%c1_94, %c11_95, %c3_96], %93 {strides = array<i32>} : memref<2x22x22xf32, #tpu.memory_space<vmem>>, vector<1x1x16xf32>,
    %c0_97 = arith.constant 0 : index
    %c144 = arith.constant 144 : index
    %94 = vector.load %arg7[%c0_97, %c144] : memref<2x256xf32, #tpu.memory_space<vmem>>, vector<1x16xf32>
    %c0_98 = arith.constant 0 : index
    %c12 = arith.constant 12 : index
    %c3_99 = arith.constant 3 : index
    %95 = vector.load %arg4[%c0_98, %c12, %c3_99] : memref<2x22x22xf32, #tpu.memory_space<vmem>>, vector<1x1x16xf32>
    %96 = vector.shape_cast %95 : vector<1x1x16xf32> to vector<1x16xf32>
    %97 = vector.shape_cast %94 : vector<1x16xf32> to vector<1x1x16xf32>
    tpu.vector_store %arg4[%c0_98, %c12, %c3_99], %97 {strides = array<i32>} : memref<2x22x22xf32, #tpu.memory_space<vmem>>, vector<1x1x16xf32>,
    %c1_100 = arith.constant 1 : index
    %c144_101 = arith.constant 144 : index
    %98 = vector.load %arg7[%c1_100, %c144_101] : memref<2x256xf32, #tpu.memory_space<vmem>>, vector<1x16xf32>
    %c1_102 = arith.constant 1 : index
    %c12_103 = arith.constant 12 : index
    %c3_104 = arith.constant 3 : index
    %99 = vector.load %arg4[%c1_102, %c12_103, %c3_104] : memref<2x22x22xf32, #tpu.memory_space<vmem>>, vector<1x1x16xf32>
    %100 = vector.shape_cast %99 : vector<1x1x16xf32> to vector<1x16xf32>
    %101 = vector.shape_cast %98 : vector<1x16xf32> to vector<1x1x16xf32>
    tpu.vector_store %arg4[%c1_102, %c12_103, %c3_104], %101 {strides = array<i32>} : memref<2x22x22xf32, #tpu.memory_space<vmem>>, vector<1x1x16xf32>,
    %c0_105 = arith.constant 0 : index
    %c160 = arith.constant 160 : index
    %102 = vector.load %arg7[%c0_105, %c160] : memref<2x256xf32, #tpu.memory_space<vmem>>, vector<1x16xf32>
    %c0_106 = arith.constant 0 : index
    %c13 = arith.constant 13 : index
    %c3_107 = arith.constant 3 : index
    %103 = vector.load %arg4[%c0_106, %c13, %c3_107] : memref<2x22x22xf32, #tpu.memory_space<vmem>>, vector<1x1x16xf32>
    %104 = vector.shape_cast %103 : vector<1x1x16xf32> to vector<1x16xf32>
    %105 = vector.shape_cast %102 : vector<1x16xf32> to vector<1x1x16xf32>
    tpu.vector_store %arg4[%c0_106, %c13, %c3_107], %105 {strides = array<i32>} : memref<2x22x22xf32, #tpu.memory_space<vmem>>, vector<1x1x16xf32>,
    %c1_108 = arith.constant 1 : index
    %c160_109 = arith.constant 160 : index
    %106 = vector.load %arg7[%c1_108, %c160_109] : memref<2x256xf32, #tpu.memory_space<vmem>>, vector<1x16xf32>
    %c1_110 = arith.constant 1 : index
    %c13_111 = arith.constant 13 : index
    %c3_112 = arith.constant 3 : index
    %107 = vector.load %arg4[%c1_110, %c13_111, %c3_112] : memref<2x22x22xf32, #tpu.memory_space<vmem>>, vector<1x1x16xf32>
    %108 = vector.shape_cast %107 : vector<1x1x16xf32> to vector<1x16xf32>
    %109 = vector.shape_cast %106 : vector<1x16xf32> to vector<1x1x16xf32>
    tpu.vector_store %arg4[%c1_110, %c13_111, %c3_112], %109 {strides = array<i32>} : memref<2x22x22xf32, #tpu.memory_space<vmem>>, vector<1x1x16xf32>,
    %c0_113 = arith.constant 0 : index
    %c176 = arith.constant 176 : index
    %110 = vector.load %arg7[%c0_113, %c176] : memref<2x256xf32, #tpu.memory_space<vmem>>, vector<1x16xf32>
    %c0_114 = arith.constant 0 : index
    %c14 = arith.constant 14 : index
    %c3_115 = arith.constant 3 : index
    %111 = vector.load %arg4[%c0_114, %c14, %c3_115] : memref<2x22x22xf32, #tpu.memory_space<vmem>>, vector<1x1x16xf32>
    %112 = vector.shape_cast %111 : vector<1x1x16xf32> to vector<1x16xf32>
    %113 = vector.shape_cast %110 : vector<1x16xf32> to vector<1x1x16xf32>
    tpu.vector_store %arg4[%c0_114, %c14, %c3_115], %113 {strides = array<i32>} : memref<2x22x22xf32, #tpu.memory_space<vmem>>, vector<1x1x16xf32>,
    %c1_116 = arith.constant 1 : index
    %c176_117 = arith.constant 176 : index
    %114 = vector.load %arg7[%c1_116, %c176_117] : memref<2x256xf32, #tpu.memory_space<vmem>>, vector<1x16xf32>
    %c1_118 = arith.constant 1 : index
    %c14_119 = arith.constant 14 : index
    %c3_120 = arith.constant 3 : index
    %115 = vector.load %arg4[%c1_118, %c14_119, %c3_120] : memref<2x22x22xf32, #tpu.memory_space<vmem>>, vector<1x1x16xf32>
    %116 = vector.shape_cast %115 : vector<1x1x16xf32> to vector<1x16xf32>
    %117 = vector.shape_cast %114 : vector<1x16xf32> to vector<1x1x16xf32>
    tpu.vector_store %arg4[%c1_118, %c14_119, %c3_120], %117 {strides = array<i32>} : memref<2x22x22xf32, #tpu.memory_space<vmem>>, vector<1x1x16xf32>,
    %c0_121 = arith.constant 0 : index
    %c192 = arith.constant 192 : index
    %118 = vector.load %arg7[%c0_121, %c192] : memref<2x256xf32, #tpu.memory_space<vmem>>, vector<1x16xf32>
    %c0_122 = arith.constant 0 : index
    %c15 = arith.constant 15 : index
    %c3_123 = arith.constant 3 : index
    %119 = vector.load %arg4[%c0_122, %c15, %c3_123] : memref<2x22x22xf32, #tpu.memory_space<vmem>>, vector<1x1x16xf32>
    %120 = vector.shape_cast %119 : vector<1x1x16xf32> to vector<1x16xf32>
    %121 = vector.shape_cast %118 : vector<1x16xf32> to vector<1x1x16xf32>
    tpu.vector_store %arg4[%c0_122, %c15, %c3_123], %121 {strides = array<i32>} : memref<2x22x22xf32, #tpu.memory_space<vmem>>, vector<1x1x16xf32>,
    %c1_124 = arith.constant 1 : index
    %c192_125 = arith.constant 192 : index
    %122 = vector.load %arg7[%c1_124, %c192_125] : memref<2x256xf32, #tpu.memory_space<vmem>>, vector<1x16xf32>
    %c1_126 = arith.constant 1 : index
    %c15_127 = arith.constant 15 : index
    %c3_128 = arith.constant 3 : index
    %123 = vector.load %arg4[%c1_126, %c15_127, %c3_128] : memref<2x22x22xf32, #tpu.memory_space<vmem>>, vector<1x1x16xf32>
    %124 = vector.shape_cast %123 : vector<1x1x16xf32> to vector<1x16xf32>
    %125 = vector.shape_cast %122 : vector<1x16xf32> to vector<1x1x16xf32>
    tpu.vector_store %arg4[%c1_126, %c15_127, %c3_128], %125 {strides = array<i32>} : memref<2x22x22xf32, #tpu.memory_space<vmem>>, vector<1x1x16xf32>,
    %c0_129 = arith.constant 0 : index
    %c208 = arith.constant 208 : index
    %126 = vector.load %arg7[%c0_129, %c208] : memref<2x256xf32, #tpu.memory_space<vmem>>, vector<1x16xf32>
    %c0_130 = arith.constant 0 : index
    %c16_131 = arith.constant 16 : index
    %c3_132 = arith.constant 3 : index
    %127 = vector.load %arg4[%c0_130, %c16_131, %c3_132] : memref<2x22x22xf32, #tpu.memory_space<vmem>>, vector<1x1x16xf32>
    %128 = vector.shape_cast %127 : vector<1x1x16xf32> to vector<1x16xf32>
    %129 = vector.shape_cast %126 : vector<1x16xf32> to vector<1x1x16xf32>
    tpu.vector_store %arg4[%c0_130, %c16_131, %c3_132], %129 {strides = array<i32>} : memref<2x22x22xf32, #tpu.memory_space<vmem>>, vector<1x1x16xf32>,
    %c1_133 = arith.constant 1 : index
    %c208_134 = arith.constant 208 : index
    %130 = vector.load %arg7[%c1_133, %c208_134] : memref<2x256xf32, #tpu.memory_space<vmem>>, vector<1x16xf32>
    %c1_135 = arith.constant 1 : index
    %c16_136 = arith.constant 16 : index
    %c3_137 = arith.constant 3 : index
    %131 = vector.load %arg4[%c1_135, %c16_136, %c3_137] : memref<2x22x22xf32, #tpu.memory_space<vmem>>, vector<1x1x16xf32>
    %132 = vector.shape_cast %131 : vector<1x1x16xf32> to vector<1x16xf32>
    %133 = vector.shape_cast %130 : vector<1x16xf32> to vector<1x1x16xf32>
    tpu.vector_store %arg4[%c1_135, %c16_136, %c3_137], %133 {strides = array<i32>} : memref<2x22x22xf32, #tpu.memory_space<vmem>>, vector<1x1x16xf32>,
    %c0_138 = arith.constant 0 : index
    %c224 = arith.constant 224 : index
    %134 = vector.load %arg7[%c0_138, %c224] : memref<2x256xf32, #tpu.memory_space<vmem>>, vector<1x16xf32>
    %c0_139 = arith.constant 0 : index
    %c17 = arith.constant 17 : index
    %c3_140 = arith.constant 3 : index
    %135 = vector.load %arg4[%c0_139, %c17, %c3_140] : memref<2x22x22xf32, #tpu.memory_space<vmem>>, vector<1x1x16xf32>
    %136 = vector.shape_cast %135 : vector<1x1x16xf32> to vector<1x16xf32>
    %137 = vector.shape_cast %134 : vector<1x16xf32> to vector<1x1x16xf32>
    tpu.vector_store %arg4[%c0_139, %c17, %c3_140], %137 {strides = array<i32>} : memref<2x22x22xf32, #tpu.memory_space<vmem>>, vector<1x1x16xf32>,
    %c1_141 = arith.constant 1 : index
    %c224_142 = arith.constant 224 : index
    %138 = vector.load %arg7[%c1_141, %c224_142] : memref<2x256xf32, #tpu.memory_space<vmem>>, vector<1x16xf32>
    %c1_143 = arith.constant 1 : index
    %c17_144 = arith.constant 17 : index
    %c3_145 = arith.constant 3 : index
    %139 = vector.load %arg4[%c1_143, %c17_144, %c3_145] : memref<2x22x22xf32, #tpu.memory_space<vmem>>, vector<1x1x16xf32>
    %140 = vector.shape_cast %139 : vector<1x1x16xf32> to vector<1x16xf32>
    %141 = vector.shape_cast %138 : vector<1x16xf32> to vector<1x1x16xf32>
    tpu.vector_store %arg4[%c1_143, %c17_144, %c3_145], %141 {strides = array<i32>} : memref<2x22x22xf32, #tpu.memory_space<vmem>>, vector<1x1x16xf32>,
    %c0_146 = arith.constant 0 : index
    %c240 = arith.constant 240 : index
    %142 = vector.load %arg7[%c0_146, %c240] : memref<2x256xf32, #tpu.memory_space<vmem>>, vector<1x16xf32>
    %c0_147 = arith.constant 0 : index
    %c18 = arith.constant 18 : index
    %c3_148 = arith.constant 3 : index
    %143 = vector.load %arg4[%c0_147, %c18, %c3_148] : memref<2x22x22xf32, #tpu.memory_space<vmem>>, vector<1x1x16xf32>
    %144 = vector.shape_cast %143 : vector<1x1x16xf32> to vector<1x16xf32>
    %145 = vector.shape_cast %142 : vector<1x16xf32> to vector<1x1x16xf32>
    tpu.vector_store %arg4[%c0_147, %c18, %c3_148], %145 {strides = array<i32>} : memref<2x22x22xf32, #tpu.memory_space<vmem>>, vector<1x1x16xf32>,
    %c1_149 = arith.constant 1 : index
    %c240_150 = arith.constant 240 : index
    %146 = vector.load %arg7[%c1_149, %c240_150] : memref<2x256xf32, #tpu.memory_space<vmem>>, vector<1x16xf32>
    %c1_151 = arith.constant 1 : index
    %c18_152 = arith.constant 18 : index
    %c3_153 = arith.constant 3 : index
    %147 = vector.load %arg4[%c1_151, %c18_152, %c3_153] : memref<2x22x22xf32, #tpu.memory_space<vmem>>, vector<1x1x16xf32>
    %148 = vector.shape_cast %147 : vector<1x1x16xf32> to vector<1x16xf32>
    %149 = vector.shape_cast %146 : vector<1x16xf32> to vector<1x1x16xf32>
    tpu.vector_store %arg4[%c1_151, %c18_152, %c3_153], %149 {strides = array<i32>} : memref<2x22x22xf32, #tpu.memory_space<vmem>>, vector<1x1x16xf32>,
    %cst_154 = arith.constant 0.000000e+00 : f32
    %150 = vector.broadcast %cst_154 : f32 to vector<16x16xf32>
    %c0_155 = arith.constant 0 : index
    %c0_156 = arith.constant 0 : index
    %c0_157 = arith.constant 0 : index
    %151 = vector.load %arg4[%c0_155, %c0_156, %c0_157] : memref<2x22x22xf32, #tpu.memory_space<vmem>>, vector<1x22x16xf32>
    %152 = vector.shape_cast %151 : vector<1x22x16xf32> to vector<22x16xf32>
    %c0_158 = arith.constant 0 : index
    %c0_159 = arith.constant 0 : index
    %153 = vector.load %arg5[%c0_158, %c0_159] : memref<22x16xf32, #tpu.memory_space<vmem>>, vector<22x16xf32>
    tpu.vector_store %arg5[%c0_158, %c0_159], %152 {strides = array<i32>} : memref<22x16xf32, #tpu.memory_space<vmem>>, vector<22x16xf32>,
    %c0_160 = arith.constant 0 : index
    %154 = memref.load %arg1[%c0_160] : memref<98xf32, #tpu.memory_space<smem>>
    %c0_161 = arith.constant 0 : index
    %c0_162 = arith.constant 0 : index
    %155 = vector.load %arg5[%c0_161, %c0_162] : memref<22x16xf32, #tpu.memory_space<vmem>>, vector<16x16xf32>
    %156 = vector.broadcast %154 : f32 to vector<16x16xf32>
    %157 = arith.mulf %155, %156 : vector<16x16xf32>
    %158 = arith.addf %150, %157 : vector<16x16xf32>
    %c7_163 = arith.constant 7 : index
    %159 = memref.load %arg1[%c7_163] : memref<98xf32, #tpu.memory_space<smem>>
    %c1_164 = arith.constant 1 : index
    %c0_165 = arith.constant 0 : index
    %160 = vector.load %arg5[%c1_164, %c0_165] : memref<22x16xf32, #tpu.memory_space<vmem>>, vector<16x16xf32>
    %161 = vector.broadcast %159 : f32 to vector<16x16xf32>
    %162 = arith.mulf %160, %161 : vector<16x16xf32>
    %163 = arith.addf %158, %162 : vector<16x16xf32>
    %c14_166 = arith.constant 14 : index
    %164 = memref.load %arg1[%c14_166] : memref<98xf32, #tpu.memory_space<smem>>
    %c2 = arith.constant 2 : index
    %c0_167 = arith.constant 0 : index
    %165 = vector.load %arg5[%c2, %c0_167] : memref<22x16xf32, #tpu.memory_space<vmem>>, vector<16x16xf32>
    %166 = vector.broadcast %164 : f32 to vector<16x16xf32>
    %167 = arith.mulf %165, %166 : vector<16x16xf32>
    %168 = arith.addf %163, %167 : vector<16x16xf32>
    %c21 = arith.constant 21 : index
    %169 = memref.load %arg1[%c21] : memref<98xf32, #tpu.memory_space<smem>>
    %c3_168 = arith.constant 3 : index
    %c0_169 = arith.constant 0 : index
    %170 = vector.load %arg5[%c3_168, %c0_169] : memref<22x16xf32, #tpu.memory_space<vmem>>, vector<16x16xf32>
    %171 = vector.broadcast %169 : f32 to vector<16x16xf32>
    %172 = arith.mulf %170, %171 : vector<16x16xf32>
    %173 = arith.addf %168, %172 : vector<16x16xf32>
    %c28 = arith.constant 28 : index
    %174 = memref.load %arg1[%c28] : memref<98xf32, #tpu.memory_space<smem>>
    %c4_170 = arith.constant 4 : index
    %c0_171 = arith.constant 0 : index
    %175 = vector.load %arg5[%c4_170, %c0_171] : memref<22x16xf32, #tpu.memory_space<vmem>>, vector<16x16xf32>
    %176 = vector.broadcast %174 : f32 to vector<16x16xf32>
    %177 = arith.mulf %175, %176 : vector<16x16xf32>
    %178 = arith.addf %173, %177 : vector<16x16xf32>
    %c35 = arith.constant 35 : index
    %179 = memref.load %arg1[%c35] : memref<98xf32, #tpu.memory_space<smem>>
    %c5_172 = arith.constant 5 : index
    %c0_173 = arith.constant 0 : index
    %180 = vector.load %arg5[%c5_172, %c0_173] : memref<22x16xf32, #tpu.memory_space<vmem>>, vector<16x16xf32>
    %181 = vector.broadcast %179 : f32 to vector<16x16xf32>
    %182 = arith.mulf %180, %181 : vector<16x16xf32>
    %183 = arith.addf %178, %182 : vector<16x16xf32>
    %c42 = arith.constant 42 : index
    %184 = memref.load %arg1[%c42] : memref<98xf32, #tpu.memory_space<smem>>
    %c6_174 = arith.constant 6 : index
    %c0_175 = arith.constant 0 : index
    %185 = vector.load %arg5[%c6_174, %c0_175] : memref<22x16xf32, #tpu.memory_space<vmem>>, vector<16x16xf32>
    %186 = vector.broadcast %184 : f32 to vector<16x16xf32>
    %187 = arith.mulf %185, %186 : vector<16x16xf32>
    %188 = arith.addf %183, %187 : vector<16x16xf32>
    %c0_176 = arith.constant 0 : index
    %c0_177 = arith.constant 0 : index
    %c1_178 = arith.constant 1 : index
    %189 = vector.load %arg4[%c0_176, %c0_177, %c1_178] : memref<2x22x22xf32, #tpu.memory_space<vmem>>, vector<1x22x16xf32>
    %190 = vector.shape_cast %189 : vector<1x22x16xf32> to vector<22x16xf32>
    %c0_179 = arith.constant 0 : index
    %c0_180 = arith.constant 0 : index
    %191 = vector.load %arg5[%c0_179, %c0_180] : memref<22x16xf32, #tpu.memory_space<vmem>>, vector<22x16xf32>
    tpu.vector_store %arg5[%c0_179, %c0_180], %190 {strides = array<i32>} : memref<22x16xf32, #tpu.memory_space<vmem>>, vector<22x16xf32>,
    %c1_181 = arith.constant 1 : index
    %192 = memref.load %arg1[%c1_181] : memref<98xf32, #tpu.memory_space<smem>>
    %c0_182 = arith.constant 0 : index
    %c0_183 = arith.constant 0 : index
    %193 = vector.load %arg5[%c0_182, %c0_183] : memref<22x16xf32, #tpu.memory_space<vmem>>, vector<16x16xf32>
    %194 = vector.broadcast %192 : f32 to vector<16x16xf32>
    %195 = arith.mulf %193, %194 : vector<16x16xf32>
    %196 = arith.addf %188, %195 : vector<16x16xf32>
    %c8_184 = arith.constant 8 : index
    %197 = memref.load %arg1[%c8_184] : memref<98xf32, #tpu.memory_space<smem>>
    %c1_185 = arith.constant 1 : index
    %c0_186 = arith.constant 0 : index
    %198 = vector.load %arg5[%c1_185, %c0_186] : memref<22x16xf32, #tpu.memory_space<vmem>>, vector<16x16xf32>
    %199 = vector.broadcast %197 : f32 to vector<16x16xf32>
    %200 = arith.mulf %198, %199 : vector<16x16xf32>
    %201 = arith.addf %196, %200 : vector<16x16xf32>
    %c15_187 = arith.constant 15 : index
    %202 = memref.load %arg1[%c15_187] : memref<98xf32, #tpu.memory_space<smem>>
    %c2_188 = arith.constant 2 : index
    %c0_189 = arith.constant 0 : index
    %203 = vector.load %arg5[%c2_188, %c0_189] : memref<22x16xf32, #tpu.memory_space<vmem>>, vector<16x16xf32>
    %204 = vector.broadcast %202 : f32 to vector<16x16xf32>
    %205 = arith.mulf %203, %204 : vector<16x16xf32>
    %206 = arith.addf %201, %205 : vector<16x16xf32>
    %c22 = arith.constant 22 : index
    %207 = memref.load %arg1[%c22] : memref<98xf32, #tpu.memory_space<smem>>
    %c3_190 = arith.constant 3 : index
    %c0_191 = arith.constant 0 : index
    %208 = vector.load %arg5[%c3_190, %c0_191] : memref<22x16xf32, #tpu.memory_space<vmem>>, vector<16x16xf32>
    %209 = vector.broadcast %207 : f32 to vector<16x16xf32>
    %210 = arith.mulf %208, %209 : vector<16x16xf32>
    %211 = arith.addf %206, %210 : vector<16x16xf32>
    %c29 = arith.constant 29 : index
    %212 = memref.load %arg1[%c29] : memref<98xf32, #tpu.memory_space<smem>>
    %c4_192 = arith.constant 4 : index
    %c0_193 = arith.constant 0 : index
    %213 = vector.load %arg5[%c4_192, %c0_193] : memref<22x16xf32, #tpu.memory_space<vmem>>, vector<16x16xf32>
    %214 = vector.broadcast %212 : f32 to vector<16x16xf32>
    %215 = arith.mulf %213, %214 : vector<16x16xf32>
    %216 = arith.addf %211, %215 : vector<16x16xf32>
    %c36 = arith.constant 36 : index
    %217 = memref.load %arg1[%c36] : memref<98xf32, #tpu.memory_space<smem>>
    %c5_194 = arith.constant 5 : index
    %c0_195 = arith.constant 0 : index
    %218 = vector.load %arg5[%c5_194, %c0_195] : memref<22x16xf32, #tpu.memory_space<vmem>>, vector<16x16xf32>
    %219 = vector.broadcast %217 : f32 to vector<16x16xf32>
    %220 = arith.mulf %218, %219 : vector<16x16xf32>
    %221 = arith.addf %216, %220 : vector<16x16xf32>
    %c43 = arith.constant 43 : index
    %222 = memref.load %arg1[%c43] : memref<98xf32, #tpu.memory_space<smem>>
    %c6_196 = arith.constant 6 : index
    %c0_197 = arith.constant 0 : index
    %223 = vector.load %arg5[%c6_196, %c0_197] : memref<22x16xf32, #tpu.memory_space<vmem>>, vector<16x16xf32>
    %224 = vector.broadcast %222 : f32 to vector<16x16xf32>
    %225 = arith.mulf %223, %224 : vector<16x16xf32>
    %226 = arith.addf %221, %225 : vector<16x16xf32>
    %c0_198 = arith.constant 0 : index
    %c0_199 = arith.constant 0 : index
    %c2_200 = arith.constant 2 : index
    %227 = vector.load %arg4[%c0_198, %c0_199, %c2_200] : memref<2x22x22xf32, #tpu.memory_space<vmem>>, vector<1x22x16xf32>
    %228 = vector.shape_cast %227 : vector<1x22x16xf32> to vector<22x16xf32>
    %c0_201 = arith.constant 0 : index
    %c0_202 = arith.constant 0 : index
    %229 = vector.load %arg5[%c0_201, %c0_202] : memref<22x16xf32, #tpu.memory_space<vmem>>, vector<22x16xf32>
    tpu.vector_store %arg5[%c0_201, %c0_202], %228 {strides = array<i32>} : memref<22x16xf32, #tpu.memory_space<vmem>>, vector<22x16xf32>,
    %c2_203 = arith.constant 2 : index
    %230 = memref.load %arg1[%c2_203] : memref<98xf32, #tpu.memory_space<smem>>
    %c0_204 = arith.constant 0 : index
    %c0_205 = arith.constant 0 : index
    %231 = vector.load %arg5[%c0_204, %c0_205] : memref<22x16xf32, #tpu.memory_space<vmem>>, vector<16x16xf32>
    %232 = vector.broadcast %230 : f32 to vector<16x16xf32>
    %233 = arith.mulf %231, %232 : vector<16x16xf32>
    %234 = arith.addf %226, %233 : vector<16x16xf32>
    %c9_206 = arith.constant 9 : index
    %235 = memref.load %arg1[%c9_206] : memref<98xf32, #tpu.memory_space<smem>>
    %c1_207 = arith.constant 1 : index
    %c0_208 = arith.constant 0 : index
    %236 = vector.load %arg5[%c1_207, %c0_208] : memref<22x16xf32, #tpu.memory_space<vmem>>, vector<16x16xf32>
    %237 = vector.broadcast %235 : f32 to vector<16x16xf32>
    %238 = arith.mulf %236, %237 : vector<16x16xf32>
    %239 = arith.addf %234, %238 : vector<16x16xf32>
    %c16_209 = arith.constant 16 : index
    %240 = memref.load %arg1[%c16_209] : memref<98xf32, #tpu.memory_space<smem>>
    %c2_210 = arith.constant 2 : index
    %c0_211 = arith.constant 0 : index
    %241 = vector.load %arg5[%c2_210, %c0_211] : memref<22x16xf32, #tpu.memory_space<vmem>>, vector<16x16xf32>
    %242 = vector.broadcast %240 : f32 to vector<16x16xf32>
    %243 = arith.mulf %241, %242 : vector<16x16xf32>
    %244 = arith.addf %239, %243 : vector<16x16xf32>
    %c23 = arith.constant 23 : index
    %245 = memref.load %arg1[%c23] : memref<98xf32, #tpu.memory_space<smem>>
    %c3_212 = arith.constant 3 : index
    %c0_213 = arith.constant 0 : index
    %246 = vector.load %arg5[%c3_212, %c0_213] : memref<22x16xf32, #tpu.memory_space<vmem>>, vector<16x16xf32>
    %247 = vector.broadcast %245 : f32 to vector<16x16xf32>
    %248 = arith.mulf %246, %247 : vector<16x16xf32>
    %249 = arith.addf %244, %248 : vector<16x16xf32>
    %c30 = arith.constant 30 : index
    %250 = memref.load %arg1[%c30] : memref<98xf32, #tpu.memory_space<smem>>
    %c4_214 = arith.constant 4 : index
    %c0_215 = arith.constant 0 : index
    %251 = vector.load %arg5[%c4_214, %c0_215] : memref<22x16xf32, #tpu.memory_space<vmem>>, vector<16x16xf32>
    %252 = vector.broadcast %250 : f32 to vector<16x16xf32>
    %253 = arith.mulf %251, %252 : vector<16x16xf32>
    %254 = arith.addf %249, %253 : vector<16x16xf32>
    %c37 = arith.constant 37 : index
    %255 = memref.load %arg1[%c37] : memref<98xf32, #tpu.memory_space<smem>>
    %c5_216 = arith.constant 5 : index
    %c0_217 = arith.constant 0 : index
    %256 = vector.load %arg5[%c5_216, %c0_217] : memref<22x16xf32, #tpu.memory_space<vmem>>, vector<16x16xf32>
    %257 = vector.broadcast %255 : f32 to vector<16x16xf32>
    %258 = arith.mulf %256, %257 : vector<16x16xf32>
    %259 = arith.addf %254, %258 : vector<16x16xf32>
    %c44 = arith.constant 44 : index
    %260 = memref.load %arg1[%c44] : memref<98xf32, #tpu.memory_space<smem>>
    %c6_218 = arith.constant 6 : index
    %c0_219 = arith.constant 0 : index
    %261 = vector.load %arg5[%c6_218, %c0_219] : memref<22x16xf32, #tpu.memory_space<vmem>>, vector<16x16xf32>
    %262 = vector.broadcast %260 : f32 to vector<16x16xf32>
    %263 = arith.mulf %261, %262 : vector<16x16xf32>
    %264 = arith.addf %259, %263 : vector<16x16xf32>
    %c0_220 = arith.constant 0 : index
    %c0_221 = arith.constant 0 : index
    %c3_222 = arith.constant 3 : index
    %265 = vector.load %arg4[%c0_220, %c0_221, %c3_222] : memref<2x22x22xf32, #tpu.memory_space<vmem>>, vector<1x22x16xf32>
    %266 = vector.shape_cast %265 : vector<1x22x16xf32> to vector<22x16xf32>
    %c0_223 = arith.constant 0 : index
    %c0_224 = arith.constant 0 : index
    %267 = vector.load %arg5[%c0_223, %c0_224] : memref<22x16xf32, #tpu.memory_space<vmem>>, vector<22x16xf32>
    tpu.vector_store %arg5[%c0_223, %c0_224], %266 {strides = array<i32>} : memref<22x16xf32, #tpu.memory_space<vmem>>, vector<22x16xf32>,
    %c3_225 = arith.constant 3 : index
    %268 = memref.load %arg1[%c3_225] : memref<98xf32, #tpu.memory_space<smem>>
    %c0_226 = arith.constant 0 : index
    %c0_227 = arith.constant 0 : index
    %269 = vector.load %arg5[%c0_226, %c0_227] : memref<22x16xf32, #tpu.memory_space<vmem>>, vector<16x16xf32>
    %270 = vector.broadcast %268 : f32 to vector<16x16xf32>
    %271 = arith.mulf %269, %270 : vector<16x16xf32>
    %272 = arith.addf %264, %271 : vector<16x16xf32>
    %c10_228 = arith.constant 10 : index
    %273 = memref.load %arg1[%c10_228] : memref<98xf32, #tpu.memory_space<smem>>
    %c1_229 = arith.constant 1 : index
    %c0_230 = arith.constant 0 : index
    %274 = vector.load %arg5[%c1_229, %c0_230] : memref<22x16xf32, #tpu.memory_space<vmem>>, vector<16x16xf32>
    %275 = vector.broadcast %273 : f32 to vector<16x16xf32>
    %276 = arith.mulf %274, %275 : vector<16x16xf32>
    %277 = arith.addf %272, %276 : vector<16x16xf32>
    %c17_231 = arith.constant 17 : index
    %278 = memref.load %arg1[%c17_231] : memref<98xf32, #tpu.memory_space<smem>>
    %c2_232 = arith.constant 2 : index
    %c0_233 = arith.constant 0 : index
    %279 = vector.load %arg5[%c2_232, %c0_233] : memref<22x16xf32, #tpu.memory_space<vmem>>, vector<16x16xf32>
    %280 = vector.broadcast %278 : f32 to vector<16x16xf32>
    %281 = arith.mulf %279, %280 : vector<16x16xf32>
    %282 = arith.addf %277, %281 : vector<16x16xf32>
    %c24 = arith.constant 24 : index
    %283 = memref.load %arg1[%c24] : memref<98xf32, #tpu.memory_space<smem>>
    %c3_234 = arith.constant 3 : index
    %c0_235 = arith.constant 0 : index
    %284 = vector.load %arg5[%c3_234, %c0_235] : memref<22x16xf32, #tpu.memory_space<vmem>>, vector<16x16xf32>
    %285 = vector.broadcast %283 : f32 to vector<16x16xf32>
    %286 = arith.mulf %284, %285 : vector<16x16xf32>
    %287 = arith.addf %282, %286 : vector<16x16xf32>
    %c31 = arith.constant 31 : index
    %288 = memref.load %arg1[%c31] : memref<98xf32, #tpu.memory_space<smem>>
    %c4_236 = arith.constant 4 : index
    %c0_237 = arith.constant 0 : index
    %289 = vector.load %arg5[%c4_236, %c0_237] : memref<22x16xf32, #tpu.memory_space<vmem>>, vector<16x16xf32>
    %290 = vector.broadcast %288 : f32 to vector<16x16xf32>
    %291 = arith.mulf %289, %290 : vector<16x16xf32>
    %292 = arith.addf %287, %291 : vector<16x16xf32>
    %c38 = arith.constant 38 : index
    %293 = memref.load %arg1[%c38] : memref<98xf32, #tpu.memory_space<smem>>
    %c5_238 = arith.constant 5 : index
    %c0_239 = arith.constant 0 : index
    %294 = vector.load %arg5[%c5_238, %c0_239] : memref<22x16xf32, #tpu.memory_space<vmem>>, vector<16x16xf32>
    %295 = vector.broadcast %293 : f32 to vector<16x16xf32>
    %296 = arith.mulf %294, %295 : vector<16x16xf32>
    %297 = arith.addf %292, %296 : vector<16x16xf32>
    %c45 = arith.constant 45 : index
    %298 = memref.load %arg1[%c45] : memref<98xf32, #tpu.memory_space<smem>>
    %c6_240 = arith.constant 6 : index
    %c0_241 = arith.constant 0 : index
    %299 = vector.load %arg5[%c6_240, %c0_241] : memref<22x16xf32, #tpu.memory_space<vmem>>, vector<16x16xf32>
    %300 = vector.broadcast %298 : f32 to vector<16x16xf32>
    %301 = arith.mulf %299, %300 : vector<16x16xf32>
    %302 = arith.addf %297, %301 : vector<16x16xf32>
    %c0_242 = arith.constant 0 : index
    %c0_243 = arith.constant 0 : index
    %c4_244 = arith.constant 4 : index
    %303 = vector.load %arg4[%c0_242, %c0_243, %c4_244] : memref<2x22x22xf32, #tpu.memory_space<vmem>>, vector<1x22x16xf32>
    %304 = vector.shape_cast %303 : vector<1x22x16xf32> to vector<22x16xf32>
    %c0_245 = arith.constant 0 : index
    %c0_246 = arith.constant 0 : index
    %305 = vector.load %arg5[%c0_245, %c0_246] : memref<22x16xf32, #tpu.memory_space<vmem>>, vector<22x16xf32>
    tpu.vector_store %arg5[%c0_245, %c0_246], %304 {strides = array<i32>} : memref<22x16xf32, #tpu.memory_space<vmem>>, vector<22x16xf32>,
    %c4_247 = arith.constant 4 : index
    %306 = memref.load %arg1[%c4_247] : memref<98xf32, #tpu.memory_space<smem>>
    %c0_248 = arith.constant 0 : index
    %c0_249 = arith.constant 0 : index
    %307 = vector.load %arg5[%c0_248, %c0_249] : memref<22x16xf32, #tpu.memory_space<vmem>>, vector<16x16xf32>
    %308 = vector.broadcast %306 : f32 to vector<16x16xf32>
    %309 = arith.mulf %307, %308 : vector<16x16xf32>
    %310 = arith.addf %302, %309 : vector<16x16xf32>
    %c11_250 = arith.constant 11 : index
    %311 = memref.load %arg1[%c11_250] : memref<98xf32, #tpu.memory_space<smem>>
    %c1_251 = arith.constant 1 : index
    %c0_252 = arith.constant 0 : index
    %312 = vector.load %arg5[%c1_251, %c0_252] : memref<22x16xf32, #tpu.memory_space<vmem>>, vector<16x16xf32>
    %313 = vector.broadcast %311 : f32 to vector<16x16xf32>
    %314 = arith.mulf %312, %313 : vector<16x16xf32>
    %315 = arith.addf %310, %314 : vector<16x16xf32>
    %c18_253 = arith.constant 18 : index
    %316 = memref.load %arg1[%c18_253] : memref<98xf32, #tpu.memory_space<smem>>
    %c2_254 = arith.constant 2 : index
    %c0_255 = arith.constant 0 : index
    %317 = vector.load %arg5[%c2_254, %c0_255] : memref<22x16xf32, #tpu.memory_space<vmem>>, vector<16x16xf32>
    %318 = vector.broadcast %316 : f32 to vector<16x16xf32>
    %319 = arith.mulf %317, %318 : vector<16x16xf32>
    %320 = arith.addf %315, %319 : vector<16x16xf32>
    %c25 = arith.constant 25 : index
    %321 = memref.load %arg1[%c25] : memref<98xf32, #tpu.memory_space<smem>>
    %c3_256 = arith.constant 3 : index
    %c0_257 = arith.constant 0 : index
    %322 = vector.load %arg5[%c3_256, %c0_257] : memref<22x16xf32, #tpu.memory_space<vmem>>, vector<16x16xf32>
    %323 = vector.broadcast %321 : f32 to vector<16x16xf32>
    %324 = arith.mulf %322, %323 : vector<16x16xf32>
    %325 = arith.addf %320, %324 : vector<16x16xf32>
    %c32_258 = arith.constant 32 : index
    %326 = memref.load %arg1[%c32_258] : memref<98xf32, #tpu.memory_space<smem>>
    %c4_259 = arith.constant 4 : index
    %c0_260 = arith.constant 0 : index
    %327 = vector.load %arg5[%c4_259, %c0_260] : memref<22x16xf32, #tpu.memory_space<vmem>>, vector<16x16xf32>
    %328 = vector.broadcast %326 : f32 to vector<16x16xf32>
    %329 = arith.mulf %327, %328 : vector<16x16xf32>
    %330 = arith.addf %325, %329 : vector<16x16xf32>
    %c39 = arith.constant 39 : index
    %331 = memref.load %arg1[%c39] : memref<98xf32, #tpu.memory_space<smem>>
    %c5_261 = arith.constant 5 : index
    %c0_262 = arith.constant 0 : index
    %332 = vector.load %arg5[%c5_261, %c0_262] : memref<22x16xf32, #tpu.memory_space<vmem>>, vector<16x16xf32>
    %333 = vector.broadcast %331 : f32 to vector<16x16xf32>
    %334 = arith.mulf %332, %333 : vector<16x16xf32>
    %335 = arith.addf %330, %334 : vector<16x16xf32>
    %c46 = arith.constant 46 : index
    %336 = memref.load %arg1[%c46] : memref<98xf32, #tpu.memory_space<smem>>
    %c6_263 = arith.constant 6 : index
    %c0_264 = arith.constant 0 : index
    %337 = vector.load %arg5[%c6_263, %c0_264] : memref<22x16xf32, #tpu.memory_space<vmem>>, vector<16x16xf32>
    %338 = vector.broadcast %336 : f32 to vector<16x16xf32>
    %339 = arith.mulf %337, %338 : vector<16x16xf32>
    %340 = arith.addf %335, %339 : vector<16x16xf32>
    %c0_265 = arith.constant 0 : index
    %c0_266 = arith.constant 0 : index
    %c5_267 = arith.constant 5 : index
    %341 = vector.load %arg4[%c0_265, %c0_266, %c5_267] : memref<2x22x22xf32, #tpu.memory_space<vmem>>, vector<1x22x16xf32>
    %342 = vector.shape_cast %341 : vector<1x22x16xf32> to vector<22x16xf32>
    %c0_268 = arith.constant 0 : index
    %c0_269 = arith.constant 0 : index
    %343 = vector.load %arg5[%c0_268, %c0_269] : memref<22x16xf32, #tpu.memory_space<vmem>>, vector<22x16xf32>
    tpu.vector_store %arg5[%c0_268, %c0_269], %342 {strides = array<i32>} : memref<22x16xf32, #tpu.memory_space<vmem>>, vector<22x16xf32>,
    %c5_270 = arith.constant 5 : index
    %344 = memref.load %arg1[%c5_270] : memref<98xf32, #tpu.memory_space<smem>>
    %c0_271 = arith.constant 0 : index
    %c0_272 = arith.constant 0 : index
    %345 = vector.load %arg5[%c0_271, %c0_272] : memref<22x16xf32, #tpu.memory_space<vmem>>, vector<16x16xf32>
    %346 = vector.broadcast %344 : f32 to vector<16x16xf32>
    %347 = arith.mulf %345, %346 : vector<16x16xf32>
    %348 = arith.addf %340, %347 : vector<16x16xf32>
    %c12_273 = arith.constant 12 : index
    %349 = memref.load %arg1[%c12_273] : memref<98xf32, #tpu.memory_space<smem>>
    %c1_274 = arith.constant 1 : index
    %c0_275 = arith.constant 0 : index
    %350 = vector.load %arg5[%c1_274, %c0_275] : memref<22x16xf32, #tpu.memory_space<vmem>>, vector<16x16xf32>
    %351 = vector.broadcast %349 : f32 to vector<16x16xf32>
    %352 = arith.mulf %350, %351 : vector<16x16xf32>
    %353 = arith.addf %348, %352 : vector<16x16xf32>
    %c19_276 = arith.constant 19 : index
    %354 = memref.load %arg1[%c19_276] : memref<98xf32, #tpu.memory_space<smem>>
    %c2_277 = arith.constant 2 : index
    %c0_278 = arith.constant 0 : index
    %355 = vector.load %arg5[%c2_277, %c0_278] : memref<22x16xf32, #tpu.memory_space<vmem>>, vector<16x16xf32>
    %356 = vector.broadcast %354 : f32 to vector<16x16xf32>
    %357 = arith.mulf %355, %356 : vector<16x16xf32>
    %358 = arith.addf %353, %357 : vector<16x16xf32>
    %c26 = arith.constant 26 : index
    %359 = memref.load %arg1[%c26] : memref<98xf32, #tpu.memory_space<smem>>
    %c3_279 = arith.constant 3 : index
    %c0_280 = arith.constant 0 : index
    %360 = vector.load %arg5[%c3_279, %c0_280] : memref<22x16xf32, #tpu.memory_space<vmem>>, vector<16x16xf32>
    %361 = vector.broadcast %359 : f32 to vector<16x16xf32>
    %362 = arith.mulf %360, %361 : vector<16x16xf32>
    %363 = arith.addf %358, %362 : vector<16x16xf32>
    %c33 = arith.constant 33 : index
    %364 = memref.load %arg1[%c33] : memref<98xf32, #tpu.memory_space<smem>>
    %c4_281 = arith.constant 4 : index
    %c0_282 = arith.constant 0 : index
    %365 = vector.load %arg5[%c4_281, %c0_282] : memref<22x16xf32, #tpu.memory_space<vmem>>, vector<16x16xf32>
    %366 = vector.broadcast %364 : f32 to vector<16x16xf32>
    %367 = arith.mulf %365, %366 : vector<16x16xf32>
    %368 = arith.addf %363, %367 : vector<16x16xf32>
    %c40 = arith.constant 40 : index
    %369 = memref.load %arg1[%c40] : memref<98xf32, #tpu.memory_space<smem>>
    %c5_283 = arith.constant 5 : index
    %c0_284 = arith.constant 0 : index
    %370 = vector.load %arg5[%c5_283, %c0_284] : memref<22x16xf32, #tpu.memory_space<vmem>>, vector<16x16xf32>
    %371 = vector.broadcast %369 : f32 to vector<16x16xf32>
    %372 = arith.mulf %370, %371 : vector<16x16xf32>
    %373 = arith.addf %368, %372 : vector<16x16xf32>
    %c47 = arith.constant 47 : index
    %374 = memref.load %arg1[%c47] : memref<98xf32, #tpu.memory_space<smem>>
    %c6_285 = arith.constant 6 : index
    %c0_286 = arith.constant 0 : index
    %375 = vector.load %arg5[%c6_285, %c0_286] : memref<22x16xf32, #tpu.memory_space<vmem>>, vector<16x16xf32>
    %376 = vector.broadcast %374 : f32 to vector<16x16xf32>
    %377 = arith.mulf %375, %376 : vector<16x16xf32>
    %378 = arith.addf %373, %377 : vector<16x16xf32>
    %c0_287 = arith.constant 0 : index
    %c0_288 = arith.constant 0 : index
    %c6_289 = arith.constant 6 : index
    %379 = vector.load %arg4[%c0_287, %c0_288, %c6_289] : memref<2x22x22xf32, #tpu.memory_space<vmem>>, vector<1x22x16xf32>
    %380 = vector.shape_cast %379 : vector<1x22x16xf32> to vector<22x16xf32>
    %c0_290 = arith.constant 0 : index
    %c0_291 = arith.constant 0 : index
    %381 = vector.load %arg5[%c0_290, %c0_291] : memref<22x16xf32, #tpu.memory_space<vmem>>, vector<22x16xf32>
    tpu.vector_store %arg5[%c0_290, %c0_291], %380 {strides = array<i32>} : memref<22x16xf32, #tpu.memory_space<vmem>>, vector<22x16xf32>,
    %c6_292 = arith.constant 6 : index
    %382 = memref.load %arg1[%c6_292] : memref<98xf32, #tpu.memory_space<smem>>
    %c0_293 = arith.constant 0 : index
    %c0_294 = arith.constant 0 : index
    %383 = vector.load %arg5[%c0_293, %c0_294] : memref<22x16xf32, #tpu.memory_space<vmem>>, vector<16x16xf32>
    %384 = vector.broadcast %382 : f32 to vector<16x16xf32>
    %385 = arith.mulf %383, %384 : vector<16x16xf32>
    %386 = arith.addf %378, %385 : vector<16x16xf32>
    %c13_295 = arith.constant 13 : index
    %387 = memref.load %arg1[%c13_295] : memref<98xf32, #tpu.memory_space<smem>>
    %c1_296 = arith.constant 1 : index
    %c0_297 = arith.constant 0 : index
    %388 = vector.load %arg5[%c1_296, %c0_297] : memref<22x16xf32, #tpu.memory_space<vmem>>, vector<16x16xf32>
    %389 = vector.broadcast %387 : f32 to vector<16x16xf32>
    %390 = arith.mulf %388, %389 : vector<16x16xf32>
    %391 = arith.addf %386, %390 : vector<16x16xf32>
    %c20 = arith.constant 20 : index
    %392 = memref.load %arg1[%c20] : memref<98xf32, #tpu.memory_space<smem>>
    %c2_298 = arith.constant 2 : index
    %c0_299 = arith.constant 0 : index
    %393 = vector.load %arg5[%c2_298, %c0_299] : memref<22x16xf32, #tpu.memory_space<vmem>>, vector<16x16xf32>
    %394 = vector.broadcast %392 : f32 to vector<16x16xf32>
    %395 = arith.mulf %393, %394 : vector<16x16xf32>
    %396 = arith.addf %391, %395 : vector<16x16xf32>
    %c27 = arith.constant 27 : index
    %397 = memref.load %arg1[%c27] : memref<98xf32, #tpu.memory_space<smem>>
    %c3_300 = arith.constant 3 : index
    %c0_301 = arith.constant 0 : index
    %398 = vector.load %arg5[%c3_300, %c0_301] : memref<22x16xf32, #tpu.memory_space<vmem>>, vector<16x16xf32>
    %399 = vector.broadcast %397 : f32 to vector<16x16xf32>
    %400 = arith.mulf %398, %399 : vector<16x16xf32>
    %401 = arith.addf %396, %400 : vector<16x16xf32>
    %c34 = arith.constant 34 : index
    %402 = memref.load %arg1[%c34] : memref<98xf32, #tpu.memory_space<smem>>
    %c4_302 = arith.constant 4 : index
    %c0_303 = arith.constant 0 : index
    %403 = vector.load %arg5[%c4_302, %c0_303] : memref<22x16xf32, #tpu.memory_space<vmem>>, vector<16x16xf32>
    %404 = vector.broadcast %402 : f32 to vector<16x16xf32>
    %405 = arith.mulf %403, %404 : vector<16x16xf32>
    %406 = arith.addf %401, %405 : vector<16x16xf32>
    %c41 = arith.constant 41 : index
    %407 = memref.load %arg1[%c41] : memref<98xf32, #tpu.memory_space<smem>>
    %c5_304 = arith.constant 5 : index
    %c0_305 = arith.constant 0 : index
    %408 = vector.load %arg5[%c5_304, %c0_305] : memref<22x16xf32, #tpu.memory_space<vmem>>, vector<16x16xf32>
    %409 = vector.broadcast %407 : f32 to vector<16x16xf32>
    %410 = arith.mulf %408, %409 : vector<16x16xf32>
    %411 = arith.addf %406, %410 : vector<16x16xf32>
    %c48_306 = arith.constant 48 : index
    %412 = memref.load %arg1[%c48_306] : memref<98xf32, #tpu.memory_space<smem>>
    %c6_307 = arith.constant 6 : index
    %c0_308 = arith.constant 0 : index
    %413 = vector.load %arg5[%c6_307, %c0_308] : memref<22x16xf32, #tpu.memory_space<vmem>>, vector<16x16xf32>
    %414 = vector.broadcast %412 : f32 to vector<16x16xf32>
    %415 = arith.mulf %413, %414 : vector<16x16xf32>
    %416 = arith.addf %411, %415 : vector<16x16xf32>
    %c1_309 = arith.constant 1 : index
    %c0_310 = arith.constant 0 : index
    %c0_311 = arith.constant 0 : index
    %417 = vector.load %arg4[%c1_309, %c0_310, %c0_311] : memref<2x22x22xf32, #tpu.memory_space<vmem>>, vector<1x22x16xf32>
    %418 = vector.shape_cast %417 : vector<1x22x16xf32> to vector<22x16xf32>
    %c0_312 = arith.constant 0 : index
    %c0_313 = arith.constant 0 : index
    %419 = vector.load %arg5[%c0_312, %c0_313] : memref<22x16xf32, #tpu.memory_space<vmem>>, vector<22x16xf32>
    tpu.vector_store %arg5[%c0_312, %c0_313], %418 {strides = array<i32>} : memref<22x16xf32, #tpu.memory_space<vmem>>, vector<22x16xf32>,
    %c49 = arith.constant 49 : index
    %420 = memref.load %arg1[%c49] : memref<98xf32, #tpu.memory_space<smem>>
    %c0_314 = arith.constant 0 : index
    %c0_315 = arith.constant 0 : index
    %421 = vector.load %arg5[%c0_314, %c0_315] : memref<22x16xf32, #tpu.memory_space<vmem>>, vector<16x16xf32>
    %422 = vector.broadcast %420 : f32 to vector<16x16xf32>
    %423 = arith.mulf %421, %422 : vector<16x16xf32>
    %424 = arith.addf %416, %423 : vector<16x16xf32>
    %c56 = arith.constant 56 : index
    %425 = memref.load %arg1[%c56] : memref<98xf32, #tpu.memory_space<smem>>
    %c1_316 = arith.constant 1 : index
    %c0_317 = arith.constant 0 : index
    %426 = vector.load %arg5[%c1_316, %c0_317] : memref<22x16xf32, #tpu.memory_space<vmem>>, vector<16x16xf32>
    %427 = vector.broadcast %425 : f32 to vector<16x16xf32>
    %428 = arith.mulf %426, %427 : vector<16x16xf32>
    %429 = arith.addf %424, %428 : vector<16x16xf32>
    %c63 = arith.constant 63 : index
    %430 = memref.load %arg1[%c63] : memref<98xf32, #tpu.memory_space<smem>>
    %c2_318 = arith.constant 2 : index
    %c0_319 = arith.constant 0 : index
    %431 = vector.load %arg5[%c2_318, %c0_319] : memref<22x16xf32, #tpu.memory_space<vmem>>, vector<16x16xf32>
    %432 = vector.broadcast %430 : f32 to vector<16x16xf32>
    %433 = arith.mulf %431, %432 : vector<16x16xf32>
    %434 = arith.addf %429, %433 : vector<16x16xf32>
    %c70 = arith.constant 70 : index
    %435 = memref.load %arg1[%c70] : memref<98xf32, #tpu.memory_space<smem>>
    %c3_320 = arith.constant 3 : index
    %c0_321 = arith.constant 0 : index
    %436 = vector.load %arg5[%c3_320, %c0_321] : memref<22x16xf32, #tpu.memory_space<vmem>>, vector<16x16xf32>
    %437 = vector.broadcast %435 : f32 to vector<16x16xf32>
    %438 = arith.mulf %436, %437 : vector<16x16xf32>
    %439 = arith.addf %434, %438 : vector<16x16xf32>
    %c77 = arith.constant 77 : index
    %440 = memref.load %arg1[%c77] : memref<98xf32, #tpu.memory_space<smem>>
    %c4_322 = arith.constant 4 : index
    %c0_323 = arith.constant 0 : index
    %441 = vector.load %arg5[%c4_322, %c0_323] : memref<22x16xf32, #tpu.memory_space<vmem>>, vector<16x16xf32>
    %442 = vector.broadcast %440 : f32 to vector<16x16xf32>
    %443 = arith.mulf %441, %442 : vector<16x16xf32>
    %444 = arith.addf %439, %443 : vector<16x16xf32>
    %c84 = arith.constant 84 : index
    %445 = memref.load %arg1[%c84] : memref<98xf32, #tpu.memory_space<smem>>
    %c5_324 = arith.constant 5 : index
    %c0_325 = arith.constant 0 : index
    %446 = vector.load %arg5[%c5_324, %c0_325] : memref<22x16xf32, #tpu.memory_space<vmem>>, vector<16x16xf32>
    %447 = vector.broadcast %445 : f32 to vector<16x16xf32>
    %448 = arith.mulf %446, %447 : vector<16x16xf32>
    %449 = arith.addf %444, %448 : vector<16x16xf32>
    %c91 = arith.constant 91 : index
    %450 = memref.load %arg1[%c91] : memref<98xf32, #tpu.memory_space<smem>>
    %c6_326 = arith.constant 6 : index
    %c0_327 = arith.constant 0 : index
    %451 = vector.load %arg5[%c6_326, %c0_327] : memref<22x16xf32, #tpu.memory_space<vmem>>, vector<16x16xf32>
    %452 = vector.broadcast %450 : f32 to vector<16x16xf32>
    %453 = arith.mulf %451, %452 : vector<16x16xf32>
    %454 = arith.addf %449, %453 : vector<16x16xf32>
    %c1_328 = arith.constant 1 : index
    %c0_329 = arith.constant 0 : index
    %c1_330 = arith.constant 1 : index
    %455 = vector.load %arg4[%c1_328, %c0_329, %c1_330] : memref<2x22x22xf32, #tpu.memory_space<vmem>>, vector<1x22x16xf32>
    %456 = vector.shape_cast %455 : vector<1x22x16xf32> to vector<22x16xf32>
    %c0_331 = arith.constant 0 : index
    %c0_332 = arith.constant 0 : index
    %457 = vector.load %arg5[%c0_331, %c0_332] : memref<22x16xf32, #tpu.memory_space<vmem>>, vector<22x16xf32>
    tpu.vector_store %arg5[%c0_331, %c0_332], %456 {strides = array<i32>} : memref<22x16xf32, #tpu.memory_space<vmem>>, vector<22x16xf32>,
    %c50 = arith.constant 50 : index
    %458 = memref.load %arg1[%c50] : memref<98xf32, #tpu.memory_space<smem>>
    %c0_333 = arith.constant 0 : index
    %c0_334 = arith.constant 0 : index
    %459 = vector.load %arg5[%c0_333, %c0_334] : memref<22x16xf32, #tpu.memory_space<vmem>>, vector<16x16xf32>
    %460 = vector.broadcast %458 : f32 to vector<16x16xf32>
    %461 = arith.mulf %459, %460 : vector<16x16xf32>
    %462 = arith.addf %454, %461 : vector<16x16xf32>
    %c57 = arith.constant 57 : index
    %463 = memref.load %arg1[%c57] : memref<98xf32, #tpu.memory_space<smem>>
    %c1_335 = arith.constant 1 : index
    %c0_336 = arith.constant 0 : index
    %464 = vector.load %arg5[%c1_335, %c0_336] : memref<22x16xf32, #tpu.memory_space<vmem>>, vector<16x16xf32>
    %465 = vector.broadcast %463 : f32 to vector<16x16xf32>
    %466 = arith.mulf %464, %465 : vector<16x16xf32>
    %467 = arith.addf %462, %466 : vector<16x16xf32>
    %c64_337 = arith.constant 64 : index
    %468 = memref.load %arg1[%c64_337] : memref<98xf32, #tpu.memory_space<smem>>
    %c2_338 = arith.constant 2 : index
    %c0_339 = arith.constant 0 : index
    %469 = vector.load %arg5[%c2_338, %c0_339] : memref<22x16xf32, #tpu.memory_space<vmem>>, vector<16x16xf32>
    %470 = vector.broadcast %468 : f32 to vector<16x16xf32>
    %471 = arith.mulf %469, %470 : vector<16x16xf32>
    %472 = arith.addf %467, %471 : vector<16x16xf32>
    %c71 = arith.constant 71 : index
    %473 = memref.load %arg1[%c71] : memref<98xf32, #tpu.memory_space<smem>>
    %c3_340 = arith.constant 3 : index
    %c0_341 = arith.constant 0 : index
    %474 = vector.load %arg5[%c3_340, %c0_341] : memref<22x16xf32, #tpu.memory_space<vmem>>, vector<16x16xf32>
    %475 = vector.broadcast %473 : f32 to vector<16x16xf32>
    %476 = arith.mulf %474, %475 : vector<16x16xf32>
    %477 = arith.addf %472, %476 : vector<16x16xf32>
    %c78 = arith.constant 78 : index
    %478 = memref.load %arg1[%c78] : memref<98xf32, #tpu.memory_space<smem>>
    %c4_342 = arith.constant 4 : index
    %c0_343 = arith.constant 0 : index
    %479 = vector.load %arg5[%c4_342, %c0_343] : memref<22x16xf32, #tpu.memory_space<vmem>>, vector<16x16xf32>
    %480 = vector.broadcast %478 : f32 to vector<16x16xf32>
    %481 = arith.mulf %479, %480 : vector<16x16xf32>
    %482 = arith.addf %477, %481 : vector<16x16xf32>
    %c85 = arith.constant 85 : index
    %483 = memref.load %arg1[%c85] : memref<98xf32, #tpu.memory_space<smem>>
    %c5_344 = arith.constant 5 : index
    %c0_345 = arith.constant 0 : index
    %484 = vector.load %arg5[%c5_344, %c0_345] : memref<22x16xf32, #tpu.memory_space<vmem>>, vector<16x16xf32>
    %485 = vector.broadcast %483 : f32 to vector<16x16xf32>
    %486 = arith.mulf %484, %485 : vector<16x16xf32>
    %487 = arith.addf %482, %486 : vector<16x16xf32>
    %c92 = arith.constant 92 : index
    %488 = memref.load %arg1[%c92] : memref<98xf32, #tpu.memory_space<smem>>
    %c6_346 = arith.constant 6 : index
    %c0_347 = arith.constant 0 : index
    %489 = vector.load %arg5[%c6_346, %c0_347] : memref<22x16xf32, #tpu.memory_space<vmem>>, vector<16x16xf32>
    %490 = vector.broadcast %488 : f32 to vector<16x16xf32>
    %491 = arith.mulf %489, %490 : vector<16x16xf32>
    %492 = arith.addf %487, %491 : vector<16x16xf32>
    %c1_348 = arith.constant 1 : index
    %c0_349 = arith.constant 0 : index
    %c2_350 = arith.constant 2 : index
    %493 = vector.load %arg4[%c1_348, %c0_349, %c2_350] : memref<2x22x22xf32, #tpu.memory_space<vmem>>, vector<1x22x16xf32>
    %494 = vector.shape_cast %493 : vector<1x22x16xf32> to vector<22x16xf32>
    %c0_351 = arith.constant 0 : index
    %c0_352 = arith.constant 0 : index
    %495 = vector.load %arg5[%c0_351, %c0_352] : memref<22x16xf32, #tpu.memory_space<vmem>>, vector<22x16xf32>
    tpu.vector_store %arg5[%c0_351, %c0_352], %494 {strides = array<i32>} : memref<22x16xf32, #tpu.memory_space<vmem>>, vector<22x16xf32>,
    %c51 = arith.constant 51 : index
    %496 = memref.load %arg1[%c51] : memref<98xf32, #tpu.memory_space<smem>>
    %c0_353 = arith.constant 0 : index
    %c0_354 = arith.constant 0 : index
    %497 = vector.load %arg5[%c0_353, %c0_354] : memref<22x16xf32, #tpu.memory_space<vmem>>, vector<16x16xf32>
    %498 = vector.broadcast %496 : f32 to vector<16x16xf32>
    %499 = arith.mulf %497, %498 : vector<16x16xf32>
    %500 = arith.addf %492, %499 : vector<16x16xf32>
    %c58 = arith.constant 58 : index
    %501 = memref.load %arg1[%c58] : memref<98xf32, #tpu.memory_space<smem>>
    %c1_355 = arith.constant 1 : index
    %c0_356 = arith.constant 0 : index
    %502 = vector.load %arg5[%c1_355, %c0_356] : memref<22x16xf32, #tpu.memory_space<vmem>>, vector<16x16xf32>
    %503 = vector.broadcast %501 : f32 to vector<16x16xf32>
    %504 = arith.mulf %502, %503 : vector<16x16xf32>
    %505 = arith.addf %500, %504 : vector<16x16xf32>
    %c65 = arith.constant 65 : index
    %506 = memref.load %arg1[%c65] : memref<98xf32, #tpu.memory_space<smem>>
    %c2_357 = arith.constant 2 : index
    %c0_358 = arith.constant 0 : index
    %507 = vector.load %arg5[%c2_357, %c0_358] : memref<22x16xf32, #tpu.memory_space<vmem>>, vector<16x16xf32>
    %508 = vector.broadcast %506 : f32 to vector<16x16xf32>
    %509 = arith.mulf %507, %508 : vector<16x16xf32>
    %510 = arith.addf %505, %509 : vector<16x16xf32>
    %c72 = arith.constant 72 : index
    %511 = memref.load %arg1[%c72] : memref<98xf32, #tpu.memory_space<smem>>
    %c3_359 = arith.constant 3 : index
    %c0_360 = arith.constant 0 : index
    %512 = vector.load %arg5[%c3_359, %c0_360] : memref<22x16xf32, #tpu.memory_space<vmem>>, vector<16x16xf32>
    %513 = vector.broadcast %511 : f32 to vector<16x16xf32>
    %514 = arith.mulf %512, %513 : vector<16x16xf32>
    %515 = arith.addf %510, %514 : vector<16x16xf32>
    %c79 = arith.constant 79 : index
    %516 = memref.load %arg1[%c79] : memref<98xf32, #tpu.memory_space<smem>>
    %c4_361 = arith.constant 4 : index
    %c0_362 = arith.constant 0 : index
    %517 = vector.load %arg5[%c4_361, %c0_362] : memref<22x16xf32, #tpu.memory_space<vmem>>, vector<16x16xf32>
    %518 = vector.broadcast %516 : f32 to vector<16x16xf32>
    %519 = arith.mulf %517, %518 : vector<16x16xf32>
    %520 = arith.addf %515, %519 : vector<16x16xf32>
    %c86 = arith.constant 86 : index
    %521 = memref.load %arg1[%c86] : memref<98xf32, #tpu.memory_space<smem>>
    %c5_363 = arith.constant 5 : index
    %c0_364 = arith.constant 0 : index
    %522 = vector.load %arg5[%c5_363, %c0_364] : memref<22x16xf32, #tpu.memory_space<vmem>>, vector<16x16xf32>
    %523 = vector.broadcast %521 : f32 to vector<16x16xf32>
    %524 = arith.mulf %522, %523 : vector<16x16xf32>
    %525 = arith.addf %520, %524 : vector<16x16xf32>
    %c93 = arith.constant 93 : index
    %526 = memref.load %arg1[%c93] : memref<98xf32, #tpu.memory_space<smem>>
    %c6_365 = arith.constant 6 : index
    %c0_366 = arith.constant 0 : index
    %527 = vector.load %arg5[%c6_365, %c0_366] : memref<22x16xf32, #tpu.memory_space<vmem>>, vector<16x16xf32>
    %528 = vector.broadcast %526 : f32 to vector<16x16xf32>
    %529 = arith.mulf %527, %528 : vector<16x16xf32>
    %530 = arith.addf %525, %529 : vector<16x16xf32>
    %c1_367 = arith.constant 1 : index
    %c0_368 = arith.constant 0 : index
    %c3_369 = arith.constant 3 : index
    %531 = vector.load %arg4[%c1_367, %c0_368, %c3_369] : memref<2x22x22xf32, #tpu.memory_space<vmem>>, vector<1x22x16xf32>
    %532 = vector.shape_cast %531 : vector<1x22x16xf32> to vector<22x16xf32>
    %c0_370 = arith.constant 0 : index
    %c0_371 = arith.constant 0 : index
    %533 = vector.load %arg5[%c0_370, %c0_371] : memref<22x16xf32, #tpu.memory_space<vmem>>, vector<22x16xf32>
    tpu.vector_store %arg5[%c0_370, %c0_371], %532 {strides = array<i32>} : memref<22x16xf32, #tpu.memory_space<vmem>>, vector<22x16xf32>,
    %c52 = arith.constant 52 : index
    %534 = memref.load %arg1[%c52] : memref<98xf32, #tpu.memory_space<smem>>
    %c0_372 = arith.constant 0 : index
    %c0_373 = arith.constant 0 : index
    %535 = vector.load %arg5[%c0_372, %c0_373] : memref<22x16xf32, #tpu.memory_space<vmem>>, vector<16x16xf32>
    %536 = vector.broadcast %534 : f32 to vector<16x16xf32>
    %537 = arith.mulf %535, %536 : vector<16x16xf32>
    %538 = arith.addf %530, %537 : vector<16x16xf32>
    %c59 = arith.constant 59 : index
    %539 = memref.load %arg1[%c59] : memref<98xf32, #tpu.memory_space<smem>>
    %c1_374 = arith.constant 1 : index
    %c0_375 = arith.constant 0 : index
    %540 = vector.load %arg5[%c1_374, %c0_375] : memref<22x16xf32, #tpu.memory_space<vmem>>, vector<16x16xf32>
    %541 = vector.broadcast %539 : f32 to vector<16x16xf32>
    %542 = arith.mulf %540, %541 : vector<16x16xf32>
    %543 = arith.addf %538, %542 : vector<16x16xf32>
    %c66 = arith.constant 66 : index
    %544 = memref.load %arg1[%c66] : memref<98xf32, #tpu.memory_space<smem>>
    %c2_376 = arith.constant 2 : index
    %c0_377 = arith.constant 0 : index
    %545 = vector.load %arg5[%c2_376, %c0_377] : memref<22x16xf32, #tpu.memory_space<vmem>>, vector<16x16xf32>
    %546 = vector.broadcast %544 : f32 to vector<16x16xf32>
    %547 = arith.mulf %545, %546 : vector<16x16xf32>
    %548 = arith.addf %543, %547 : vector<16x16xf32>
    %c73 = arith.constant 73 : index
    %549 = memref.load %arg1[%c73] : memref<98xf32, #tpu.memory_space<smem>>
    %c3_378 = arith.constant 3 : index
    %c0_379 = arith.constant 0 : index
    %550 = vector.load %arg5[%c3_378, %c0_379] : memref<22x16xf32, #tpu.memory_space<vmem>>, vector<16x16xf32>
    %551 = vector.broadcast %549 : f32 to vector<16x16xf32>
    %552 = arith.mulf %550, %551 : vector<16x16xf32>
    %553 = arith.addf %548, %552 : vector<16x16xf32>
    %c80_380 = arith.constant 80 : index
    %554 = memref.load %arg1[%c80_380] : memref<98xf32, #tpu.memory_space<smem>>
    %c4_381 = arith.constant 4 : index
    %c0_382 = arith.constant 0 : index
    %555 = vector.load %arg5[%c4_381, %c0_382] : memref<22x16xf32, #tpu.memory_space<vmem>>, vector<16x16xf32>
    %556 = vector.broadcast %554 : f32 to vector<16x16xf32>
    %557 = arith.mulf %555, %556 : vector<16x16xf32>
    %558 = arith.addf %553, %557 : vector<16x16xf32>
    %c87 = arith.constant 87 : index
    %559 = memref.load %arg1[%c87] : memref<98xf32, #tpu.memory_space<smem>>
    %c5_383 = arith.constant 5 : index
    %c0_384 = arith.constant 0 : index
    %560 = vector.load %arg5[%c5_383, %c0_384] : memref<22x16xf32, #tpu.memory_space<vmem>>, vector<16x16xf32>
    %561 = vector.broadcast %559 : f32 to vector<16x16xf32>
    %562 = arith.mulf %560, %561 : vector<16x16xf32>
    %563 = arith.addf %558, %562 : vector<16x16xf32>
    %c94 = arith.constant 94 : index
    %564 = memref.load %arg1[%c94] : memref<98xf32, #tpu.memory_space<smem>>
    %c6_385 = arith.constant 6 : index
    %c0_386 = arith.constant 0 : index
    %565 = vector.load %arg5[%c6_385, %c0_386] : memref<22x16xf32, #tpu.memory_space<vmem>>, vector<16x16xf32>
    %566 = vector.broadcast %564 : f32 to vector<16x16xf32>
    %567 = arith.mulf %565, %566 : vector<16x16xf32>
    %568 = arith.addf %563, %567 : vector<16x16xf32>
    %c1_387 = arith.constant 1 : index
    %c0_388 = arith.constant 0 : index
    %c4_389 = arith.constant 4 : index
    %569 = vector.load %arg4[%c1_387, %c0_388, %c4_389] : memref<2x22x22xf32, #tpu.memory_space<vmem>>, vector<1x22x16xf32>
    %570 = vector.shape_cast %569 : vector<1x22x16xf32> to vector<22x16xf32>
    %c0_390 = arith.constant 0 : index
    %c0_391 = arith.constant 0 : index
    %571 = vector.load %arg5[%c0_390, %c0_391] : memref<22x16xf32, #tpu.memory_space<vmem>>, vector<22x16xf32>
    tpu.vector_store %arg5[%c0_390, %c0_391], %570 {strides = array<i32>} : memref<22x16xf32, #tpu.memory_space<vmem>>, vector<22x16xf32>,
    %c53 = arith.constant 53 : index
    %572 = memref.load %arg1[%c53] : memref<98xf32, #tpu.memory_space<smem>>
    %c0_392 = arith.constant 0 : index
    %c0_393 = arith.constant 0 : index
    %573 = vector.load %arg5[%c0_392, %c0_393] : memref<22x16xf32, #tpu.memory_space<vmem>>, vector<16x16xf32>
    %574 = vector.broadcast %572 : f32 to vector<16x16xf32>
    %575 = arith.mulf %573, %574 : vector<16x16xf32>
    %576 = arith.addf %568, %575 : vector<16x16xf32>
    %c60 = arith.constant 60 : index
    %577 = memref.load %arg1[%c60] : memref<98xf32, #tpu.memory_space<smem>>
    %c1_394 = arith.constant 1 : index
    %c0_395 = arith.constant 0 : index
    %578 = vector.load %arg5[%c1_394, %c0_395] : memref<22x16xf32, #tpu.memory_space<vmem>>, vector<16x16xf32>
    %579 = vector.broadcast %577 : f32 to vector<16x16xf32>
    %580 = arith.mulf %578, %579 : vector<16x16xf32>
    %581 = arith.addf %576, %580 : vector<16x16xf32>
    %c67 = arith.constant 67 : index
    %582 = memref.load %arg1[%c67] : memref<98xf32, #tpu.memory_space<smem>>
    %c2_396 = arith.constant 2 : index
    %c0_397 = arith.constant 0 : index
    %583 = vector.load %arg5[%c2_396, %c0_397] : memref<22x16xf32, #tpu.memory_space<vmem>>, vector<16x16xf32>
    %584 = vector.broadcast %582 : f32 to vector<16x16xf32>
    %585 = arith.mulf %583, %584 : vector<16x16xf32>
    %586 = arith.addf %581, %585 : vector<16x16xf32>
    %c74 = arith.constant 74 : index
    %587 = memref.load %arg1[%c74] : memref<98xf32, #tpu.memory_space<smem>>
    %c3_398 = arith.constant 3 : index
    %c0_399 = arith.constant 0 : index
    %588 = vector.load %arg5[%c3_398, %c0_399] : memref<22x16xf32, #tpu.memory_space<vmem>>, vector<16x16xf32>
    %589 = vector.broadcast %587 : f32 to vector<16x16xf32>
    %590 = arith.mulf %588, %589 : vector<16x16xf32>
    %591 = arith.addf %586, %590 : vector<16x16xf32>
    %c81 = arith.constant 81 : index
    %592 = memref.load %arg1[%c81] : memref<98xf32, #tpu.memory_space<smem>>
    %c4_400 = arith.constant 4 : index
    %c0_401 = arith.constant 0 : index
    %593 = vector.load %arg5[%c4_400, %c0_401] : memref<22x16xf32, #tpu.memory_space<vmem>>, vector<16x16xf32>
    %594 = vector.broadcast %592 : f32 to vector<16x16xf32>
    %595 = arith.mulf %593, %594 : vector<16x16xf32>
    %596 = arith.addf %591, %595 : vector<16x16xf32>
    %c88 = arith.constant 88 : index
    %597 = memref.load %arg1[%c88] : memref<98xf32, #tpu.memory_space<smem>>
    %c5_402 = arith.constant 5 : index
    %c0_403 = arith.constant 0 : index
    %598 = vector.load %arg5[%c5_402, %c0_403] : memref<22x16xf32, #tpu.memory_space<vmem>>, vector<16x16xf32>
    %599 = vector.broadcast %597 : f32 to vector<16x16xf32>
    %600 = arith.mulf %598, %599 : vector<16x16xf32>
    %601 = arith.addf %596, %600 : vector<16x16xf32>
    %c95 = arith.constant 95 : index
    %602 = memref.load %arg1[%c95] : memref<98xf32, #tpu.memory_space<smem>>
    %c6_404 = arith.constant 6 : index
    %c0_405 = arith.constant 0 : index
    %603 = vector.load %arg5[%c6_404, %c0_405] : memref<22x16xf32, #tpu.memory_space<vmem>>, vector<16x16xf32>
    %604 = vector.broadcast %602 : f32 to vector<16x16xf32>
    %605 = arith.mulf %603, %604 : vector<16x16xf32>
    %606 = arith.addf %601, %605 : vector<16x16xf32>
    %c1_406 = arith.constant 1 : index
    %c0_407 = arith.constant 0 : index
    %c5_408 = arith.constant 5 : index
    %607 = vector.load %arg4[%c1_406, %c0_407, %c5_408] : memref<2x22x22xf32, #tpu.memory_space<vmem>>, vector<1x22x16xf32>
    %608 = vector.shape_cast %607 : vector<1x22x16xf32> to vector<22x16xf32>
    %c0_409 = arith.constant 0 : index
    %c0_410 = arith.constant 0 : index
    %609 = vector.load %arg5[%c0_409, %c0_410] : memref<22x16xf32, #tpu.memory_space<vmem>>, vector<22x16xf32>
    tpu.vector_store %arg5[%c0_409, %c0_410], %608 {strides = array<i32>} : memref<22x16xf32, #tpu.memory_space<vmem>>, vector<22x16xf32>,
    %c54 = arith.constant 54 : index
    %610 = memref.load %arg1[%c54] : memref<98xf32, #tpu.memory_space<smem>>
    %c0_411 = arith.constant 0 : index
    %c0_412 = arith.constant 0 : index
    %611 = vector.load %arg5[%c0_411, %c0_412] : memref<22x16xf32, #tpu.memory_space<vmem>>, vector<16x16xf32>
    %612 = vector.broadcast %610 : f32 to vector<16x16xf32>
    %613 = arith.mulf %611, %612 : vector<16x16xf32>
    %614 = arith.addf %606, %613 : vector<16x16xf32>
    %c61 = arith.constant 61 : index
    %615 = memref.load %arg1[%c61] : memref<98xf32, #tpu.memory_space<smem>>
    %c1_413 = arith.constant 1 : index
    %c0_414 = arith.constant 0 : index
    %616 = vector.load %arg5[%c1_413, %c0_414] : memref<22x16xf32, #tpu.memory_space<vmem>>, vector<16x16xf32>
    %617 = vector.broadcast %615 : f32 to vector<16x16xf32>
    %618 = arith.mulf %616, %617 : vector<16x16xf32>
    %619 = arith.addf %614, %618 : vector<16x16xf32>
    %c68 = arith.constant 68 : index
    %620 = memref.load %arg1[%c68] : memref<98xf32, #tpu.memory_space<smem>>
    %c2_415 = arith.constant 2 : index
    %c0_416 = arith.constant 0 : index
    %621 = vector.load %arg5[%c2_415, %c0_416] : memref<22x16xf32, #tpu.memory_space<vmem>>, vector<16x16xf32>
    %622 = vector.broadcast %620 : f32 to vector<16x16xf32>
    %623 = arith.mulf %621, %622 : vector<16x16xf32>
    %624 = arith.addf %619, %623 : vector<16x16xf32>
    %c75 = arith.constant 75 : index
    %625 = memref.load %arg1[%c75] : memref<98xf32, #tpu.memory_space<smem>>
    %c3_417 = arith.constant 3 : index
    %c0_418 = arith.constant 0 : index
    %626 = vector.load %arg5[%c3_417, %c0_418] : memref<22x16xf32, #tpu.memory_space<vmem>>, vector<16x16xf32>
    %627 = vector.broadcast %625 : f32 to vector<16x16xf32>
    %628 = arith.mulf %626, %627 : vector<16x16xf32>
    %629 = arith.addf %624, %628 : vector<16x16xf32>
    %c82 = arith.constant 82 : index
    %630 = memref.load %arg1[%c82] : memref<98xf32, #tpu.memory_space<smem>>
    %c4_419 = arith.constant 4 : index
    %c0_420 = arith.constant 0 : index
    %631 = vector.load %arg5[%c4_419, %c0_420] : memref<22x16xf32, #tpu.memory_space<vmem>>, vector<16x16xf32>
    %632 = vector.broadcast %630 : f32 to vector<16x16xf32>
    %633 = arith.mulf %631, %632 : vector<16x16xf32>
    %634 = arith.addf %629, %633 : vector<16x16xf32>
    %c89 = arith.constant 89 : index
    %635 = memref.load %arg1[%c89] : memref<98xf32, #tpu.memory_space<smem>>
    %c5_421 = arith.constant 5 : index
    %c0_422 = arith.constant 0 : index
    %636 = vector.load %arg5[%c5_421, %c0_422] : memref<22x16xf32, #tpu.memory_space<vmem>>, vector<16x16xf32>
    %637 = vector.broadcast %635 : f32 to vector<16x16xf32>
    %638 = arith.mulf %636, %637 : vector<16x16xf32>
    %639 = arith.addf %634, %638 : vector<16x16xf32>
    %c96_423 = arith.constant 96 : index
    %640 = memref.load %arg1[%c96_423] : memref<98xf32, #tpu.memory_space<smem>>
    %c6_424 = arith.constant 6 : index
    %c0_425 = arith.constant 0 : index
    %641 = vector.load %arg5[%c6_424, %c0_425] : memref<22x16xf32, #tpu.memory_space<vmem>>, vector<16x16xf32>
    %642 = vector.broadcast %640 : f32 to vector<16x16xf32>
    %643 = arith.mulf %641, %642 : vector<16x16xf32>
    %644 = arith.addf %639, %643 : vector<16x16xf32>
    %c1_426 = arith.constant 1 : index
    %c0_427 = arith.constant 0 : index
    %c6_428 = arith.constant 6 : index
    %645 = vector.load %arg4[%c1_426, %c0_427, %c6_428] : memref<2x22x22xf32, #tpu.memory_space<vmem>>, vector<1x22x16xf32>
    %646 = vector.shape_cast %645 : vector<1x22x16xf32> to vector<22x16xf32>
    %c0_429 = arith.constant 0 : index
    %c0_430 = arith.constant 0 : index
    %647 = vector.load %arg5[%c0_429, %c0_430] : memref<22x16xf32, #tpu.memory_space<vmem>>, vector<22x16xf32>
    tpu.vector_store %arg5[%c0_429, %c0_430], %646 {strides = array<i32>} : memref<22x16xf32, #tpu.memory_space<vmem>>, vector<22x16xf32>,
    %c55 = arith.constant 55 : index
    %648 = memref.load %arg1[%c55] : memref<98xf32, #tpu.memory_space<smem>>
    %c0_431 = arith.constant 0 : index
    %c0_432 = arith.constant 0 : index
    %649 = vector.load %arg5[%c0_431, %c0_432] : memref<22x16xf32, #tpu.memory_space<vmem>>, vector<16x16xf32>
    %650 = vector.broadcast %648 : f32 to vector<16x16xf32>
    %651 = arith.mulf %649, %650 : vector<16x16xf32>
    %652 = arith.addf %644, %651 : vector<16x16xf32>
    %c62 = arith.constant 62 : index
    %653 = memref.load %arg1[%c62] : memref<98xf32, #tpu.memory_space<smem>>
    %c1_433 = arith.constant 1 : index
    %c0_434 = arith.constant 0 : index
    %654 = vector.load %arg5[%c1_433, %c0_434] : memref<22x16xf32, #tpu.memory_space<vmem>>, vector<16x16xf32>
    %655 = vector.broadcast %653 : f32 to vector<16x16xf32>
    %656 = arith.mulf %654, %655 : vector<16x16xf32>
    %657 = arith.addf %652, %656 : vector<16x16xf32>
    %c69 = arith.constant 69 : index
    %658 = memref.load %arg1[%c69] : memref<98xf32, #tpu.memory_space<smem>>
    %c2_435 = arith.constant 2 : index
    %c0_436 = arith.constant 0 : index
    %659 = vector.load %arg5[%c2_435, %c0_436] : memref<22x16xf32, #tpu.memory_space<vmem>>, vector<16x16xf32>
    %660 = vector.broadcast %658 : f32 to vector<16x16xf32>
    %661 = arith.mulf %659, %660 : vector<16x16xf32>
    %662 = arith.addf %657, %661 : vector<16x16xf32>
    %c76 = arith.constant 76 : index
    %663 = memref.load %arg1[%c76] : memref<98xf32, #tpu.memory_space<smem>>
    %c3_437 = arith.constant 3 : index
    %c0_438 = arith.constant 0 : index
    %664 = vector.load %arg5[%c3_437, %c0_438] : memref<22x16xf32, #tpu.memory_space<vmem>>, vector<16x16xf32>
    %665 = vector.broadcast %663 : f32 to vector<16x16xf32>
    %666 = arith.mulf %664, %665 : vector<16x16xf32>
    %667 = arith.addf %662, %666 : vector<16x16xf32>
    %c83 = arith.constant 83 : index
    %668 = memref.load %arg1[%c83] : memref<98xf32, #tpu.memory_space<smem>>
    %c4_439 = arith.constant 4 : index
    %c0_440 = arith.constant 0 : index
    %669 = vector.load %arg5[%c4_439, %c0_440] : memref<22x16xf32, #tpu.memory_space<vmem>>, vector<16x16xf32>
    %670 = vector.broadcast %668 : f32 to vector<16x16xf32>
    %671 = arith.mulf %669, %670 : vector<16x16xf32>
    %672 = arith.addf %667, %671 : vector<16x16xf32>
    %c90 = arith.constant 90 : index
    %673 = memref.load %arg1[%c90] : memref<98xf32, #tpu.memory_space<smem>>
    %c5_441 = arith.constant 5 : index
    %c0_442 = arith.constant 0 : index
    %674 = vector.load %arg5[%c5_441, %c0_442] : memref<22x16xf32, #tpu.memory_space<vmem>>, vector<16x16xf32>
    %675 = vector.broadcast %673 : f32 to vector<16x16xf32>
    %676 = arith.mulf %674, %675 : vector<16x16xf32>
    %677 = arith.addf %672, %676 : vector<16x16xf32>
    %c97 = arith.constant 97 : index
    %678 = memref.load %arg1[%c97] : memref<98xf32, #tpu.memory_space<smem>>
    %c6_443 = arith.constant 6 : index
    %c0_444 = arith.constant 0 : index
    %679 = vector.load %arg5[%c6_443, %c0_444] : memref<22x16xf32, #tpu.memory_space<vmem>>, vector<16x16xf32>
    %680 = vector.broadcast %678 : f32 to vector<16x16xf32>
    %681 = arith.mulf %679, %680 : vector<16x16xf32>
    %682 = arith.addf %677, %681 : vector<16x16xf32>
    %683 = arith.negf %682 : vector<16x16xf32>
    %684 = math.exp %683 : vector<16x16xf32>
    %cst_445 = arith.constant 1.000000e+00 : f32
    %685 = vector.broadcast %cst_445 : f32 to vector<16x16xf32>
    %686 = arith.addf %685, %684 : vector<16x16xf32>
    %687 = arith.divf %685, %686 : vector<16x16xf32>
    %c0_446 = arith.constant 0 : index
    %c0_447 = arith.constant 0 : index
    %688 = vector.load %arg5[%c0_446, %c0_447] : memref<22x16xf32, #tpu.memory_space<vmem>>, vector<16x16xf32>
    tpu.vector_store %arg5[%c0_446, %c0_447], %687 {strides = array<i32>} : memref<22x16xf32, #tpu.memory_space<vmem>>, vector<16x16xf32>,
    %c0_448 = arith.constant 0 : index
    %c0_449 = arith.constant 0 : index
    %689 = vector.load %arg5[%c0_448, %c0_449] : memref<22x16xf32, #tpu.memory_space<vmem>>, vector<1x16xf32>
    %c0_450 = arith.constant 0 : index
    %c0_451 = arith.constant 0 : index
    %690 = vector.load %arg6[%c0_450, %c0_451] : memref<1x256xf32, #tpu.memory_space<vmem>>, vector<1x16xf32>
    tpu.vector_store %arg6[%c0_450, %c0_451], %689 {strides = array<i32>} : memref<1x256xf32, #tpu.memory_space<vmem>>, vector<1x16xf32>,
    %c1_452 = arith.constant 1 : index
    %c0_453 = arith.constant 0 : index
    %691 = vector.load %arg5[%c1_452, %c0_453] : memref<22x16xf32, #tpu.memory_space<vmem>>, vector<1x16xf32>
    %c0_454 = arith.constant 0 : index
    %c16_455 = arith.constant 16 : index
    %692 = vector.load %arg6[%c0_454, %c16_455] : memref<1x256xf32, #tpu.memory_space<vmem>>, vector<1x16xf32>
    tpu.vector_store %arg6[%c0_454, %c16_455], %691 {strides = array<i32>} : memref<1x256xf32, #tpu.memory_space<vmem>>, vector<1x16xf32>,
    %c2_456 = arith.constant 2 : index
    %c0_457 = arith.constant 0 : index
    %693 = vector.load %arg5[%c2_456, %c0_457] : memref<22x16xf32, #tpu.memory_space<vmem>>, vector<1x16xf32>
    %c0_458 = arith.constant 0 : index
    %c32_459 = arith.constant 32 : index
    %694 = vector.load %arg6[%c0_458, %c32_459] : memref<1x256xf32, #tpu.memory_space<vmem>>, vector<1x16xf32>
    tpu.vector_store %arg6[%c0_458, %c32_459], %693 {strides = array<i32>} : memref<1x256xf32, #tpu.memory_space<vmem>>, vector<1x16xf32>,
    %c3_460 = arith.constant 3 : index
    %c0_461 = arith.constant 0 : index
    %695 = vector.load %arg5[%c3_460, %c0_461] : memref<22x16xf32, #tpu.memory_space<vmem>>, vector<1x16xf32>
    %c0_462 = arith.constant 0 : index
    %c48_463 = arith.constant 48 : index
    %696 = vector.load %arg6[%c0_462, %c48_463] : memref<1x256xf32, #tpu.memory_space<vmem>>, vector<1x16xf32>
    tpu.vector_store %arg6[%c0_462, %c48_463], %695 {strides = array<i32>} : memref<1x256xf32, #tpu.memory_space<vmem>>, vector<1x16xf32>,
    %c4_464 = arith.constant 4 : index
    %c0_465 = arith.constant 0 : index
    %697 = vector.load %arg5[%c4_464, %c0_465] : memref<22x16xf32, #tpu.memory_space<vmem>>, vector<1x16xf32>
    %c0_466 = arith.constant 0 : index
    %c64_467 = arith.constant 64 : index
    %698 = vector.load %arg6[%c0_466, %c64_467] : memref<1x256xf32, #tpu.memory_space<vmem>>, vector<1x16xf32>
    tpu.vector_store %arg6[%c0_466, %c64_467], %697 {strides = array<i32>} : memref<1x256xf32, #tpu.memory_space<vmem>>, vector<1x16xf32>,
    %c5_468 = arith.constant 5 : index
    %c0_469 = arith.constant 0 : index
    %699 = vector.load %arg5[%c5_468, %c0_469] : memref<22x16xf32, #tpu.memory_space<vmem>>, vector<1x16xf32>
    %c0_470 = arith.constant 0 : index
    %c80_471 = arith.constant 80 : index
    %700 = vector.load %arg6[%c0_470, %c80_471] : memref<1x256xf32, #tpu.memory_space<vmem>>, vector<1x16xf32>
    tpu.vector_store %arg6[%c0_470, %c80_471], %699 {strides = array<i32>} : memref<1x256xf32, #tpu.memory_space<vmem>>, vector<1x16xf32>,
    %c6_472 = arith.constant 6 : index
    %c0_473 = arith.constant 0 : index
    %701 = vector.load %arg5[%c6_472, %c0_473] : memref<22x16xf32, #tpu.memory_space<vmem>>, vector<1x16xf32>
    %c0_474 = arith.constant 0 : index
    %c96_475 = arith.constant 96 : index
    %702 = vector.load %arg6[%c0_474, %c96_475] : memref<1x256xf32, #tpu.memory_space<vmem>>, vector<1x16xf32>
    tpu.vector_store %arg6[%c0_474, %c96_475], %701 {strides = array<i32>} : memref<1x256xf32, #tpu.memory_space<vmem>>, vector<1x16xf32>,
    %c7_476 = arith.constant 7 : index
    %c0_477 = arith.constant 0 : index
    %703 = vector.load %arg5[%c7_476, %c0_477] : memref<22x16xf32, #tpu.memory_space<vmem>>, vector<1x16xf32>
    %c0_478 = arith.constant 0 : index
    %c112_479 = arith.constant 112 : index
    %704 = vector.load %arg6[%c0_478, %c112_479] : memref<1x256xf32, #tpu.memory_space<vmem>>, vector<1x16xf32>
    tpu.vector_store %arg6[%c0_478, %c112_479], %703 {strides = array<i32>} : memref<1x256xf32, #tpu.memory_space<vmem>>, vector<1x16xf32>,
    %c8_480 = arith.constant 8 : index
    %c0_481 = arith.constant 0 : index
    %705 = vector.load %arg5[%c8_480, %c0_481] : memref<22x16xf32, #tpu.memory_space<vmem>>, vector<1x16xf32>
    %c0_482 = arith.constant 0 : index
    %c128_483 = arith.constant 128 : index
    %706 = vector.load %arg6[%c0_482, %c128_483] : memref<1x256xf32, #tpu.memory_space<vmem>>, vector<1x16xf32>
    tpu.vector_store %arg6[%c0_482, %c128_483], %705 {strides = array<i32>} : memref<1x256xf32, #tpu.memory_space<vmem>>, vector<1x16xf32>,
    %c9_484 = arith.constant 9 : index
    %c0_485 = arith.constant 0 : index
    %707 = vector.load %arg5[%c9_484, %c0_485] : memref<22x16xf32, #tpu.memory_space<vmem>>, vector<1x16xf32>
    %c0_486 = arith.constant 0 : index
    %c144_487 = arith.constant 144 : index
    %708 = vector.load %arg6[%c0_486, %c144_487] : memref<1x256xf32, #tpu.memory_space<vmem>>, vector<1x16xf32>
    tpu.vector_store %arg6[%c0_486, %c144_487], %707 {strides = array<i32>} : memref<1x256xf32, #tpu.memory_space<vmem>>, vector<1x16xf32>,
    %c10_488 = arith.constant 10 : index
    %c0_489 = arith.constant 0 : index
    %709 = vector.load %arg5[%c10_488, %c0_489] : memref<22x16xf32, #tpu.memory_space<vmem>>, vector<1x16xf32>
    %c0_490 = arith.constant 0 : index
    %c160_491 = arith.constant 160 : index
    %710 = vector.load %arg6[%c0_490, %c160_491] : memref<1x256xf32, #tpu.memory_space<vmem>>, vector<1x16xf32>
    tpu.vector_store %arg6[%c0_490, %c160_491], %709 {strides = array<i32>} : memref<1x256xf32, #tpu.memory_space<vmem>>, vector<1x16xf32>,
    %c11_492 = arith.constant 11 : index
    %c0_493 = arith.constant 0 : index
    %711 = vector.load %arg5[%c11_492, %c0_493] : memref<22x16xf32, #tpu.memory_space<vmem>>, vector<1x16xf32>
    %c0_494 = arith.constant 0 : index
    %c176_495 = arith.constant 176 : index
    %712 = vector.load %arg6[%c0_494, %c176_495] : memref<1x256xf32, #tpu.memory_space<vmem>>, vector<1x16xf32>
    tpu.vector_store %arg6[%c0_494, %c176_495], %711 {strides = array<i32>} : memref<1x256xf32, #tpu.memory_space<vmem>>, vector<1x16xf32>,
    %c12_496 = arith.constant 12 : index
    %c0_497 = arith.constant 0 : index
    %713 = vector.load %arg5[%c12_496, %c0_497] : memref<22x16xf32, #tpu.memory_space<vmem>>, vector<1x16xf32>
    %c0_498 = arith.constant 0 : index
    %c192_499 = arith.constant 192 : index
    %714 = vector.load %arg6[%c0_498, %c192_499] : memref<1x256xf32, #tpu.memory_space<vmem>>, vector<1x16xf32>
    tpu.vector_store %arg6[%c0_498, %c192_499], %713 {strides = array<i32>} : memref<1x256xf32, #tpu.memory_space<vmem>>, vector<1x16xf32>,
    %c13_500 = arith.constant 13 : index
    %c0_501 = arith.constant 0 : index
    %715 = vector.load %arg5[%c13_500, %c0_501] : memref<22x16xf32, #tpu.memory_space<vmem>>, vector<1x16xf32>
    %c0_502 = arith.constant 0 : index
    %c208_503 = arith.constant 208 : index
    %716 = vector.load %arg6[%c0_502, %c208_503] : memref<1x256xf32, #tpu.memory_space<vmem>>, vector<1x16xf32>
    tpu.vector_store %arg6[%c0_502, %c208_503], %715 {strides = array<i32>} : memref<1x256xf32, #tpu.memory_space<vmem>>, vector<1x16xf32>,
    %c14_504 = arith.constant 14 : index
    %c0_505 = arith.constant 0 : index
    %717 = vector.load %arg5[%c14_504, %c0_505] : memref<22x16xf32, #tpu.memory_space<vmem>>, vector<1x16xf32>
    %c0_506 = arith.constant 0 : index
    %c224_507 = arith.constant 224 : index
    %718 = vector.load %arg6[%c0_506, %c224_507] : memref<1x256xf32, #tpu.memory_space<vmem>>, vector<1x16xf32>
    tpu.vector_store %arg6[%c0_506, %c224_507], %717 {strides = array<i32>} : memref<1x256xf32, #tpu.memory_space<vmem>>, vector<1x16xf32>,
    %c15_508 = arith.constant 15 : index
    %c0_509 = arith.constant 0 : index
    %719 = vector.load %arg5[%c15_508, %c0_509] : memref<22x16xf32, #tpu.memory_space<vmem>>, vector<1x16xf32>
    %c0_510 = arith.constant 0 : index
    %c240_511 = arith.constant 240 : index
    %720 = vector.load %arg6[%c0_510, %c240_511] : memref<1x256xf32, #tpu.memory_space<vmem>>, vector<1x16xf32>
    tpu.vector_store %arg6[%c0_510, %c240_511], %719 {strides = array<i32>} : memref<1x256xf32, #tpu.memory_space<vmem>>, vector<1x16xf32>,
    %c0_512 = arith.constant 0 : index
    %c0_513 = arith.constant 0 : index
    %721 = vector.load %arg6[%c0_512, %c0_513] : memref<1x256xf32, #tpu.memory_space<vmem>>, vector<1x256xf32>
    %c0_514 = arith.constant 0 : index
    %c0_515 = arith.constant 0 : index
    %c0_516 = arith.constant 0 : index
    %722 = vector.load %arg2[%c0_514, %c0_515, %c0_516] : memref<1x4x256xf32, #tpu.memory_space<vmem>>, vector<1x4x256xf32>
    %723 = vector.shape_cast %722 : vector<1x4x256xf32> to vector<4x256xf32>
    %724 = vector.broadcast %721 : vector<1x256xf32> to vector<4x256xf32>
    %725 = arith.mulf %723, %724 : vector<4x256xf32>
    %c0_517 = arith.constant 0 : index
    %c0_518 = arith.constant 0 : index
    %c0_519 = arith.constant 0 : index
    %726 = vector.load %arg3[%c0_517, %c0_518, %c0_519] : memref<1x4x256xf32, #tpu.memory_space<vmem>>, vector<1x4x256xf32>
    %727 = vector.shape_cast %726 : vector<1x4x256xf32> to vector<4x256xf32>
    %728 = vector.shape_cast %725 : vector<4x256xf32> to vector<1x4x256xf32>
    tpu.vector_store %arg3[%c0_517, %c0_518, %c0_519], %728 {strides = array<i32>} : memref<1x4x256xf32, #tpu.memory_space<vmem>>, vector<1x4x256xf32>,
    return
  }
  func.func @transform_0(%arg0: i32) -> i32 {
    %c0_i32 = arith.constant 0 : i32
    %c0_i32_0 = arith.constant 0 : i32
    return %c0_i32 : i32
  }
  func.func @transform_1(%arg0: i32) -> (i32, i32, i32) {
    %c0_i32 = arith.constant 0 : i32
    %c0_i32_0 = arith.constant 0 : i32
    %c0_i32_1 = arith.constant 0 : i32
    return %arg0, %c0_i32, %c0_i32_0 : i32, i32, i32
  }
  func.func @transform_2(%arg0: i32) -> (i32, i32, i32) {
    %c0_i32 = arith.constant 0 : i32
    %c0_i32_0 = arith.constant 0 : i32
    %c0_i32_1 = arith.constant 0 : i32
    return %arg0, %c0_i32, %c0_i32_0 : i32, i32, i32
  }
}

</mosaic_0001>

<bundles_post_ra>
// kernel: spatial_attention_forward.1
= control target key start
LH: loop header
LB: loop body
LE: loop exit
PB: predicated region body
PF: predicated region fallthrough
CT: control target
= control target key end

     0   :  { %7 = vsyncpa [#allocation7], 0  ;;  %s1970_s9 = smov 0   ;;  %s2653_s0 = inlined_call_operand.vmem [shape: f32[98], index: 0, kind: input, shape index: {}]   ;;  %s2654_s1 = inlined_call_operand.vmem [shape: f32[2,4,256], index: 1, kind: input, shape index: {}]   ;;  %s2655_s2 = inlined_call_operand.vmem [shape: f32[2,4,256], index: 2, kind: output, shape index: {}]  }
   0x1 LB: > { %s1710_s10 = sadd.s32 4294967295, %s1930_s9   ;;  %p1712_p0 = scmp.ge.s32.totalorder %s1930_s9, 1  ;;  %s1930_s9 = sphi %s1970_s9, %s13_s9  }
   0x2   : > { %p91_p1 = scmp.lt.s32.totalorder %s1930_s9, 3  ;;  %s103_s13 = sshll.u32 %s2653_s0, 4  ;;  %s104_s13 = int_to_ptr.vmem [resolvable:$true] %s103_s13 }
   0x3   : > { %p1832_p3 = scmp.eq.s32.totalorder %s1710_s10, 0  ;;  %s1932_s14 = smov [#allocation6]  }
   0x4   : > { %p92_p2 = pnand %p1712_p0, %p91_p1 }
   0x6   : > { %p1828_p4 = pneg %p92_p2  ;;  %124 = sbr.rel (%p92_p2) target bundleno = 808 (0x328), region = 28 }
   0x8   : > { %p1829_p5 = pnand %p1832_p3, %p1828_p4 }
   0xa   : > { %1831 = dma.vmem_to_smem (!%p1829_p5), %s104_s13, 16, %s1932_s14, [#allocation7]  }
   0xb   : > { %1925 = dma.done.wait (%p1832_p3), [#allocation7], 16  }
   0xc   : > { %1927 = vsyncadd (%p1832_p3), [#allocation7], 4294967280 }
   0xd   : > { %131 = sfence }
   0xe   : > { %p148_p6 = scmp.lt.s32.totalorder %s1710_s10, 1  ;;  %vm165_vm0 = vcmask 1043456   ;;  %v209_v21 = vlaneseq  ;;  %vm206_vm1 = vcmask 1040384   ;;  %s1933_s19 = smov 99   ;;  %vm221_vm3 = vcmask 174080  }
   0xf   : > { %s1934_s20 = smov 3   ;;  %s1935_s21 = smov 67   ;;  %vm226_vm4 = vcmask 23552   ;;  %vm234_vm5 = vcmask 179352   ;;  %v1941_v49 = vmov 0.0   ;;  %vm248_vm6 = vcmask 147480  }
  0x10   : > { %s2665_s10 = smov (!%p148_p6, %s1710_s10), 1  ;;  %vm211_vm2 = vcmp.lt.s32.totalorder %v209_v21, 256  ;;  %s1936_s22 = smov 83   ;;  %222 = vst.msk [vmem:[#allocation2] sm:$0x7] %vm221_vm3, %v1941_v49  ;;  %vm229_vm7 = vcmask 21504  }
  0x11   : > { %s1822_s15 = sshll.u32 %s2665_s10, 3  ;;  %s1937_s23 = smov 115   ;;  %227 = vst.msk [vmem:[#allocation2] sm:$0xff] %vm226_vm4, %v1941_v49  ;;  %vm237_vm8 = vcmask 177304   ;;  %vm471_vm9 = vcmask 130048   ;;  %vm474_vm10 = vcmask 128000  }
  0x12   : > { %s1989_s18 = scalar_lea.vmem %s2654_s1, %s1822_s15  ;;  %s1938_s24 = smov 51   ;;  %235 = vst.msk [vmem:[#allocation2] sm:$0xff] %vm234_vm5, %v1941_v49 }
  0x13   : > { %v158_v0 = vld [vmem:[%s1989_s18] sm:$0xff]  ;;  %s1939_s25 = smov 19   ;;  %s1940_s26 = smov 35   ;;  %223 = vst.msk [vmem:[#allocation2 + $0x18] sm:$0x7] %vm221_vm3, %v1941_v49 }
  0x14   : > { %160 = vst [vmem:[#allocation1] ss:$2 sm:$0xff] %v158_v0  ;;  %s1942_s27 = smov 127   ;;  %s1943_s28 = smov 126  }
  0x15   : > { %224 = vst.msk [vmem:[#allocation2 + $0x13] sm:$0x7] %vm221_vm3, %v1941_v49  ;;  %s1944_s29 = smov 125   ;;  %s1945_s30 = smov 124  }
  0x16   : > { %225 = vst.msk [vmem:[#allocation2 + $0x2b] sm:$0x7] %vm221_vm3, %v1941_v49  ;;  %s1946_s3 = smov 123   ;;  %s1947_s4 = smov 122  }
  0x17   : > { %228 = vst.msk [vmem:[#allocation2 + $0x8] sm:$0xff] %vm226_vm4, %v1941_v49  ;;  %s2109_s5 = sld [smem:[#allocation6 + $0x7]] }
  0x18   : > { %232 = vst.msk [vmem:[#allocation2 + $0x20] sm:$0xff] %vm226_vm4, %v1941_v49  ;;  %s2113_s6 = sld [smem:[#allocation6]] }
  0x19   : > { %231 = vst.msk [vmem:[#allocation2 + $0x18] sm:$0xff] %vm226_vm4, %v1941_v49  ;;  %s2117_s7 = sld [smem:[#allocation6 + $0xe]]  ;;  %vm1523_vm4 = vcmp.lt.s32.totalorder %v209_v21, 16 }
  0x1a   : > { %236 = vst.msk [vmem:[#allocation2 + $0x8] sm:$0xff] %vm234_vm5, %v1941_v49  ;;  %s2125_s8 = sld [smem:[#allocation6 + $0x15]] }
  0x1b   : > { %v161_v1 = vld.sshfl [vmem:[#allocation1] sm:$0xff pattern:$0x75316420]  ;;  %v162_v2 = vld.sshfl [vmem:[#allocation1 + $0x8] sm:$0xff pattern:$0x75316420] }
  0x1c   : > { %v166_v3 = vsel %vm165_vm0, %v161_v1, 0.0  ;;  %v173_v4 = vsel %vm165_vm0, %v162_v2, 0.0  ;;  %182 = vst [vmem:[#allocation1] ss:$2 sm:$0xff] %v158_v0  ;;  %s2132_s11 = sld [smem:[#allocation6 + $0x1c]] }
  0x1d   : > { %v167_v5 = vrot.slane %v166_v3, 4  ;;  %v174_v6 = vrot.slane %v173_v4, 4  ;;  %240 = vst.msk [vmem:[#allocation2 + $0x20] sm:$0xff] %vm234_vm5, %v1941_v49  ;;  %s2139_s12 = sld [smem:[#allocation6 + $0x23]] }
  0x1e   : > { %239 = vst.msk [vmem:[#allocation2 + $0x18] sm:$0xff] %vm234_vm5, %v1941_v49  ;;  %s2144_s13 = sld [smem:[#allocation6 + $0x2a]]  ;;  %vm1531_vm5 = vcmp.ge.s32.totalorder %v209_v21, 16 }
  0x1f   : > { %v168_v7 = vadd.f32 %v167_v5, %v166_v3  ;;  %v175_v8 = vadd.f32 %v174_v6, %v173_v4  ;;  %230 = vst.msk [vmem:[#allocation2 + $0x10] sm:$0x3f] %vm229_vm7, %v1941_v49  ;;  %s2149_s14 = sld [smem:[#allocation6 + $0x1]] }
  0x20   : > { %238 = vst.msk [vmem:[#allocation2 + $0x10] sm:$0x3f] %vm237_vm8, %v1941_v49  ;;  %s2158_s16 = sld [smem:[#allocation6 + $0x8]] }
  0x21   : > { %v169_v9 = vrot.slane %v168_v7, 2  ;;  %v176_v10 = vrot.slane %v175_v8, 2  ;;  %233 = vst.msk [vmem:[#allocation2 + $0x28] sm:$0x3f] %vm229_vm7, %v1941_v49  ;;  %s2168_s17 = sld [smem:[#allocation6 + $0xf]] }
  0x22   : > { %241 = vst.msk [vmem:[#allocation2 + $0x28] sm:$0x3f] %vm237_vm8, %v1941_v49  ;;  %vm1540_vm8 = vcmp.ge.s32.totalorder %v209_v21, 32 }
  0x23   : > { %v170_v11 = vadd.f32 %v169_v9, %v168_v7  ;;  %v177_v12 = vadd.f32 %v176_v10, %v175_v8  ;;  %v183_v13 = vld.sshfl [vmem:[#allocation1] sm:$0xff pattern:$0x75316420]  ;;  %v184_v14 = vld.sshfl [vmem:[#allocation1 + $0x8] sm:$0xff pattern:$0x75316420] }
  0x24   : > { %v187_v15 = vsel %vm165_vm0, %v183_v13, -inf  ;;  %v194_v16 = vsel %vm165_vm0, %v184_v14, -inf }
  0x25   : > { %v171_v17 = vrot.slane %v170_v11, 1  ;;  %v178_v18 = vrot.slane %v177_v12, 1  ;;  %v188_v19 = vrot.slane %v187_v15, 4  ;;  %v195_v20 = vrot.slane %v194_v16, 4 }
  0x27   : > { %v172_v22 = vadd.f32 %v171_v17, %v170_v11  ;;  %v179_v23 = vadd.f32 %v178_v18, %v177_v12  ;;  %v189_v24 = vmax.f32 %v187_v15, %v188_v19  ;;  %v196_v25 = vmax.f32 %v194_v16, %v195_v20 }
  0x29   : > { %v190_v26 = vrot.slane %v189_v24, 2  ;;  %v197_v27 = vrot.slane %v196_v25, 2  ;;  %v201_v28 = vmul.f32 0.25, %v172_v22  ;;  %v202_v29 = vmul.f32 0.25, %v179_v23 }
  0x2b   : > { %v191_v30 = vmax.f32 %v189_v24, %v190_v26  ;;  %v198_v31 = vmax.f32 %v196_v25, %v197_v27  ;;  %v205_v32 = vrot.slane %v202_v29, 7 }
  0x2d   : > { %v192_v33 = vrot.slane %v191_v30, 1  ;;  %v199_v34 = vrot.slane %v198_v31, 1  ;;  %v207_v35 = vsel %vm206_vm1, %v201_v28, %v205_v32 }
  0x2e   : > { %213 = vst.msk [vmem:[#allocation5] ss:$2 sm:$0x3] %vm211_vm2, %v207_v35 }
  0x2f   : > { %v193_v36 = vmax.f32 %v191_v30, %v192_v33  ;;  %v200_v37 = vmax.f32 %v198_v31, %v199_v34 }
  0x31   : > { %v216_v38 = vrot.slane %v200_v37, 7 }
  0x33   : > { %v217_v39 = vsel %vm206_vm1, %v193_v36, %v216_v38 }
  0x34   : > { %220 = vst.msk [vmem:[#allocation5 + $0x1] ss:$2 sm:$0x3] %vm211_vm2, %v217_v39 }
  0x35   : > { %v1865_v40 = vld [vmem:[#allocation5] ss:$0 sm:$0xff]  ;;  %v1878_v48 = vld [vmem:[#allocation5 + $0x2] ss:$0 sm:$0xff] }
  0x36   : > { %v1866_v41 = vld [vmem:[#allocation5] ss:$0 sm:$0xff]  ;;  %275 = vrot.lane.b32.xlu1 %v1865_v40, %s1933_s19  ;;  %v1873_v50 = vld [vmem:[#allocation5 + $0x2] ss:$0 sm:$0xff] }
  0x37   : > { %245 = vrot.lane.b32.xlu0 %v1866_v41, %s1934_s20  ;;  %v1872_v42 = vld [vmem:[#allocation5] ss:$0 sm:$0xff]  ;;  %v1871_v51 = vld [vmem:[#allocation5 + $0x2] ss:$0 sm:$0xff] }
  0x38   : > { %v1867_v43 = vld [vmem:[#allocation5] ss:$0 sm:$0xff]  ;;  %303 = vrot.lane.b32.xlu2 %v1872_v42, %s1935_s21  ;;  %v1879_v52 = vld [vmem:[#allocation5 + $0x2] ss:$0 sm:$0xff]  ;;  %v487_v42 = vstv %s2109_s5  ;;  %s2266_s5 = sld [smem:[#allocation6 + $0x1e]] }
  0x39   : > { %v1868_v44 = vld [vmem:[#allocation5] ss:$0 sm:$0xff]  ;;  %v1876_v53 = vld [vmem:[#allocation5 + $0x2] ss:$0 sm:$0xff] }
  0x3a   : > { %v1875_v45 = vld [vmem:[#allocation5] ss:$0 sm:$0xff]  ;;  %v1874_v54 = vld [vmem:[#allocation5 + $0x2] ss:$0 sm:$0xff] }
  0x3b   : > { %v1869_v46 = vld [vmem:[#allocation5] ss:$0 sm:$0xff]  ;;  %v1880_v55 = vld [vmem:[#allocation5 + $0x2] ss:$0 sm:$0xff]  ;;  %v1881_v56 = vld [vmem:[#allocation5 + $0x1] ss:$0 sm:$0xff] }
  0x3c   : > { %v1870_v47 = vld [vmem:[#allocation5] ss:$0 sm:$0xff]  ;;  %v1877_v57 = vld [vmem:[#allocation5 + $0x2] ss:$0 sm:$0xff]  ;;  %v1882_v58 = vld [vmem:[#allocation5 + $0x1] ss:$0 sm:$0xff] }
  0x3d   : > { %v1883_v59 = vld [vmem:[#allocation5 + $0x1] ss:$0 sm:$0xff]  ;;  %v1888_v16 = vld [vmem:[#allocation5 + $0x3] ss:$0 sm:$0xff] }
  0x3e   : > { %289 = vrot.lane.b32.xlu1 %v1867_v43, %s1936_s22  ;;  %v1884_v60 = vld [vmem:[#allocation5 + $0x1] ss:$0 sm:$0xff]  ;;  %v1889_v22 = vld [vmem:[#allocation5 + $0x3] ss:$0 sm:$0xff]  ;;  %v479_v43 = vstv %s2113_s6  ;;  %s2274_s6 = sld [smem:[#allocation6 + $0x25]] }
  0x3f   : > { %261 = vrot.lane.b32.xlu0 %v1868_v44, %s1937_s23  ;;  %v1885_v62 = vld [vmem:[#allocation5 + $0x1] ss:$0 sm:$0xff]  ;;  %v1891_v24 = vld [vmem:[#allocation5 + $0x3] ss:$0 sm:$0xff] }
  0x40   : > { %317 = vrot.lane.b32.xlu2 %v1875_v45, %s1938_s24  ;;  %v1887_v6 = vld [vmem:[#allocation5 + $0x1] ss:$0 sm:$0xff]  ;;  %v1892_v30 = vld [vmem:[#allocation5 + $0x3] ss:$0 sm:$0xff] }
  0x41   : > { %v1886_v11 = vld [vmem:[#allocation5 + $0x1] ss:$0 sm:$0xff]  ;;  %v1893_v31 = vld [vmem:[#allocation5 + $0x3] ss:$0 sm:$0xff] }
  0x42   : > { %v1890_v23 = vld [vmem:[#allocation5 + $0x1] ss:$0 sm:$0xff]  ;;  %v1894_v34 = vld [vmem:[#allocation5 + $0x3] ss:$0 sm:$0xff] }
  0x43   : > { %v1895_v36 = vld [vmem:[#allocation5 + $0x3] ss:$0 sm:$0xff] }
  0x44   : > { %v1896_v39 = vld [vmem:[#allocation5 + $0x3] ss:$0 sm:$0xff] }
  0x46   : > { %345 = vrot.lane.b32.xlu1 %v1870_v47, %s1939_s25 }
  0x47   : > { %331 = vrot.lane.b32.xlu0 %v1869_v46, %s1940_s26 }
  0x48   : > { %359 = vrot.lane.b32.xlu2 %v1878_v48, %s1934_s20  ;;  %v495_v48 = vstv %s2117_s7  ;;  %s2276_s7 = sld [smem:[#allocation6 + $0x2c]] }
  0x4e   : > { %387 = vrot.lane.b32.xlu1 %v1873_v50, %s1933_s19 }
  0x4f   : > { %373 = vrot.lane.b32.xlu0 %v1871_v51, %s1937_s23 }
  0x50   : > { %401 = vrot.lane.b32.xlu2 %v1879_v52, %s1936_s22  ;;  %v503_v52 = vstv %s2125_s8  ;;  %s2285_s8 = sld [smem:[#allocation6 + $0x3]] }
  0x56   : > { %429 = vrot.lane.b32.xlu1 %v1876_v53, %s1938_s24 }
  0x57   : > { %415 = vrot.lane.b32.xlu0 %v1874_v54, %s1935_s21 }
  0x58   : > { %443 = vrot.lane.b32.xlu2 %v1880_v55, %s1940_s26 }
  0x5e   : > { %253 = vrot.lane.b32.xlu1 %v1881_v56, %s1934_s20 }
  0x5f   : > { %457 = vrot.lane.b32.xlu0 %v1877_v57, %s1939_s25  ;;  %v511_v57 = vstv %s2132_s11  ;;  %s2293_s11 = sld [smem:[#allocation6 + $0xa]] }
  0x60   : > { %268 = vrot.lane.b32.xlu2 %v1884_v60, %s1937_s23 }
  0x66   : > { %296 = vrot.lane.b32.xlu1 %v1882_v58, %s1936_s22 }
  0x67   : > { %282 = vrot.lane.b32.xlu0 %v1883_v59, %s1933_s19 }
  0x68   : > { %310 = vrot.lane.b32.xlu2 %v1885_v62, %s1935_s21 }
  0x6f   : > { %324 = vrot.lane.b32.xlu0 %v1887_v6, %s1938_s24 }
  0x92   : > { %v304_v61 = vpop.permute.xlu2 %303 }
  0x93   : > { %306 = vst.msk [vmem:[#allocation2 + $0x7] sm:$0x1] %vm248_vm6, %v304_v61 }
  0x9a   : > { %v318_v63 = vpop.permute.xlu2 %317 }
  0x9b   : > { %320 = vst.msk [vmem:[#allocation2 + $0x8] sm:$0x1] %vm248_vm6, %v318_v63 }
  0xa2   : > { %v360_v0 = vpop.permute.xlu2 %359 }
  0xa3   : > { %362 = vst.msk [vmem:[#allocation2 + $0xb] sm:$0x1] %vm248_vm6, %v360_v0 }
  0xa8   : > { %v276_v1 = vpop.permute.xlu1 %275 }
  0xa9   : > { %278 = vst.msk [vmem:[#allocation2 + $0x5] sm:$0x1] %vm248_vm6, %v276_v1  ;;  %v246_v2 = vpop.permute.xlu0 %245 }
  0xaa   : > { %249 = vst.msk [vmem:[#allocation2 + $0x3] sm:$0x1] %vm248_vm6, %v246_v2  ;;  %v402_v3 = vpop.permute.xlu2 %401  ;;  %v519_v2 = vstv %s2139_s12  ;;  %s2297_s12 = sld [smem:[#allocation6 + $0x11]] }
  0xab   : > { %404 = vst.msk [vmem:[#allocation2 + $0xe] sm:$0x1] %vm248_vm6, %v402_v3 }
  0xb0   : > { %v290_v4 = vpop.permute.xlu1 %289 }
  0xb1   : > { %292 = vst.msk [vmem:[#allocation2 + $0x6] sm:$0x1] %vm248_vm6, %v290_v4  ;;  %v262_v5 = vpop.permute.xlu0 %261 }
  0xb2   : > { %264 = vst.msk [vmem:[#allocation2 + $0x4] sm:$0x1] %vm248_vm6, %v262_v5  ;;  %v444_v7 = vpop.permute.xlu2 %443 }
  0xb3   : > { %446 = vst.msk [vmem:[#allocation2 + $0x11] sm:$0x1] %vm248_vm6, %v444_v7 }
  0xb8   : > { %v346_v8 = vpop.permute.xlu1 %345 }
  0xb9   : > { %v2052_v9 = vld [vmem:[#allocation2] sm:$0xff]  ;;  %v332_v10 = vpop.permute.xlu0 %331  ;;  %348 = vst.msk [vmem:[#allocation2 + $0xa] sm:$0x1] %vm248_vm6, %v346_v8 }
  0xba   : > { %472 = vst.msk [vmem:[#allocation3] sm:$0xff] %vm471_vm9, %v2052_v9  ;;  %538 = vrot.lane.b32.xlu1 %v2052_v9, %s1942_s27  ;;  %v269_v26 = vpop.permute.xlu2 %268 }
  0xbb   : > { %334 = vst.msk [vmem:[#allocation2 + $0x9] sm:$0x1] %vm248_vm6, %v332_v10  ;;  %v527_v10 = vstv %s2144_s13  ;;  %s2302_s13 = sld [smem:[#allocation6 + $0x18]] }
  0xbc   : > { %271 = vst.msk [vmem:[#allocation2 + $0x1c] sm:$0x1] %vm248_vm6, %v269_v26 }
  0xc0   : > { %v388_v12 = vpop.permute.xlu1 %387 }
  0xc1   : > { %v374_v13 = vpop.permute.xlu0 %373  ;;  %390 = vst.msk [vmem:[#allocation2 + $0xd] sm:$0x1] %vm248_vm6, %v388_v12  ;;  %v477_v44 = vld [vmem:[#allocation3] sm:$0xff]  ;;  %v553_v12 = vstv %s2149_s14  ;;  %s2305_s14 = sld [smem:[#allocation6 + $0x1f]] }
  0xc2   : > { %376 = vst.msk [vmem:[#allocation2 + $0xc] sm:$0x1] %vm248_vm6, %v374_v13  ;;  %338 = vrot.lane.b32.xlu1 %v1886_v11, %s1940_s26  ;;  %v311_v32 = vpop.permute.xlu2 %310  ;;  %v480_v46 = vmul.f32 %v479_v43, %v477_v44 }
  0xc3   : > { %313 = vst.msk [vmem:[#allocation2 + $0x1f] sm:$0x1] %vm248_vm6, %v311_v32 }
  0xc8   : > { %v430_v14 = vpop.permute.xlu1 %429 }
  0xc9   : > { %v416_v15 = vpop.permute.xlu0 %415  ;;  %432 = vst.msk [vmem:[#allocation2 + $0x10] sm:$0x1] %vm248_vm6, %v430_v14 }
  0xca   : > { %418 = vst.msk [vmem:[#allocation2 + $0xf] sm:$0x1] %vm248_vm6, %v416_v15  ;;  %612 = vrot.lane.b32.xlu1 %v2052_v9, %s1943_s28 }
  0xd0   : > { %v254_v25 = vpop.permute.xlu1 %253 }
  0xd1   : > { %v2067_v17 = vld [vmem:[#allocation2 + $0x8] sm:$0xff]  ;;  %v458_v18 = vpop.permute.xlu0 %457  ;;  %257 = vst.msk [vmem:[#allocation2 + $0x1b] sm:$0x1] %vm248_vm6, %v254_v25 }
  0xd2   : > { %473 = vst.msk [vmem:[#allocation3 + $0x8] sm:$0xff] %vm471_vm9, %v2067_v17  ;;  %380 = vrot.lane.b32.xlu1 %v1888_v16, %s1937_s23  ;;  %540 = vrot.lane.b32.xlu2 %v2067_v17, %s1942_s27  ;;  %s2201_s23 = sld [smem:[#allocation6 + $0x2]] }
  0xd3   : > { %460 = vst.msk [vmem:[#allocation2 + $0x12] sm:$0x1] %vm248_vm6, %v458_v18 }
  0xd8   : > { %v297_v28 = vpop.permute.xlu1 %296 }
  0xd9   : > { %v283_v29 = vpop.permute.xlu0 %282  ;;  %299 = vst.msk [vmem:[#allocation2 + $0x1e] sm:$0x1] %vm248_vm6, %v297_v28  ;;  %v485_v41 = vld [vmem:[#allocation3 + $0x1] sm:$0xff] }
  0xda   : > { %686 = vrot.lane.b32.xlu1 %v2052_v9, %s1944_s29  ;;  %614 = vrot.lane.b32.xlu2 %v2067_v17, %s1943_s28  ;;  %v470_v19 = vld [vmem:[#allocation2 + $0x10] sm:$0x3f]  ;;  %285 = vst.msk [vmem:[#allocation2 + $0x1d] sm:$0x1] %vm248_vm6, %v283_v29  ;;  %v488_v45 = vmul.f32 %v487_v42, %v485_v41  ;;  %v525_v60 = vld [vmem:[#allocation3 + $0x6] sm:$0xff] }
  0xdb   : > { %v534_v20 = vld [vmem:[#allocation2 + $0x10] sm:$0x3f]  ;;  %475 = vst.msk [vmem:[#allocation3 + $0x10] sm:$0x3f] %vm474_vm10, %v470_v19  ;;  %v478_v61 = vld [vmem:[#allocation3 + $0x8] sm:$0xff]  ;;  %v528_v13 = vmul.f32 %v527_v10, %v525_v60 }
  0xdc   : > { %542 = vrot.lane.b32.xlu0 %v534_v20, %s1942_s27  ;;  %v608_v27 = vld [vmem:[#allocation2 + $0x10] sm:$0x3f]  ;;  %v490_v49 = vadd.f32 %v488_v45, %v480_v46  ;;  %v481_v45 = vmul.f32 %v479_v43, %v478_v61 }
  0xdd   : > { %v682_v33 = vld [vmem:[#allocation2 + $0x10] sm:$0x3f] }
  0xde   : > { %v830_v35 = vld [vmem:[#allocation2 + $0x10] sm:$0x3f] }
  0xdf   : > { %v904_v37 = vld [vmem:[#allocation2 + $0x10] sm:$0x3f] }
  0xe0   : > { %v756_v38 = vld [vmem:[#allocation2 + $0x10] sm:$0x3f] }
  0xe1   : > { %v2115_v40 = vld [vmem:[#allocation2 + $0x18] sm:$0xff]  ;;  %v325_v55 = vpop.permute.xlu0 %324 }
  0xe2   : > { %422 = vrot.lane.b32.xlu1 %v1889_v22, %s1935_s21  ;;  %352 = vrot.lane.b32.xlu2 %v1890_v23, %s1939_s25  ;;  %v493_v47 = vld [vmem:[#allocation3 + $0x2] sm:$0xff]  ;;  %327 = vst.msk [vmem:[#allocation2 + $0x20] sm:$0x1] %vm248_vm6, %v325_v55  ;;  %v2153_v0 = vld [vmem:[#allocation3 + $0xa] sm:$0xff]  ;;  %s2185_s21 = sld [smem:[#allocation6 + $0x24]]  ;;  %v569_v23 = vstv %s2168_s17 }
  0xe3   : > { %v496_v50 = vmul.f32 %v495_v48, %v493_v47  ;;  %v501_v51 = vld [vmem:[#allocation3 + $0x3] sm:$0xff]  ;;  %v2155_v1 = vld [vmem:[#allocation3 + $0xb] sm:$0xff]  ;;  %s2310_s17 = sld [smem:[#allocation6 + $0x2d]] }
  0xe4   : > { %366 = vrot.lane.b32.xlu0 %v1891_v24, %s1934_s20  ;;  %v504_v54 = vmul.f32 %v503_v52, %v501_v51  ;;  %v509_v56 = vld [vmem:[#allocation3 + $0x4] sm:$0xff]  ;;  %v2160_v5 = vld [vmem:[#allocation3 + $0xc] sm:$0xff]  ;;  %s2178_s20 = sld [smem:[#allocation6 + $0x1d]]  ;;  %v505_v61 = vmul.f32 %v503_v52, %v2155_v1 }
  0xe5   : > { %v498_v53 = vadd.f32 %v496_v50, %v490_v49  ;;  %v517_v59 = vld [vmem:[#allocation3 + $0x5] sm:$0xff]  ;;  %v512_v62 = vmul.f32 %v511_v57, %v509_v56  ;;  %v2162_v6 = vld [vmem:[#allocation3 + $0xd] sm:$0xff] }
  0xe6   : > { %v486_v63 = vld [vmem:[#allocation3 + $0x9] sm:$0xff] }
  0xe7   : > { %v506_v58 = vadd.f32 %v504_v54, %v498_v53  ;;  %v2164_v7 = vld [vmem:[#allocation3 + $0xe] sm:$0xff]  ;;  %v627_v53 = vstv %s2201_s23  ;;  %s2336_s23 = sld [smem:[#allocation6 + $0x20]] }
  0xe8   : > { %v529_v1 = vmul.f32 %v527_v10, %v2164_v7 }
  0xe9   : > { %v514_v8 = vadd.f32 %v512_v62, %v506_v58 }
  0xea   : > { %760 = vrot.lane.b32.xlu1 %v2052_v9, %s1945_s30  ;;  %688 = vrot.lane.b32.xlu2 %v2067_v17, %s1944_s29 }
  0xec   : > { %616 = vrot.lane.b32.xlu0 %v608_v27, %s1943_s28 }
  0xf2   : > { %464 = vrot.lane.b32.xlu1 %v1892_v30, %s1939_s25  ;;  %394 = vrot.lane.b32.xlu2 %v1893_v31, %s1933_s19  ;;  %s2173_s19 = sld [smem:[#allocation6 + $0x16]]  ;;  %v585_v31 = vstv %s2178_s20 }
  0xf3   : > { %s2253_s25 = sld [smem:[#allocation6 + $0x10]] }
  0xf4   : > { %690 = vrot.lane.b32.xlu0 %v682_v33, %s1944_s29  ;;  %s2320_s20 = sld [smem:[#allocation6 + $0xb]] }
  0xf8   : > { %v577_v27 = vstv %s2173_s19  ;;  %s2315_s19 = sld [smem:[#allocation6 + $0x4]] }
  0xfa   : > { %762 = vrot.lane.b32.xlu2 %v2067_v17, %s1945_s30  ;;  %838 = vrot.lane.b32.xlu1 %v830_v35, %s1946_s3 }
  0xfc   : > { %408 = vrot.lane.b32.xlu0 %v1894_v34, %s1936_s22  ;;  %s2194_s22 = sld [smem:[#allocation6 + $0x2b]] }
 0x102   : > { %436 = vrot.lane.b32.xlu2 %v1895_v36, %s1938_s24  ;;  %912 = vrot.lane.b32.xlu1 %v904_v37, %s1947_s4  ;;  %v593_v36 = vstv %s2185_s21  ;;  %v601_v49 = vstv %s2194_s22  ;;  %s2251_s24 = sld [smem:[#allocation6 + $0x9]] }
 0x103   : > { %s2325_s21 = sld [smem:[#allocation6 + $0x12]] }
 0x104   : > { %764 = vrot.lane.b32.xlu0 %v756_v38, %s1945_s30  ;;  %s2330_s22 = sld [smem:[#allocation6 + $0x19]] }
 0x10a   : > { %834 = vrot.lane.b32.xlu2 %v2052_v9, %s1946_s3 }
 0x10c   : > { %450 = vrot.lane.b32.xlu0 %v1896_v39, %s1940_s26  ;;  %v489_v39 = vmul.f32 %v487_v42, %v486_v63  ;;  %v497_v42 = vmul.f32 %v495_v48, %v2153_v0  ;;  %v513_v63 = vmul.f32 %v511_v57, %v2160_v5  ;;  %s2262_s26 = sld [smem:[#allocation6 + $0x17]] }
 0x10e   : > { %v491_v50 = vadd.f32 %v489_v39, %v481_v45 }
 0x110   : > { %v499_v58 = vadd.f32 %v497_v42, %v491_v50 }
 0x112   : > { %908 = vrot.lane.b32.xlu2 %v2052_v9, %s1947_s4  ;;  %v520_v9 = vmul.f32 %v519_v2, %v517_v59  ;;  %v507_v48 = vadd.f32 %v505_v61, %v499_v58 }
 0x114   : > { %836 = vrot.lane.b32.xlu0 %v2067_v17, %s1946_s3  ;;  %v522_v11 = vadd.f32 %v520_v9, %v514_v8  ;;  %v521_v9 = vmul.f32 %v519_v2, %v2162_v6 }
 0x116   : > { %v530_v18 = vadd.f32 %v528_v13, %v522_v11 }
 0x11a   : > { %1044 = vrot.lane.b32.xlu2 %v2115_v40, %s1942_s27 }
 0x11c   : > { %910 = vrot.lane.b32.xlu0 %v2067_v17, %s1947_s4  ;;  %v561_v17 = vstv %s2158_s16  ;;  %s2308_s16 = sld [smem:[#allocation6 + $0x26]] }
 0x122   : > { %1118 = vrot.lane.b32.xlu2 %v2115_v40, %s1943_s28 }
 0x12a   : > { %1192 = vrot.lane.b32.xlu2 %v2115_v40, %s1944_s29 }
 0x12c   : > { %v539_v3 = vpop.permute.xlu1 %538  ;;  %v541_v4 = vpop.permute.xlu2 %540 }
 0x12d   : > { %547 = vst.msk [vmem:[#allocation3] sm:$0xff] %vm471_vm9, %v539_v3 }
 0x12e   : > { %548 = vst.msk [vmem:[#allocation3 + $0x8] sm:$0xff] %vm471_vm9, %v541_v4  ;;  %v515_v4 = vadd.f32 %v513_v63, %v507_v48 }
 0x130   : > { %v523_v52 = vadd.f32 %v521_v9, %v515_v4 }
 0x132   : > { %1266 = vrot.lane.b32.xlu2 %v2115_v40, %s1945_s30 }
 0x134   : > { %v551_v14 = vld [vmem:[#allocation3] sm:$0xff]  ;;  %v339_v15 = vpop.permute.xlu1 %338  ;;  %v2182_v16 = vpop.permute.xlu2 %614 }
 0x135   : > { %v554_v19 = vmul.f32 %v553_v12, %v551_v14  ;;  %v559_v20 = vld [vmem:[#allocation3 + $0x1] sm:$0xff]  ;;  %341 = vst.msk [vmem:[#allocation2 + $0x21] sm:$0x1] %vm248_vm6, %v339_v15  ;;  %v531_v14 = vadd.f32 %v529_v1, %v523_v52 }
 0x136   : > { %v567_v22 = vld [vmem:[#allocation3 + $0x2] sm:$0xff]  ;;  %v562_v25 = vmul.f32 %v561_v17, %v559_v20 }
 0x137   : > { %v556_v24 = vadd.f32 %v554_v19, %v530_v18  ;;  %v575_v26 = vld [vmem:[#allocation3 + $0x3] sm:$0xff]  ;;  %v570_v29 = vmul.f32 %v569_v23, %v567_v22 }
 0x138   : > { %v583_v30 = vld [vmem:[#allocation3 + $0x4] sm:$0xff]  ;;  %v578_v33 = vmul.f32 %v577_v27, %v575_v26 }
 0x139   : > { %v564_v28 = vadd.f32 %v562_v25, %v556_v24  ;;  %v591_v34 = vld [vmem:[#allocation3 + $0x5] sm:$0xff]  ;;  %v586_v44 = vmul.f32 %v585_v31, %v583_v30 }
 0x13a   : > { %1340 = vrot.lane.b32.xlu2 %v2115_v40, %s1946_s3  ;;  %v599_v35 = vld [vmem:[#allocation3 + $0x6] sm:$0xff]  ;;  %v594_v47 = vmul.f32 %v593_v36, %v591_v34 }
 0x13b   : > { %v572_v32 = vadd.f32 %v570_v29, %v564_v28  ;;  %v602_v54 = vmul.f32 %v601_v49, %v599_v35  ;;  %v552_v11 = vld [vmem:[#allocation3 + $0x8] sm:$0xff] }
 0x13c   : > { %v613_v37 = vpop.permute.xlu1 %612  ;;  %v353_v38 = vpop.permute.xlu2 %352  ;;  %v555_v13 = vmul.f32 %v553_v12, %v552_v11 }
 0x13d   : > { %v580_v41 = vadd.f32 %v578_v33, %v572_v32  ;;  %621 = vst.msk [vmem:[#allocation3] sm:$0xff] %vm471_vm9, %v613_v37  ;;  %v643_v37 = vstv %s2253_s25  ;;  %s2342_s25 = sld [smem:[#allocation6 + $0x2e]] }
 0x13e   : > { %355 = vst.msk [vmem:[#allocation2 + $0x22] sm:$0x1] %vm248_vm6, %v353_v38  ;;  %v557_v19 = vadd.f32 %v555_v13, %v531_v14  ;;  %v701_v13 = vstv %s2285_s8  ;;  %s2366_s8 = sld [smem:[#allocation6 + $0x21]] }
 0x13f   : > { %v588_v46 = vadd.f32 %v586_v44, %v580_v41 }
 0x141   : > { %v596_v51 = vadd.f32 %v594_v47, %v588_v46  ;;  %v651_v47 = vstv %s2262_s26  ;;  %s2351_s26 = sld [smem:[#allocation6 + $0x5]] }
 0x142   : > { %1414 = vrot.lane.b32.xlu2 %v2115_v40, %s1947_s4 }
 0x143   : > { %v604_v59 = vadd.f32 %v602_v54, %v596_v51  ;;  %v659_v54 = vstv %s2266_s5  ;;  %s2354_s5 = sld [smem:[#allocation6 + $0xc]] }
 0x144   : > { %v625_v55 = vld [vmem:[#allocation3] sm:$0xff]  ;;  %v381_v43 = vpop.permute.xlu1 %380  ;;  %v2225_v56 = vpop.permute.xlu2 %688 }
 0x145   : > { %v628_v60 = vmul.f32 %v627_v53, %v625_v55  ;;  %383 = vst.msk [vmem:[#allocation2 + $0x24] sm:$0x1] %vm248_vm6, %v381_v43 }
 0x147   : > { %v2233_v62 = vadd.f32 %v628_v60, %v604_v59  ;;  %v667_v60 = vstv %s2274_s6  ;;  %s2357_s6 = sld [smem:[#allocation6 + $0x13]] }
 0x14c   : > { %v687_v0 = vpop.permute.xlu1 %686  ;;  %v395_v3 = vpop.permute.xlu2 %394 }
 0x14d   : > { %397 = vst.msk [vmem:[#allocation2 + $0x25] sm:$0x1] %vm248_vm6, %v395_v3  ;;  %v675_v3 = vstv %s2276_s7  ;;  %s2361_s7 = sld [smem:[#allocation6 + $0x1a]] }
 0x14e   : > { %v543_v8 = vpop.permute.xlu0 %542 }
 0x14f   : > { %549 = vst.msk [vmem:[#allocation3 + $0x10] sm:$0x3f] %vm474_vm10, %v543_v8 }
 0x154   : > { %v423_v57 = vpop.permute.xlu1 %422  ;;  %v2248_v5 = vpop.permute.xlu2 %762 }
 0x155   : > { %425 = vst.msk [vmem:[#allocation2 + $0x27] sm:$0x1] %vm248_vm6, %v423_v57 }
 0x156   : > { %v560_v2 = vld [vmem:[#allocation3 + $0x9] sm:$0xff]  ;;  %v367_v18 = vpop.permute.xlu0 %366 }
 0x157   : > { %v568_v6 = vld [vmem:[#allocation3 + $0xa] sm:$0xff]  ;;  %v563_v7 = vmul.f32 %v561_v17, %v560_v2  ;;  %369 = vst.msk [vmem:[#allocation2 + $0x23] sm:$0x1] %vm248_vm6, %v367_v18 }
 0x158   : > { %v576_v15 = vld [vmem:[#allocation3 + $0xb] sm:$0xff]  ;;  %v571_v24 = vmul.f32 %v569_v23, %v568_v6 }
 0x159   : > { %v584_v10 = vld [vmem:[#allocation3 + $0xc] sm:$0xff]  ;;  %v565_v22 = vadd.f32 %v563_v7, %v557_v19  ;;  %v579_v26 = vmul.f32 %v577_v27, %v576_v15 }
 0x15a   : > { %v592_v12 = vld [vmem:[#allocation3 + $0xd] sm:$0xff]  ;;  %v587_v30 = vmul.f32 %v585_v31, %v584_v10  ;;  %v709_v10 = vstv %s2293_s11  ;;  %s2369_s11 = sld [smem:[#allocation6 + $0x28]] }
 0x15b   : > { %v600_v20 = vld [vmem:[#allocation3 + $0xe] sm:$0xff]  ;;  %v573_v25 = vadd.f32 %v571_v24, %v565_v22  ;;  %v595_v32 = vmul.f32 %v593_v36, %v592_v12  ;;  %v717_v24 = vstv %s2297_s12  ;;  %s2376_s12 = sld [smem:[#allocation6 + $0x6]] }
 0x15c   : > { %622 = vst.msk [vmem:[#allocation3 + $0x8] sm:$0xff] %vm471_vm9, %v2182_v16  ;;  %v2268_v17 = vpop.permute.xlu1 %760  ;;  %v437_v28 = vpop.permute.xlu2 %436  ;;  %v635_v16 = vstv %s2251_s24  ;;  %v603_v45 = vmul.f32 %v601_v49, %v600_v20  ;;  %s2339_s24 = sld [smem:[#allocation6 + $0x27]] }
 0x15d   : > { %v581_v29 = vadd.f32 %v579_v26, %v573_v25  ;;  %439 = vst.msk [vmem:[#allocation2 + $0x28] sm:$0x1] %vm248_vm6, %v437_v28 }
 0x15e   : > { %v617_v23 = vpop.permute.xlu0 %616 }
 0x15f   : > { %v589_v27 = vadd.f32 %v587_v30, %v581_v29  ;;  %623 = vst.msk [vmem:[#allocation3 + $0x10] sm:$0x3f] %vm474_vm10, %v617_v23 }
 0x161   : > { %v597_v44 = vadd.f32 %v595_v32, %v589_v27 }
 0x163   : > { %v626_v33 = vld [vmem:[#allocation3 + $0x8] sm:$0xff]  ;;  %v605_v51 = vadd.f32 %v603_v45, %v597_v44 }
 0x164   : > { %v633_v34 = vld [vmem:[#allocation3 + $0x1] sm:$0xff]  ;;  %v629_v42 = vmul.f32 %v627_v53, %v626_v33  ;;  %v465_v58 = vpop.permute.xlu1 %464  ;;  %v725_v33 = vstv %s2302_s13  ;;  %s2386_s13 = sld [smem:[#allocation6 + $0x14]] }
 0x165   : > { %v641_v35 = vld [vmem:[#allocation3 + $0x2] sm:$0xff]  ;;  %v636_v41 = vmul.f32 %v635_v16, %v633_v34  ;;  %467 = vst.msk [vmem:[#allocation2 + $0x2a] sm:$0x1] %vm248_vm6, %v465_v58 }
 0x166   : > { %v649_v31 = vld [vmem:[#allocation3 + $0x3] sm:$0xff]  ;;  %v644_v50 = vmul.f32 %v643_v37, %v641_v35  ;;  %v631_v59 = vadd.f32 %v629_v42, %v605_v51  ;;  %v650_v63 = vld [vmem:[#allocation3 + $0xb] sm:$0xff] }
 0x167   : > { %v657_v38 = vld [vmem:[#allocation3 + $0x4] sm:$0xff]  ;;  %v638_v36 = vadd.f32 %v636_v41, %v2233_v62  ;;  %v652_v43 = vmul.f32 %v651_v47, %v649_v31  ;;  %v658_v4 = vld [vmem:[#allocation3 + $0xc] sm:$0xff]  ;;  %v653_v18 = vmul.f32 %v651_v47, %v650_v63  ;;  %v733_v47 = vstv %s2305_s14  ;;  %s2390_s14 = sld [smem:[#allocation6 + $0x1b]] }
 0x168   : > { %v665_v39 = vld [vmem:[#allocation3 + $0x5] sm:$0xff]  ;;  %v660_v61 = vmul.f32 %v659_v54, %v657_v38  ;;  %v666_v8 = vld [vmem:[#allocation3 + $0xd] sm:$0xff]  ;;  %v661_v12 = vmul.f32 %v659_v54, %v658_v4 }
 0x169   : > { %v673_v46 = vld [vmem:[#allocation3 + $0x6] sm:$0xff]  ;;  %v646_v55 = vadd.f32 %v644_v50, %v638_v36  ;;  %v674_v9 = vld [vmem:[#allocation3 + $0xe] sm:$0xff]  ;;  %v668_v52 = vmul.f32 %v667_v60, %v665_v39  ;;  %v669_v26 = vmul.f32 %v667_v60, %v666_v8 }
 0x16a   : > { %695 = vst.msk [vmem:[#allocation3] sm:$0xff] %vm471_vm9, %v687_v0  ;;  %v634_v48 = vld [vmem:[#allocation3 + $0x9] sm:$0xff]  ;;  %v691_v0 = vpop.permute.xlu0 %690  ;;  %v676_v6 = vmul.f32 %v675_v3, %v673_v46  ;;  %v677_v35 = vmul.f32 %v675_v3, %v674_v9 }
 0x16b   : > { %v654_v49 = vadd.f32 %v652_v43, %v646_v55  ;;  %v642_v62 = vld [vmem:[#allocation3 + $0xa] sm:$0xff]  ;;  %v637_v53 = vmul.f32 %v635_v16, %v634_v48  ;;  %v741_v55 = vstv %s2308_s16  ;;  %s2394_s16 = sld [smem:[#allocation6 + $0x22]] }
 0x16c   : > { %696 = vst.msk [vmem:[#allocation3 + $0x8] sm:$0xff] %vm471_vm9, %v2225_v56  ;;  %v645_v14 = vmul.f32 %v643_v37, %v642_v62 }
 0x16d   : > { %v662_v11 = vadd.f32 %v660_v61, %v654_v49  ;;  %v639_v57 = vadd.f32 %v637_v53, %v631_v59  ;;  %697 = vst.msk [vmem:[#allocation3 + $0x10] sm:$0x3f] %vm474_vm10, %v691_v0  ;;  %v749_v61 = vstv %s2310_s17  ;;  %v775_v0 = vstv %s2315_s19  ;;  %s2399_s17 = sld [smem:[#allocation6 + $0x29]] }
 0x16e   : > { %s2407_s19 = sld [smem:[#allocation6 + $0x31]] }
 0x16f   : > { %v670_v2 = vadd.f32 %v668_v52, %v662_v11  ;;  %v647_v15 = vadd.f32 %v645_v14, %v639_v57 }
 0x171   : > { %v699_v1 = vld [vmem:[#allocation3] sm:$0xff]  ;;  %v678_v19 = vadd.f32 %v676_v6, %v670_v2  ;;  %v655_v56 = vadd.f32 %v653_v18, %v647_v15 }
 0x172   : > { %v702_v7 = vmul.f32 %v701_v13, %v699_v1  ;;  %v409_v22 = vpop.permute.xlu0 %408 }
 0x173   : > { %v663_v25 = vadd.f32 %v661_v12, %v655_v56  ;;  %v700_v28 = vld [vmem:[#allocation3 + $0x8] sm:$0xff]  ;;  %411 = vst.msk [vmem:[#allocation2 + $0x26] sm:$0x1] %vm248_vm6, %v409_v22  ;;  %v791_v12 = vstv %s2325_s21  ;;  %s2439_s21 = sld [smem:[#allocation6 + $0x54]] }
 0x174   : > { %v704_v20 = vadd.f32 %v702_v7, %v678_v19  ;;  %v707_v29 = vld [vmem:[#allocation3 + $0x1] sm:$0xff]  ;;  %v708_v31 = vld [vmem:[#allocation3 + $0x9] sm:$0xff]  ;;  %v703_v50 = vmul.f32 %v701_v13, %v700_v28  ;;  %v783_v13 = vstv %s2320_s20  ;;  %v835_v19 = vpop.permute.xlu2 %834  ;;  %s2433_s20 = sld [smem:[#allocation6 + $0x46]] }
 0x175   : > { %v715_v30 = vld [vmem:[#allocation3 + $0x2] sm:$0xff]  ;;  %v710_v16 = vmul.f32 %v709_v10, %v707_v29  ;;  %v671_v34 = vadd.f32 %v669_v26, %v663_v25  ;;  %v716_v38 = vld [vmem:[#allocation3 + $0xa] sm:$0xff]  ;;  %v711_v58 = vmul.f32 %v709_v10, %v708_v31 }
 0x176   : > { %v723_v23 = vld [vmem:[#allocation3 + $0x3] sm:$0xff]  ;;  %v718_v41 = vmul.f32 %v717_v24, %v715_v30  ;;  %v724_v44 = vld [vmem:[#allocation3 + $0xb] sm:$0xff]  ;;  %v719_v62 = vmul.f32 %v717_v24, %v716_v38 }
 0x177   : > { %v731_v27 = vld [vmem:[#allocation3 + $0x4] sm:$0xff]  ;;  %v712_v39 = vadd.f32 %v710_v16, %v704_v20  ;;  %v732_v45 = vld [vmem:[#allocation3 + $0xc] sm:$0xff]  ;;  %v679_v36 = vadd.f32 %v677_v35, %v671_v34  ;;  %v726_v54 = vmul.f32 %v725_v33, %v723_v23  ;;  %v727_v4 = vmul.f32 %v725_v33, %v724_v44  ;;  %v839_v23 = vpop.permute.xlu1 %838 }
 0x178   : > { %v739_v32 = vld [vmem:[#allocation3 + $0x5] sm:$0xff]  ;;  %v740_v46 = vld [vmem:[#allocation3 + $0xd] sm:$0xff]  ;;  %v734_v59 = vmul.f32 %v733_v47, %v731_v27  ;;  %v735_v52 = vmul.f32 %v733_v47, %v732_v45  ;;  %v799_v27 = vstv %s2330_s22  ;;  %s2442_s22 = sld [smem:[#allocation6 + $0x5b]] }
 0x179   : > { %v747_v37 = vld [vmem:[#allocation3 + $0x6] sm:$0xff]  ;;  %v748_v51 = vld [vmem:[#allocation3 + $0xe] sm:$0xff]  ;;  %v720_v42 = vadd.f32 %v718_v41, %v712_v39  ;;  %v705_v43 = vadd.f32 %v703_v50, %v679_v36  ;;  %v742_v63 = vmul.f32 %v741_v55, %v739_v32  ;;  %v743_v10 = vmul.f32 %v741_v55, %v740_v46 }
 0x17a   : > { %769 = vst.msk [vmem:[#allocation3] sm:$0xff] %vm471_vm9, %v2268_v17  ;;  %v2327_v60 = vld [vmem:[#allocation2 + $0x20] sm:$0xff]  ;;  %v765_v49 = vpop.permute.xlu0 %764  ;;  %v750_v9 = vmul.f32 %v749_v61, %v747_v37  ;;  %v751_v16 = vmul.f32 %v749_v61, %v748_v51  ;;  %v807_v39 = vstv %s2336_s23  ;;  %v815_v46 = vstv %s2339_s24  ;;  %s2446_s23 = sld [smem:[#allocation6 + $0x32]] }
 0x17b   : > { %770 = vst.msk [vmem:[#allocation3 + $0x8] sm:$0xff] %vm471_vm9, %v2248_v5  ;;  %v728_v17 = vadd.f32 %v726_v54, %v720_v42  ;;  %v713_v48 = vadd.f32 %v711_v58, %v705_v43  ;;  %1046 = vrot.lane.b32.xlu0 %v2327_v60, %s1942_s27  ;;  %v823_v43 = vstv %s2342_s25  ;;  %s2448_s24 = sld [smem:[#allocation6 + $0x39]] }
 0x17c   : > { %771 = vst.msk [vmem:[#allocation3 + $0x10] sm:$0x3f] %vm474_vm10, %v765_v49  ;;  %s2451_s25 = sld [smem:[#allocation6 + $0x40]] }
 0x17d   : > { %v736_v5 = vadd.f32 %v734_v59, %v728_v17  ;;  %v721_v53 = vadd.f32 %v719_v62, %v713_v48 }
 0x17f   : > { %v744_v8 = vadd.f32 %v742_v63, %v736_v5  ;;  %v729_v11 = vadd.f32 %v727_v4, %v721_v53 }
 0x181   : > { %v773_v3 = vld [vmem:[#allocation3] sm:$0xff]  ;;  %v752_v14 = vadd.f32 %v750_v9, %v744_v8  ;;  %v737_v7 = vadd.f32 %v735_v52, %v729_v11  ;;  %v857_v8 = vstv %s2354_s5  ;;  %s2459_s5 = sld [smem:[#allocation6 + $0x4e]] }
 0x182   : > { %v781_v1 = vld [vmem:[#allocation3 + $0x1] sm:$0xff]  ;;  %v776_v2 = vmul.f32 %v775_v0, %v773_v3  ;;  %v451_v29 = vpop.permute.xlu0 %450 }
 0x183   : > { %v789_v57 = vld [vmem:[#allocation3 + $0x2] sm:$0xff]  ;;  %v784_v24 = vmul.f32 %v783_v13, %v781_v1  ;;  %v790_v26 = vld [vmem:[#allocation3 + $0xa] sm:$0xff]  ;;  %v745_v30 = vadd.f32 %v743_v10, %v737_v7  ;;  %453 = vst.msk [vmem:[#allocation2 + $0x29] sm:$0x1] %vm248_vm6, %v451_v29  ;;  %1120 = vrot.lane.b32.xlu0 %v2327_v60, %s1943_s28  ;;  %vm1532_vm6 = vcmp.lt.s32.totalorder %v209_v21, 32 }
 0x184   : > { %v797_v6 = vld [vmem:[#allocation3 + $0x3] sm:$0xff]  ;;  %v778_v22 = vadd.f32 %v776_v2, %v752_v14  ;;  %v798_v28 = vld [vmem:[#allocation3 + $0xb] sm:$0xff]  ;;  %v792_v37 = vmul.f32 %v791_v12, %v789_v57  ;;  %v793_v42 = vmul.f32 %v791_v12, %v790_v26  ;;  %v909_v26 = vpop.permute.xlu2 %908  ;;  %vm1533_vm7 = vmand %vm1531_vm5, %vm1532_vm6  ;;  %vm1576_vm5 = vcmp.ge.s32.totalorder %v209_v21, 96 }
 0x185   : > { %v805_v15 = vld [vmem:[#allocation3 + $0x4] sm:$0xff]  ;;  %v806_v32 = vld [vmem:[#allocation3 + $0xc] sm:$0xff]  ;;  %v753_v31 = vadd.f32 %v751_v16, %v745_v30  ;;  %v800_v44 = vmul.f32 %v799_v27, %v797_v6  ;;  %v801_v49 = vmul.f32 %v799_v27, %v798_v28  ;;  %vm1577_vm6 = vcmp.lt.s32.totalorder %v209_v21, 112 }
 0x186   : > { %v813_v18 = vld [vmem:[#allocation3 + $0x5] sm:$0xff]  ;;  %v814_v33 = vld [vmem:[#allocation3 + $0xd] sm:$0xff]  ;;  %v786_v35 = vadd.f32 %v784_v24, %v778_v22  ;;  %v808_v50 = vmul.f32 %v807_v39, %v805_v15  ;;  %v809_v5 = vmul.f32 %v807_v39, %v806_v32 }
 0x187   : > { %v774_v56 = vld [vmem:[#allocation3 + $0x8] sm:$0xff]  ;;  %v816_v55 = vmul.f32 %v815_v46, %v813_v18  ;;  %v817_v4 = vmul.f32 %v815_v46, %v814_v33  ;;  %v881_v33 = vstv %s2366_s8  ;;  %s2470_s8 = sld [smem:[#allocation6 + $0x33]] }
 0x188   : > { %v821_v20 = vld [vmem:[#allocation3 + $0x6] sm:$0xff]  ;;  %v822_v34 = vld [vmem:[#allocation3 + $0xe] sm:$0xff]  ;;  %v777_v38 = vmul.f32 %v775_v0, %v774_v56  ;;  %v794_v41 = vadd.f32 %v792_v37, %v786_v35  ;;  %v849_v0 = vstv %s2351_s26  ;;  %v913_v35 = vpop.permute.xlu1 %912  ;;  %s2455_s26 = sld [smem:[#allocation6 + $0x47]] }
 0x189   : > { %843 = vst.msk [vmem:[#allocation3] sm:$0xff] %vm471_vm9, %v835_v19  ;;  %v782_v25 = vld [vmem:[#allocation3 + $0x9] sm:$0xff]  ;;  %v824_v48 = vmul.f32 %v823_v43, %v821_v20  ;;  %v825_v52 = vmul.f32 %v823_v43, %v822_v34  ;;  %v873_v20 = vstv %s2361_s7  ;;  %v923_v43 = vstv %s2376_s12  ;;  %s2466_s7 = sld [smem:[#allocation6 + $0x5c]] }
 0x18a   : > { %845 = vst.msk [vmem:[#allocation3 + $0x10] sm:$0x3f] %vm474_vm10, %v839_v23  ;;  %v779_v45 = vadd.f32 %v777_v38, %v753_v31  ;;  %v785_v47 = vmul.f32 %v783_v13, %v782_v25  ;;  %v802_v36 = vadd.f32 %v800_v44, %v794_v41  ;;  %v837_v58 = vpop.permute.xlu0 %836  ;;  %v1040_v17 = vld [vmem:[#allocation2 + $0x28] sm:$0x3f]  ;;  %v865_v13 = vstv %s2357_s6  ;;  %s2463_s6 = sld [smem:[#allocation6 + $0x55]] }
 0x18b   : > { %844 = vst.msk [vmem:[#allocation3 + $0x8] sm:$0xff] %vm471_vm9, %v837_v58  ;;  %1048 = vrot.lane.b32.xlu1 %v1040_v17, %s1942_s27  ;;  %1194 = vrot.lane.b32.xlu0 %v2327_v60, %s1944_s29  ;;  %v1114_v1 = vld [vmem:[#allocation2 + $0x28] sm:$0x3f]  ;;  %s2372_s27 = sld [smem:[#allocation6 + $0x2f]]  ;;  %v889_v41 = vstv %s2369_s11 }
 0x18c   : > { %v787_v51 = vadd.f32 %v785_v47, %v779_v45  ;;  %v810_v54 = vadd.f32 %v808_v50, %v802_v36  ;;  %v1188_v36 = vld [vmem:[#allocation2 + $0x28] sm:$0x3f]  ;;  %s2472_s11 = sld [smem:[#allocation6 + $0x3a]] }
 0x18d   : > { %s2478_s12 = sld [smem:[#allocation6 + $0x48]] }
 0x18e   : > { %v795_v59 = vadd.f32 %v793_v42, %v787_v51  ;;  %v818_v61 = vadd.f32 %v816_v55, %v810_v54 }
 0x190   : > { %v803_v62 = vadd.f32 %v801_v49, %v795_v59  ;;  %v847_v63 = vld [vmem:[#allocation3] sm:$0xff]  ;;  %v826_v3 = vadd.f32 %v824_v48, %v818_v61 }
 0x191   : > { %v850_v9 = vmul.f32 %v849_v0, %v847_v63  ;;  %v897_v50 = vstv %s2372_s27  ;;  %s2475_s27 = sld [smem:[#allocation6 + $0x41]] }
 0x192   : > { %v811_v53 = vadd.f32 %v809_v5, %v803_v62  ;;  %v848_v57 = vld [vmem:[#allocation3 + $0x8] sm:$0xff]  ;;  %v911_v12 = vpop.permute.xlu0 %910 }
 0x193   : > { %v855_v14 = vld [vmem:[#allocation3 + $0x1] sm:$0xff]  ;;  %v856_v2 = vld [vmem:[#allocation3 + $0x9] sm:$0xff]  ;;  %v852_v6 = vadd.f32 %v850_v9, %v826_v3  ;;  %1122 = vrot.lane.b32.xlu1 %v1114_v1, %s1943_s28  ;;  %v851_v18 = vmul.f32 %v849_v0, %v848_v57  ;;  %1268 = vrot.lane.b32.xlu0 %v2327_v60, %s1945_s30  ;;  %s2381_s28 = sld [smem:[#allocation6 + $0xd]] }
 0x194   : > { %v819_v11 = vadd.f32 %v817_v4, %v811_v53  ;;  %v858_v19 = vmul.f32 %v857_v8, %v855_v14  ;;  %v863_v7 = vld [vmem:[#allocation3 + $0x2] sm:$0xff]  ;;  %v864_v10 = vld [vmem:[#allocation3 + $0xa] sm:$0xff]  ;;  %v859_v29 = vmul.f32 %v857_v8, %v856_v2 }
 0x195   : > { %v871_v56 = vld [vmem:[#allocation3 + $0x3] sm:$0xff]  ;;  %v872_v22 = vld [vmem:[#allocation3 + $0xb] sm:$0xff]  ;;  %v866_v16 = vmul.f32 %v865_v13, %v863_v7  ;;  %v867_v31 = vmul.f32 %v865_v13, %v864_v10  ;;  %v1262_v10 = vld [vmem:[#allocation2 + $0x28] sm:$0x3f] }
 0x196   : > { %v827_v15 = vadd.f32 %v825_v52, %v819_v11  ;;  %v879_v24 = vld [vmem:[#allocation3 + $0x4] sm:$0xff]  ;;  %v880_v25 = vld [vmem:[#allocation3 + $0xc] sm:$0xff]  ;;  %v860_v30 = vadd.f32 %v858_v19, %v852_v6  ;;  %v874_v39 = vmul.f32 %v873_v20, %v871_v56  ;;  %v875_v45 = vmul.f32 %v873_v20, %v872_v22  ;;  %v978_v20 = vld [vmem:[#allocation2 + $0x28] sm:$0x3f] }
 0x197   : > { %v887_v23 = vld [vmem:[#allocation3 + $0x5] sm:$0xff]  ;;  %v888_v27 = vld [vmem:[#allocation3 + $0xd] sm:$0xff]  ;;  %v882_v47 = vmul.f32 %v881_v33, %v879_v24  ;;  %v883_v42 = vmul.f32 %v881_v33, %v880_v25  ;;  %v939_v52 = vstv %s2386_s13  ;;  %v947_v56 = vstv %s2390_s14  ;;  %v1336_v33 = vld [vmem:[#allocation2 + $0x28] sm:$0x3f]  ;;  %s2485_s13 = sld [smem:[#allocation6 + $0x56]] }
 0x198   : > { %v853_v28 = vadd.f32 %v851_v18, %v827_v15  ;;  %v895_v32 = vld [vmem:[#allocation3 + $0x6] sm:$0xff]  ;;  %v896_v34 = vld [vmem:[#allocation3 + $0xe] sm:$0xff]  ;;  %v868_v38 = vadd.f32 %v866_v16, %v860_v30  ;;  %v890_v55 = vmul.f32 %v889_v41, %v887_v23  ;;  %v891_v17 = vmul.f32 %v889_v41, %v888_v27  ;;  %s2488_s14 = sld [smem:[#allocation6 + $0x5d]] }
 0x199   : > { %917 = vst.msk [vmem:[#allocation3] sm:$0xff] %vm471_vm9, %v909_v26  ;;  %v898_v49 = vmul.f32 %v897_v50, %v895_v32  ;;  %v931_v48 = vstv %s2381_s28  ;;  %v899_v3 = vmul.f32 %v897_v50, %v896_v34  ;;  %v955_v26 = vstv %s2394_s16  ;;  %s2482_s28 = sld [smem:[#allocation6 + $0x4f]] }
 0x19a   : > { %v861_v37 = vadd.f32 %v859_v29, %v853_v28  ;;  %918 = vst.msk [vmem:[#allocation3 + $0x8] sm:$0xff] %vm471_vm9, %v911_v12  ;;  %v876_v46 = vadd.f32 %v874_v39, %v868_v38  ;;  %v963_v30 = vstv %s2399_s17  ;;  %v985_v34 = vstv %s2407_s19  ;;  %s2491_s16 = sld [smem:[#allocation6 + $0x34]] }
 0x19b   : > { %919 = vst.msk [vmem:[#allocation3 + $0x10] sm:$0x3f] %vm474_vm10, %v913_v35  ;;  %1196 = vrot.lane.b32.xlu1 %v1188_v36, %s1944_s29  ;;  %1342 = vrot.lane.b32.xlu0 %v2327_v60, %s1946_s3  ;;  %s2402_s29 = sld [smem:[#allocation6 + $0x30]] }
 0x19c   : > { %v869_v44 = vadd.f32 %v867_v31, %v861_v37  ;;  %v884_v54 = vadd.f32 %v882_v47, %v876_v46  ;;  %s2495_s17 = sld [smem:[#allocation6 + $0x3b]] }
 0x19d   : > { %s2503_s19 = sld [smem:[#allocation6 + $0x49]] }
 0x19e   : > { %v877_v51 = vadd.f32 %v875_v45, %v869_v44  ;;  %v892_v59 = vadd.f32 %v890_v55, %v884_v54  ;;  %v1045_v44 = vpop.permute.xlu2 %1044 }
 0x1a0   : > { %v885_v58 = vadd.f32 %v883_v42, %v877_v51  ;;  %v921_v61 = vld [vmem:[#allocation3] sm:$0xff]  ;;  %v900_v53 = vadd.f32 %v898_v49, %v892_v59  ;;  %v1410_v51 = vld [vmem:[#allocation2 + $0x28] sm:$0x3f] }
 0x1a1   : > { %v922_v62 = vld [vmem:[#allocation3 + $0x8] sm:$0xff]  ;;  %v924_v4 = vmul.f32 %v923_v43, %v921_v61  ;;  %v971_v23 = vstv %s2402_s29  ;;  %s2499_s29 = sld [smem:[#allocation6 + $0x42]] }
 0x1a2   : > { %v929_v5 = vld [vmem:[#allocation3 + $0x1] sm:$0xff]  ;;  %v893_v0 = vadd.f32 %v891_v17, %v885_v58  ;;  %v930_v8 = vld [vmem:[#allocation3 + $0x9] sm:$0xff]  ;;  %v925_v2 = vmul.f32 %v923_v43, %v922_v62 }
 0x1a3   : > { %v937_v63 = vld [vmem:[#allocation3 + $0x2] sm:$0xff]  ;;  %v938_v9 = vld [vmem:[#allocation3 + $0xa] sm:$0xff]  ;;  %v926_v6 = vadd.f32 %v924_v4, %v900_v53  ;;  %v932_v15 = vmul.f32 %v931_v48, %v929_v5  ;;  %1270 = vrot.lane.b32.xlu1 %v1262_v10, %s1945_s30  ;;  %1416 = vrot.lane.b32.xlu0 %v2327_v60, %s1947_s4  ;;  %s2426_s30 = sld [smem:[#allocation6 + $0x38]]  ;;  %v933_v42 = vmul.f32 %v931_v48, %v930_v8 }
 0x1a4   : > { %v945_v11 = vld [vmem:[#allocation3 + $0x3] sm:$0xff]  ;;  %v946_v1 = vld [vmem:[#allocation3 + $0xb] sm:$0xff]  ;;  %v901_v14 = vadd.f32 %v899_v3, %v893_v0  ;;  %v940_v25 = vmul.f32 %v939_v52, %v937_v63  ;;  %v941_v55 = vmul.f32 %v939_v52, %v938_v9  ;;  %v1009_v0 = vstv %s2433_s20  ;;  %s2512_s20 = sld [smem:[#allocation6 + $0x5e]] }
 0x1a5   : > { %v953_v13 = vld [vmem:[#allocation3 + $0x4] sm:$0xff]  ;;  %v954_v57 = vld [vmem:[#allocation3 + $0xc] sm:$0xff]  ;;  %v934_v24 = vadd.f32 %v932_v15, %v926_v6  ;;  %v948_v29 = vmul.f32 %v947_v56, %v945_v11  ;;  %v949_v17 = vmul.f32 %v947_v56, %v946_v1 }
 0x1a6   : > { %v961_v18 = vld [vmem:[#allocation3 + $0x5] sm:$0xff]  ;;  %v962_v19 = vld [vmem:[#allocation3 + $0xd] sm:$0xff]  ;;  %v927_v22 = vadd.f32 %v925_v2, %v901_v14  ;;  %v956_v16 = vmul.f32 %v955_v26, %v953_v13  ;;  %v957_v62 = vmul.f32 %v955_v26, %v954_v57  ;;  %v1025_v14 = vstv %s2439_s21  ;;  %s2524_s21 = sld [smem:[#allocation6 + $0x3c]] }
 0x1a7   : > { %v969_v7 = vld [vmem:[#allocation3 + $0x6] sm:$0xff]  ;;  %v2409_v12 = vld [vmem:[#allocation3 + $0xe] sm:$0xff]  ;;  %v942_v28 = vadd.f32 %v940_v25, %v934_v24  ;;  %v964_v32 = vmul.f32 %v963_v30, %v961_v18  ;;  %v965_v3 = vmul.f32 %v963_v30, %v962_v19  ;;  %v1059_v30 = vstv %s2446_s23  ;;  %s2531_s23 = sld [smem:[#allocation6 + $0x4a]] }
 0x1a8   : > { %979 = vst.msk [vmem:[#allocation3] sm:$0xff] %vm471_vm9, %v2115_v40  ;;  %v972_v31 = vmul.f32 %v971_v23, %v969_v7  ;;  %v935_v54 = vadd.f32 %v933_v42, %v927_v22  ;;  %v973_v11 = vmul.f32 %v971_v23, %v2409_v12  ;;  %v1033_v12 = vstv %s2442_s22  ;;  %s2528_s22 = sld [smem:[#allocation6 + $0x43]] }
 0x1a9   : > { %980 = vst.msk [vmem:[#allocation3 + $0x8] sm:$0xff] %vm471_vm9, %v2327_v60  ;;  %v950_v40 = vadd.f32 %v948_v29, %v942_v28  ;;  %v993_v58 = vstv %s2426_s30  ;;  %s2506_s30 = sld [smem:[#allocation6 + $0x50]] }
 0x1aa   : > { %981 = vst.msk [vmem:[#allocation3 + $0x10] sm:$0x3f] %vm474_vm10, %v978_v20  ;;  %v943_v43 = vadd.f32 %v941_v55, %v935_v54 }
 0x1ab   : > { %v958_v27 = vadd.f32 %v956_v16, %v950_v40  ;;  %1344 = vrot.lane.b32.xlu1 %v1336_v33, %s1946_s3  ;;  %s2430_s3 = sld [smem:[#allocation6 + $0x3f]] }
 0x1ac   : > { %v951_v59 = vadd.f32 %v949_v17, %v943_v43  ;;  %v1091_v17 = vstv %s2459_s5  ;;  %s2550_s5 = sld [smem:[#allocation6 + $0x36]] }
 0x1ad   : > { %v966_v37 = vadd.f32 %v964_v32, %v958_v27  ;;  %v1067_v27 = vstv %s2448_s24  ;;  %s2534_s24 = sld [smem:[#allocation6 + $0x51]] }
 0x1ae   : > { %v959_v48 = vadd.f32 %v957_v62, %v951_v59 }
 0x1af   : > { %v983_v35 = vld [vmem:[#allocation3] sm:$0xff]  ;;  %v974_v45 = vadd.f32 %v972_v31, %v966_v37  ;;  %v1075_v37 = vstv %s2451_s25  ;;  %s2537_s25 = sld [smem:[#allocation6 + $0x58]] }
 0x1b0   : > { %v991_v38 = vld [vmem:[#allocation3 + $0x1] sm:$0xff]  ;;  %v986_v46 = vmul.f32 %v985_v34, %v983_v35  ;;  %v967_v4 = vadd.f32 %v965_v3, %v959_v48  ;;  %v1099_v48 = vstv %s2463_s6  ;;  %s2555_s6 = sld [smem:[#allocation6 + $0x3d]] }
 0x1b1   : > { %v999_v39 = vld [vmem:[#allocation3 + $0x2] sm:$0xff]  ;;  %v994_v49 = vmul.f32 %v993_v58, %v991_v38  ;;  %v1001_v61 = vstv %s2430_s3  ;;  %v1000_v19 = vld [vmem:[#allocation3 + $0xa] sm:$0xff]  ;;  %s2509_s3 = sld [smem:[#allocation6 + $0x57]] }
 0x1b2   : > { %v1007_v41 = vld [vmem:[#allocation3 + $0x3] sm:$0xff]  ;;  %v988_v50 = vadd.f32 %v986_v46, %v974_v45  ;;  %v1002_v63 = vmul.f32 %v1001_v61, %v999_v39  ;;  %v975_v13 = vadd.f32 %v973_v11, %v967_v4  ;;  %v1008_v7 = vld [vmem:[#allocation3 + $0xb] sm:$0xff]  ;;  %v1003_v16 = vmul.f32 %v1001_v61, %v1000_v19  ;;  %v1119_v45 = vpop.permute.xlu2 %1118 }
 0x1b3   : > { %v1015_v60 = vld [vmem:[#allocation3 + $0x4] sm:$0xff]  ;;  %1418 = vrot.lane.b32.xlu1 %v1410_v51, %s1947_s4  ;;  %s2436_s4 = sld [smem:[#allocation6 + $0x4d]]  ;;  %v1010_v8 = vmul.f32 %v1009_v0, %v1007_v41  ;;  %v1016_v20 = vld [vmem:[#allocation3 + $0xc] sm:$0xff]  ;;  %v1011_v31 = vmul.f32 %v1009_v0, %v1008_v7  ;;  %v1083_v51 = vstv %s2455_s26 }
 0x1b4   : > { %v1023_v47 = vld [vmem:[#allocation3 + $0x5] sm:$0xff]  ;;  %v996_v5 = vadd.f32 %v994_v49, %v988_v50  ;;  %v1024_v22 = vld [vmem:[#allocation3 + $0xd] sm:$0xff]  ;;  %s2543_s26 = sld [smem:[#allocation6 + $0x5f]] }
 0x1b5   : > { %v1031_v36 = vld [vmem:[#allocation3 + $0x6] sm:$0xff]  ;;  %v1026_v10 = vmul.f32 %v1025_v14, %v1023_v47  ;;  %v1032_v24 = vld [vmem:[#allocation3 + $0xe] sm:$0xff]  ;;  %v1027_v59 = vmul.f32 %v1025_v14, %v1024_v22 }
 0x1b6   : > { %1053 = vst.msk [vmem:[#allocation3] sm:$0xff] %vm471_vm9, %v1045_v44  ;;  %v1004_v53 = vadd.f32 %v1002_v63, %v996_v5  ;;  %v984_v1 = vld [vmem:[#allocation3 + $0x8] sm:$0xff]  ;;  %v1034_v29 = vmul.f32 %v1033_v12, %v1031_v36  ;;  %v1035_v63 = vmul.f32 %v1033_v12, %v1032_v24 }
 0x1b7   : > { %v987_v2 = vmul.f32 %v985_v34, %v984_v1  ;;  %v992_v15 = vld [vmem:[#allocation3 + $0x9] sm:$0xff] }
 0x1b8   : > { %v1012_v52 = vadd.f32 %v1010_v8, %v1004_v53  ;;  %v995_v25 = vmul.f32 %v993_v58, %v992_v15 }
 0x1b9   : > { %v1017_v9 = vstv %s2436_s4  ;;  %v989_v18 = vadd.f32 %v987_v2, %v975_v13  ;;  %v1107_v13 = vstv %s2466_s7  ;;  %s2517_s4 = sld [smem:[#allocation6 + $0x35]] }
 0x1ba   : > { %v1018_v57 = vmul.f32 %v1017_v9, %v1015_v60  ;;  %v1019_v42 = vmul.f32 %v1017_v9, %v1016_v20  ;;  %s2558_s7 = sld [smem:[#allocation6 + $0x44]] }
 0x1bb   : > { %v997_v28 = vadd.f32 %v995_v25, %v989_v18  ;;  %v1141_v25 = vstv %s2472_s11  ;;  %s2564_s11 = sld [smem:[#allocation6 + $0x52]] }
 0x1bc   : > { %v1020_v6 = vadd.f32 %v1018_v57, %v1012_v52 }
 0x1bd   : > { %v1057_v40 = vld [vmem:[#allocation3] sm:$0xff]  ;;  %v1005_v32 = vadd.f32 %v1003_v16, %v997_v28 }
 0x1be   : > { %v1028_v26 = vadd.f32 %v1026_v10, %v1020_v6  ;;  %v1060_v33 = vmul.f32 %v1059_v30, %v1057_v40 }
 0x1bf   : > { %v1013_v47 = vadd.f32 %v1011_v31, %v1005_v32 }
 0x1c0   : > { %v1036_v23 = vadd.f32 %v1034_v29, %v1028_v26 }
 0x1c1   : > { %v1021_v55 = vadd.f32 %v1019_v42, %v1013_v47 }
 0x1c2   : > { %v1062_v38 = vadd.f32 %v1060_v33, %v1036_v23 }
 0x1c3   : > { %v1029_v62 = vadd.f32 %v1027_v59, %v1021_v55  ;;  %v1165_v55 = vstv %s2482_s28  ;;  %s2578_s28 = sld [smem:[#allocation6 + $0x37]] }
 0x1c5   : > { %v1037_v53 = vadd.f32 %v1035_v63, %v1029_v62  ;;  %v1173_v62 = vstv %s2485_s13  ;;  %s2581_s13 = sld [smem:[#allocation6 + $0x3e]] }
 0x1ed   : > { %v1047_v56 = vpop.permute.xlu0 %1046 }
 0x1ee   : > { %1054 = vst.msk [vmem:[#allocation3 + $0x8] sm:$0xff] %vm471_vm9, %v1047_v56  ;;  %v1133_v56 = vstv %s2470_s8  ;;  %s2561_s8 = sld [smem:[#allocation6 + $0x4b]] }
 0x1f5   : > { %v1065_v34 = vld [vmem:[#allocation3 + $0x1] sm:$0xff]  ;;  %v1121_v1 = vpop.permute.xlu0 %1120 }
 0x1f6   : > { %v1073_v35 = vld [vmem:[#allocation3 + $0x2] sm:$0xff]  ;;  %v1068_v39 = vmul.f32 %v1067_v27, %v1065_v34 }
 0x1f7   : > { %v1081_v41 = vld [vmem:[#allocation3 + $0x3] sm:$0xff]  ;;  %v1076_v50 = vmul.f32 %v1075_v37, %v1073_v35 }
 0x1f8   : > { %v1089_v60 = vld [vmem:[#allocation3 + $0x4] sm:$0xff]  ;;  %v1070_v36 = vadd.f32 %v1068_v39, %v1062_v38  ;;  %v1084_v58 = vmul.f32 %v1083_v51, %v1081_v41  ;;  %v1193_v38 = vpop.permute.xlu2 %1192  ;;  %v1157_v39 = vstv %s2478_s12  ;;  %s2573_s12 = sld [smem:[#allocation6 + $0x60]] }
 0x1f9   : > { %v1097_v44 = vld [vmem:[#allocation3 + $0x5] sm:$0xff]  ;;  %v1092_v5 = vmul.f32 %v1091_v17, %v1089_v60 }
 0x1fa   : > { %v1105_v46 = vld [vmem:[#allocation3 + $0x6] sm:$0xff]  ;;  %v1078_v54 = vadd.f32 %v1076_v50, %v1070_v36  ;;  %v1100_v11 = vmul.f32 %v1099_v48, %v1097_v44 }
 0x1fb   : > { %1127 = vst.msk [vmem:[#allocation3] sm:$0xff] %vm471_vm9, %v1119_v45  ;;  %v1058_v49 = vld [vmem:[#allocation3 + $0x8] sm:$0xff]  ;;  %v1108_v10 = vmul.f32 %v1107_v13, %v1105_v46 }
 0x1fc   : > { %v1086_v61 = vadd.f32 %v1084_v58, %v1078_v54  ;;  %v1061_v0 = vmul.f32 %v1059_v30, %v1058_v49  ;;  %v1149_v30 = vstv %s2475_s27  ;;  %s2567_s27 = sld [smem:[#allocation6 + $0x59]] }
 0x1fd   : > { %v1049_v43 = vpop.permute.xlu1 %1048 }
 0x1fe   : > { %1055 = vst.msk [vmem:[#allocation3 + $0x10] sm:$0x3f] %vm474_vm10, %v1049_v43  ;;  %v1094_v3 = vadd.f32 %v1092_v5, %v1086_v61  ;;  %v1063_v57 = vadd.f32 %v1061_v0, %v1037_v53 }
 0x200   : > { %v1102_v18 = vadd.f32 %v1100_v11, %v1094_v3  ;;  %v1181_v3 = vstv %s2488_s14  ;;  %v1207_v11 = vstv %s2491_s16  ;;  %s2584_s14 = sld [smem:[#allocation6 + $0x45]] }
 0x201   : > { %s2587_s16 = sld [smem:[#allocation6 + $0x4c]] }
 0x202   : > { %v1131_v22 = vld [vmem:[#allocation3] sm:$0xff]  ;;  %v1110_v24 = vadd.f32 %v1108_v10, %v1102_v18  ;;  %v1215_v18 = vstv %s2495_s17  ;;  %s2590_s17 = sld [smem:[#allocation6 + $0x53]] }
 0x203   : > { %v1134_v29 = vmul.f32 %v1133_v56, %v1131_v22 }
 0x205   : > { %v1066_v4 = vld [vmem:[#allocation3 + $0x9] sm:$0xff]  ;;  %v1123_v52 = vpop.permute.xlu1 %1122  ;;  %v1136_v33 = vadd.f32 %v1134_v29, %v1110_v24 }
 0x206   : > { %v1074_v8 = vld [vmem:[#allocation3 + $0xa] sm:$0xff]  ;;  %v1069_v14 = vmul.f32 %v1067_v27, %v1066_v4 }
 0x207   : > { %v1082_v9 = vld [vmem:[#allocation3 + $0xb] sm:$0xff]  ;;  %v1077_v7 = vmul.f32 %v1075_v37, %v1074_v8 }
 0x208   : > { %v1090_v2 = vld [vmem:[#allocation3 + $0xc] sm:$0xff]  ;;  %v1071_v19 = vadd.f32 %v1069_v14, %v1063_v57  ;;  %v1085_v20 = vmul.f32 %v1083_v51, %v1082_v9 }
 0x209   : > { %v1098_v6 = vld [vmem:[#allocation3 + $0xd] sm:$0xff]  ;;  %v1093_v28 = vmul.f32 %v1091_v17, %v1090_v2  ;;  %v1195_v17 = vpop.permute.xlu0 %1194 }
 0x20a   : > { %v1106_v15 = vld [vmem:[#allocation3 + $0xe] sm:$0xff]  ;;  %v1079_v12 = vadd.f32 %v1077_v7, %v1071_v19  ;;  %v1101_v16 = vmul.f32 %v1099_v48, %v1098_v6 }
 0x20b   : > { %1128 = vst.msk [vmem:[#allocation3 + $0x8] sm:$0xff] %vm471_vm9, %v1121_v1  ;;  %v1109_v60 = vmul.f32 %v1107_v13, %v1106_v15 }
 0x20c   : > { %1129 = vst.msk [vmem:[#allocation3 + $0x10] sm:$0x3f] %vm474_vm10, %v1123_v52  ;;  %v1087_v26 = vadd.f32 %v1085_v20, %v1079_v12 }
 0x20d   : > { %v1197_v54 = vpop.permute.xlu1 %1196 }
 0x20e   : > { %v1095_v40 = vadd.f32 %v1093_v28, %v1087_v26  ;;  %v1223_v26 = vstv %s2499_s29  ;;  %s2593_s29 = sld [smem:[#allocation6 + $0x5a]] }
 0x210   : > { %v1103_v41 = vadd.f32 %v1101_v16, %v1095_v40  ;;  %v1267_v40 = vpop.permute.xlu2 %1266 }
 0x212   : > { %v1132_v23 = vld [vmem:[#allocation3 + $0x8] sm:$0xff]  ;;  %v1111_v43 = vadd.f32 %v1109_v60, %v1103_v41 }
 0x213   : > { %v1139_v27 = vld [vmem:[#allocation3 + $0x1] sm:$0xff]  ;;  %v1140_v45 = vld [vmem:[#allocation3 + $0x9] sm:$0xff]  ;;  %v1135_v58 = vmul.f32 %v1133_v56, %v1132_v23 }
 0x214   : > { %v1147_v32 = vld [vmem:[#allocation3 + $0x2] sm:$0xff]  ;;  %v1142_v34 = vmul.f32 %v1141_v25, %v1139_v27  ;;  %v1148_v46 = vld [vmem:[#allocation3 + $0xa] sm:$0xff]  ;;  %v1143_v48 = vmul.f32 %v1141_v25, %v1140_v45 }
 0x215   : > { %v1155_v35 = vld [vmem:[#allocation3 + $0x3] sm:$0xff]  ;;  %v1150_v36 = vmul.f32 %v1149_v30, %v1147_v32  ;;  %v1156_v50 = vld [vmem:[#allocation3 + $0xb] sm:$0xff]  ;;  %v1137_v5 = vadd.f32 %v1135_v58, %v1111_v43  ;;  %v1151_v4 = vmul.f32 %v1149_v30, %v1148_v46  ;;  %v1239_v46 = vstv %s2506_s30  ;;  %s1948_s30 = smov 32  }
 0x216   : > { %v1163_v37 = vld [vmem:[#allocation3 + $0x4] sm:$0xff]  ;;  %v1144_v47 = vadd.f32 %v1142_v34, %v1136_v33  ;;  %v1164_v51 = vld [vmem:[#allocation3 + $0xc] sm:$0xff]  ;;  %v1158_v61 = vmul.f32 %v1157_v39, %v1155_v35  ;;  %v1159_v13 = vmul.f32 %v1157_v39, %v1156_v50  ;;  %v1271_v34 = vpop.permute.xlu1 %1270  ;;  %v1255_v43 = vstv %s2512_s20  ;;  %s1950_s20 = smov 48  }
 0x217   : > { %v1171_v31 = vld [vmem:[#allocation3 + $0x5] sm:$0xff]  ;;  %v1172_v42 = vld [vmem:[#allocation3 + $0xd] sm:$0xff]  ;;  %v1166_v0 = vmul.f32 %v1165_v55, %v1163_v37  ;;  %v1145_v53 = vadd.f32 %v1143_v48, %v1137_v5  ;;  %v1167_v6 = vmul.f32 %v1165_v55, %v1164_v51  ;;  %v1247_v51 = vstv %s2509_s3  ;;  %s1949_s3 = smov 16  }
 0x218   : > { %v1179_v44 = vld [vmem:[#allocation3 + $0x6] sm:$0xff]  ;;  %v1180_v59 = vld [vmem:[#allocation3 + $0xe] sm:$0xff]  ;;  %v1152_v49 = vadd.f32 %v1150_v36, %v1144_v47  ;;  %v1174_v9 = vmul.f32 %v1173_v62, %v1171_v31  ;;  %v1175_v25 = vmul.f32 %v1173_v62, %v1172_v42  ;;  %v1269_v31 = vpop.permute.xlu0 %1268  ;;  %v1281_v62 = vstv %s2517_s4  ;;  %s1951_s4 = smov 80  }
 0x219   : > { %1201 = vst.msk [vmem:[#allocation3] sm:$0xff] %vm471_vm9, %v1193_v38  ;;  %v1153_v1 = vadd.f32 %v1151_v4, %v1145_v53  ;;  %v1182_v14 = vmul.f32 %v1181_v3, %v1179_v44  ;;  %v1183_v37 = vmul.f32 %v1181_v3, %v1180_v59  ;;  %v1231_v38 = vstv %s2503_s19  ;;  %s2596_s19 = sld [smem:[#allocation6 + $0x61]] }
 0x21a   : > { %1202 = vst.msk [vmem:[#allocation3 + $0x8] sm:$0xff] %vm471_vm9, %v1195_v17  ;;  %v1160_v63 = vadd.f32 %v1158_v61, %v1152_v49 }
 0x21b   : > { %1203 = vst.msk [vmem:[#allocation3 + $0x10] sm:$0x3f] %vm474_vm10, %v1197_v54  ;;  %v1161_v2 = vadd.f32 %v1159_v13, %v1153_v1  ;;  %v1289_v1 = vstv %s2524_s21  ;;  %s1952_s21 = smov 64  }
 0x21c   : > { %v1168_v8 = vadd.f32 %v1166_v0, %v1160_v63 }
 0x21d   : > { %v1169_v24 = vadd.f32 %v1167_v6, %v1161_v2 }
 0x21e   : > { %v1176_v57 = vadd.f32 %v1174_v9, %v1168_v8 }
 0x21f   : > { %v1177_v35 = vadd.f32 %v1175_v25, %v1169_v24 }
 0x220   : > { %v1205_v52 = vld [vmem:[#allocation3] sm:$0xff]  ;;  %v1184_v10 = vadd.f32 %v1182_v14, %v1176_v57  ;;  %v1343_v24 = vpop.permute.xlu0 %1342 }
 0x221   : > { %v1206_v15 = vld [vmem:[#allocation3 + $0x8] sm:$0xff]  ;;  %v1208_v56 = vmul.f32 %v1207_v11, %v1205_v52  ;;  %v1185_v44 = vadd.f32 %v1183_v37, %v1177_v35  ;;  %v1341_v52 = vpop.permute.xlu2 %1340  ;;  %v1321_v37 = vstv %s2537_s25 }
 0x222   : > { %v1213_v19 = vld [vmem:[#allocation3 + $0x1] sm:$0xff]  ;;  %v1214_v12 = vld [vmem:[#allocation3 + $0x9] sm:$0xff]  ;;  %v1209_v45 = vmul.f32 %v1207_v11, %v1206_v15 }
 0x223   : > { %v1221_v7 = vld [vmem:[#allocation3 + $0x2] sm:$0xff]  ;;  %v1222_v20 = vld [vmem:[#allocation3 + $0xa] sm:$0xff]  ;;  %v1210_v16 = vadd.f32 %v1208_v56, %v1184_v10  ;;  %v1216_v23 = vmul.f32 %v1215_v18, %v1213_v19  ;;  %v1217_v42 = vmul.f32 %v1215_v18, %v1214_v12  ;;  %v1345_v56 = vpop.permute.xlu1 %1344  ;;  %v1297_v12 = vstv %s2528_s22  ;;  %s1953_s22 = smov 96  }
 0x224   : > { %v1229_v22 = vld [vmem:[#allocation3 + $0x3] sm:$0xff]  ;;  %v1230_v28 = vld [vmem:[#allocation3 + $0xb] sm:$0xff]  ;;  %v1224_v60 = vmul.f32 %v1223_v26, %v1221_v7  ;;  %v1211_v50 = vadd.f32 %v1209_v45, %v1185_v44  ;;  %v1225_v17 = vmul.f32 %v1223_v26, %v1222_v20  ;;  %v1329_v44 = vstv %s2543_s26  ;;  %s157_s26 = scalar_lea.vmem %s2655_s2, %s1822_s15 }
 0x225   : > { %v1237_v29 = vld [vmem:[#allocation3 + $0x4] sm:$0xff]  ;;  %v1238_v30 = vld [vmem:[#allocation3 + $0xc] sm:$0xff]  ;;  %v1218_v41 = vadd.f32 %v1216_v23, %v1210_v16  ;;  %v1232_v36 = vmul.f32 %v1231_v38, %v1229_v22  ;;  %v1233_v48 = vmul.f32 %v1231_v38, %v1230_v28 }
 0x226   : > { %v1245_v27 = vld [vmem:[#allocation3 + $0x5] sm:$0xff]  ;;  %v2514_v32 = vld [vmem:[#allocation3 + $0xd] sm:$0xff]  ;;  %v1240_v55 = vmul.f32 %v1239_v46, %v1237_v29  ;;  %v1219_v58 = vadd.f32 %v1217_v42, %v1211_v50  ;;  %v1241_v57 = vmul.f32 %v1239_v46, %v1238_v30  ;;  %v1305_v29 = vstv %s2531_s23  ;;  %s1954_s23 = smov 112  }
 0x227   : > { %v1253_v33 = vld [vmem:[#allocation3 + $0x6] sm:$0xff]  ;;  %v2519_v39 = vld [vmem:[#allocation3 + $0xe] sm:$0xff]  ;;  %v1226_v47 = vadd.f32 %v1224_v60, %v1218_v41  ;;  %v1248_v49 = vmul.f32 %v1247_v51, %v1245_v27  ;;  %v1249_v22 = vmul.f32 %v1247_v51, %v2514_v32  ;;  %v1313_v27 = vstv %s2534_s24 }
 0x228   : > { %1275 = vst.msk [vmem:[#allocation3] sm:$0xff] %vm471_vm9, %v1267_v40  ;;  %v1227_v5 = vadd.f32 %v1225_v17, %v1219_v58  ;;  %v1256_v4 = vmul.f32 %v1255_v43, %v1253_v33  ;;  %v1257_v40 = vmul.f32 %v1255_v43, %v2519_v39  ;;  %v1355_v58 = vstv %s2550_s5 }
 0x229   : > { %1276 = vst.msk [vmem:[#allocation3 + $0x8] sm:$0xff] %vm471_vm9, %v1269_v31  ;;  %v1234_v54 = vadd.f32 %v1232_v36, %v1226_v47 }
 0x22a   : > { %1277 = vst.msk [vmem:[#allocation3 + $0x10] sm:$0x3f] %vm474_vm10, %v1271_v34  ;;  %v1235_v13 = vadd.f32 %v1233_v48, %v1227_v5  ;;  %v1415_v5 = vpop.permute.xlu2 %1414 }
 0x22b   : > { %v1242_v59 = vadd.f32 %v1240_v55, %v1234_v54 }
 0x22c   : > { %v1243_v20 = vadd.f32 %v1241_v57, %v1235_v13 }
 0x22d   : > { %v1250_v53 = vadd.f32 %v1248_v49, %v1242_v59 }
 0x22e   : > { %v1251_v30 = vadd.f32 %v1249_v22, %v1243_v20 }
 0x22f   : > { %v1279_v61 = vld [vmem:[#allocation3] sm:$0xff]  ;;  %v1258_v15 = vadd.f32 %v1256_v4, %v1250_v53  ;;  %v1419_v4 = vpop.permute.xlu1 %1418 }
 0x230   : > { %v1280_v63 = vld [vmem:[#allocation3 + $0x8] sm:$0xff]  ;;  %v1282_v18 = vmul.f32 %v1281_v62, %v1279_v61  ;;  %v1259_v32 = vadd.f32 %v1257_v40, %v1251_v30  ;;  %v1395_v30 = vstv %s2567_s27 }
 0x231   : > { %v1287_v0 = vld [vmem:[#allocation3 + $0x1] sm:$0xff]  ;;  %v1288_v2 = vld [vmem:[#allocation3 + $0x9] sm:$0xff]  ;;  %v1283_v33 = vmul.f32 %v1281_v62, %v1280_v63 }
 0x232   : > { %v1295_v3 = vld [vmem:[#allocation3 + $0x2] sm:$0xff]  ;;  %v1296_v6 = vld [vmem:[#allocation3 + $0xa] sm:$0xff]  ;;  %v1284_v26 = vadd.f32 %v1282_v18, %v1258_v15  ;;  %v1290_v28 = vmul.f32 %v1289_v1, %v1287_v0  ;;  %v1291_v38 = vmul.f32 %v1289_v1, %v1288_v2 }
 0x233   : > { %v1303_v8 = vld [vmem:[#allocation3 + $0x3] sm:$0xff]  ;;  %v1304_v19 = vld [vmem:[#allocation3 + $0xb] sm:$0xff]  ;;  %v1298_v23 = vmul.f32 %v1297_v12, %v1295_v3  ;;  %v1285_v31 = vadd.f32 %v1283_v33, %v1259_v32  ;;  %v1299_v46 = vmul.f32 %v1297_v12, %v1296_v6  ;;  %v1371_v6 = vstv %s2558_s7 }
 0x234   : > { %v1311_v9 = vld [vmem:[#allocation3 + $0x4] sm:$0xff]  ;;  %v1312_v7 = vld [vmem:[#allocation3 + $0xc] sm:$0xff]  ;;  %v1292_v16 = vadd.f32 %v1290_v28, %v1284_v26  ;;  %v1306_v35 = vmul.f32 %v1305_v29, %v1303_v8  ;;  %v1307_v59 = vmul.f32 %v1305_v29, %v1304_v19 }
 0x235   : > { %v1319_v11 = vld [vmem:[#allocation3 + $0x5] sm:$0xff]  ;;  %v2540_v10 = vld [vmem:[#allocation3 + $0xd] sm:$0xff]  ;;  %v1314_v39 = vmul.f32 %v1313_v27, %v1311_v9  ;;  %v1293_v45 = vadd.f32 %v1291_v38, %v1285_v31  ;;  %v1315_v9 = vmul.f32 %v1313_v27, %v1312_v7 }
 0x236   : > { %v1327_v14 = vld [vmem:[#allocation3 + $0x6] sm:$0xff]  ;;  %v2546_v25 = vld [vmem:[#allocation3 + $0xe] sm:$0xff]  ;;  %v1300_v34 = vadd.f32 %v1298_v23, %v1292_v16  ;;  %v1322_v42 = vmul.f32 %v1321_v37, %v1319_v11  ;;  %v1417_v11 = vpop.permute.xlu0 %1416  ;;  %v1323_v2 = vmul.f32 %v1321_v37, %v2540_v10  ;;  %v1387_v10 = vstv %s2564_s11 }
 0x237   : > { %1349 = vst.msk [vmem:[#allocation3] sm:$0xff] %vm471_vm9, %v1341_v52  ;;  %v1301_v17 = vadd.f32 %v1299_v46, %v1293_v45  ;;  %v1330_v63 = vmul.f32 %v1329_v44, %v1327_v14  ;;  %v1363_v52 = vstv %s2555_s6  ;;  %v1331_v7 = vmul.f32 %v1329_v44, %v2546_v25 }
 0x238   : > { %1350 = vst.msk [vmem:[#allocation3 + $0x8] sm:$0xff] %vm471_vm9, %v1343_v24  ;;  %v1308_v41 = vadd.f32 %v1306_v35, %v1300_v34  ;;  %v1403_v23 = vstv %s2573_s12  ;;  %v1429_v35 = vstv %s2578_s28 }
 0x239   : > { %1351 = vst.msk [vmem:[#allocation3 + $0x10] sm:$0x3f] %vm474_vm10, %v1345_v56  ;;  %v1309_v8 = vadd.f32 %v1307_v59, %v1301_v17  ;;  %v1379_v56 = vstv %s2561_s8  ;;  %v1453_v17 = vstv %s2587_s16 }
 0x23a   : > { %v1316_v51 = vadd.f32 %v1314_v39, %v1308_v41 }
 0x23b   : > { %v1317_v14 = vadd.f32 %v1315_v9, %v1309_v8 }
 0x23c   : > { %v1324_v48 = vadd.f32 %v1322_v42, %v1316_v51 }
 0x23d   : > { %v1325_v19 = vadd.f32 %v1323_v2, %v1317_v14 }
 0x23e   : > { %v1353_v60 = vld [vmem:[#allocation3] sm:$0xff]  ;;  %v1332_v13 = vadd.f32 %v1330_v63, %v1324_v48  ;;  %v1461_v63 = vstv %s2590_s17 }
 0x23f   : > { %v1354_v47 = vld [vmem:[#allocation3 + $0x8] sm:$0xff]  ;;  %v1356_v57 = vmul.f32 %v1355_v58, %v1353_v60  ;;  %v1333_v22 = vadd.f32 %v1331_v7, %v1325_v19  ;;  %v1437_v60 = vstv %s2581_s13 }
 0x240   : > { %v1361_v36 = vld [vmem:[#allocation3 + $0x1] sm:$0xff]  ;;  %v1362_v54 = vld [vmem:[#allocation3 + $0x9] sm:$0xff]  ;;  %v1357_v24 = vmul.f32 %v1355_v58, %v1354_v47 }
 0x241   : > { %v1369_v50 = vld [vmem:[#allocation3 + $0x2] sm:$0xff]  ;;  %v1370_v55 = vld [vmem:[#allocation3 + $0xa] sm:$0xff]  ;;  %v1358_v15 = vadd.f32 %v1356_v57, %v1332_v13  ;;  %v1364_v18 = vmul.f32 %v1363_v52, %v1361_v36  ;;  %v1365_v40 = vmul.f32 %v1363_v52, %v1362_v54 }
 0x242   : > { %v1377_v43 = vld [vmem:[#allocation3 + $0x3] sm:$0xff]  ;;  %v1378_v49 = vld [vmem:[#allocation3 + $0xb] sm:$0xff]  ;;  %v1372_v20 = vmul.f32 %v1371_v6, %v1369_v50  ;;  %v1359_v29 = vadd.f32 %v1357_v24, %v1333_v22  ;;  %v1373_v32 = vmul.f32 %v1371_v6, %v1370_v55  ;;  %v1445_v50 = vstv %s2584_s14 }
 0x243   : > { %v1385_v61 = vld [vmem:[#allocation3 + $0x4] sm:$0xff]  ;;  %v1386_v62 = vld [vmem:[#allocation3 + $0xc] sm:$0xff]  ;;  %v1366_v12 = vadd.f32 %v1364_v18, %v1358_v15  ;;  %v1380_v28 = vmul.f32 %v1379_v56, %v1377_v43  ;;  %v1381_v31 = vmul.f32 %v1379_v56, %v1378_v49 }
 0x244   : > { %v1393_v0 = vld [vmem:[#allocation3 + $0x5] sm:$0xff]  ;;  %v1394_v3 = vld [vmem:[#allocation3 + $0xd] sm:$0xff]  ;;  %v1388_v16 = vmul.f32 %v1387_v10, %v1385_v61  ;;  %v1367_v27 = vadd.f32 %v1365_v40, %v1359_v29  ;;  %v1389_v45 = vmul.f32 %v1387_v10, %v1386_v62 }
 0x245   : > { %v1401_v53 = vld [vmem:[#allocation3 + $0x6] sm:$0xff]  ;;  %v1402_v1 = vld [vmem:[#allocation3 + $0xe] sm:$0xff]  ;;  %v1374_v26 = vadd.f32 %v1372_v20, %v1366_v12  ;;  %v1396_v34 = vmul.f32 %v1395_v30, %v1393_v0  ;;  %v1397_v42 = vmul.f32 %v1395_v30, %v1394_v3 }
 0x246   : > { %1423 = vst.msk [vmem:[#allocation3] sm:$0xff] %vm471_vm9, %v1415_v5  ;;  %v1375_v37 = vadd.f32 %v1373_v32, %v1367_v27  ;;  %v1404_v39 = vmul.f32 %v1403_v23, %v1401_v53  ;;  %v1405_v49 = vmul.f32 %v1403_v23, %v1402_v1  ;;  %v1477_v1 = vstv %s2596_s19 }
 0x247   : > { %1424 = vst.msk [vmem:[#allocation3 + $0x8] sm:$0xff] %vm471_vm9, %v1417_v11  ;;  %v1382_v25 = vadd.f32 %v1380_v28, %v1374_v26  ;;  %v1469_v11 = vstv %s2593_s29 }
 0x248   : > { %1425 = vst.msk [vmem:[#allocation3 + $0x10] sm:$0x3f] %vm474_vm10, %v1419_v4  ;;  %v1383_v44 = vadd.f32 %v1381_v31, %v1375_v37 }
 0x249   : > { %v1390_v33 = vadd.f32 %v1388_v16, %v1382_v25 }
 0x24a   : > { %v1391_v51 = vadd.f32 %v1389_v45, %v1383_v44 }
 0x24b   : > { %v1398_v41 = vadd.f32 %v1396_v34, %v1390_v33 }
 0x24c   : > { %v1399_v59 = vadd.f32 %v1397_v42, %v1391_v51 }
 0x24d   : > { %v1427_v38 = vld [vmem:[#allocation3] sm:$0xff]  ;;  %v1406_v47 = vadd.f32 %v1404_v39, %v1398_v41 }
 0x24e   : > { %v1435_v46 = vld [vmem:[#allocation3 + $0x1] sm:$0xff]  ;;  %v1430_v36 = vmul.f32 %v1429_v35, %v1427_v38  ;;  %v1407_v0 = vadd.f32 %v1405_v49, %v1399_v59 }
 0x24f   : > { %v1443_v54 = vld [vmem:[#allocation3 + $0x2] sm:$0xff]  ;;  %v1438_v58 = vmul.f32 %v1437_v60, %v1435_v46  ;;  %v1444_v3 = vld [vmem:[#allocation3 + $0xa] sm:$0xff] }
 0x250   : > { %v1428_v55 = vld [vmem:[#allocation3 + $0x8] sm:$0xff]  ;;  %v1432_v43 = vadd.f32 %v1430_v36, %v1406_v47  ;;  %v1446_v62 = vmul.f32 %v1445_v50, %v1443_v54  ;;  %v1447_v19 = vmul.f32 %v1445_v50, %v1444_v3 }
 0x251   : > { %v1451_v61 = vld [vmem:[#allocation3 + $0x3] sm:$0xff]  ;;  %v1431_v53 = vmul.f32 %v1429_v35, %v1428_v55  ;;  %v1452_v6 = vld [vmem:[#allocation3 + $0xb] sm:$0xff] }
 0x252   : > { %v1440_v5 = vadd.f32 %v1438_v58, %v1432_v43  ;;  %v1436_v48 = vld [vmem:[#allocation3 + $0x9] sm:$0xff]  ;;  %v1454_v9 = vmul.f32 %v1453_v17, %v1451_v61  ;;  %v1455_v22 = vmul.f32 %v1453_v17, %v1452_v6 }
 0x253   : > { %v1459_v4 = vld [vmem:[#allocation3 + $0x4] sm:$0xff]  ;;  %v1433_v52 = vadd.f32 %v1431_v53, %v1407_v0  ;;  %v1439_v57 = vmul.f32 %v1437_v60, %v1436_v48  ;;  %v1460_v12 = vld [vmem:[#allocation3 + $0xc] sm:$0xff] }
 0x254   : > { %v1448_v8 = vadd.f32 %v1446_v62, %v1440_v5  ;;  %v1467_v13 = vld [vmem:[#allocation3 + $0x5] sm:$0xff]  ;;  %v1462_v2 = vmul.f32 %v1461_v63, %v1459_v4  ;;  %v1468_v26 = vld [vmem:[#allocation3 + $0xd] sm:$0xff]  ;;  %v1463_v29 = vmul.f32 %v1461_v63, %v1460_v12 }
 0x255   : > { %v1475_v15 = vld [vmem:[#allocation3 + $0x6] sm:$0xff]  ;;  %v1441_v18 = vadd.f32 %v1439_v57, %v1433_v52  ;;  %v1470_v56 = vmul.f32 %v1469_v11, %v1467_v13  ;;  %v1476_v40 = vld [vmem:[#allocation3 + $0xe] sm:$0xff]  ;;  %v1471_v16 = vmul.f32 %v1469_v11, %v1468_v26 }
 0x256   : > { %v1456_v14 = vadd.f32 %v1454_v9, %v1448_v8  ;;  %v1478_v10 = vmul.f32 %v1477_v1, %v1475_v15  ;;  %v1479_v32 = vmul.f32 %v1477_v1, %v1476_v40 }
 0x257   : > { %v1449_v20 = vadd.f32 %v1447_v19, %v1441_v18 }
 0x258   : > { %v1464_v7 = vadd.f32 %v1462_v2, %v1456_v14 }
 0x259   : > { %v1457_v28 = vadd.f32 %v1455_v22, %v1449_v20 }
 0x25a   : > { %v1472_v24 = vadd.f32 %v1470_v56, %v1464_v7 }
 0x25b   : > { %v1465_v25 = vadd.f32 %v1463_v29, %v1457_v28 }
 0x25c   : > { %v1480_v30 = vadd.f32 %v1478_v10, %v1472_v24 }
 0x25d   : > { %v1473_v27 = vadd.f32 %v1471_v16, %v1465_v25 }
 0x25e   : > { %v1818_v23 = vmul.f32 -1.442695, %v1480_v30 }
 0x25f   : > { %v1481_v33 = vadd.f32 %v1479_v32, %v1473_v27  ;;  %v1634_v32 = vld [vmem:[%s1989_s18] sm:$0xff] }
 0x260   : > { %1897 = vpow2.f32 %v1818_v23 }
 0x261   : > { %v1819_v34 = vmul.f32 -1.442695, %v1481_v33 }
 0x263   : > { %1899 = vpow2.f32 %v1819_v34 }
 0x266   : > { %v1898_v35 = vpop.eup %1897 }
 0x267   : > { %v1488_v37 = vadd.f32 1.0, %v1898_v35 }
 0x269   : > { %1901 = vrcp.f32 %v1488_v37  ;;  %v1900_v31 = vpop.eup %1899  ;;  %v1501_v44 = vand.u32 2147483648, %v1488_v37  ;;  %v1499_v47 = vand.u32 2147483647, %v1488_v37  ;;  %vm1495_vm12 = vweird.f32 %v1488_v37 }
 0x26a   : > { %v1489_v38 = vadd.f32 1.0, %v1900_v31 }
 0x26b   : > { %v1502_v51 = vor.u32 1.1754944e-38, %v1501_v44  ;;  %vm1500_vm14 = vcmp.eq.f32.partialorder %v1499_v47, 8.507059e+37 }
 0x26c   : > { %1903 = vrcp.f32 %v1489_v38  ;;  %v1516_v55 = vand.u32 2147483648, %v1489_v38  ;;  %v1514_v17 = vand.u32 2147483647, %v1489_v38  ;;  %vm1510_vm1 = vweird.f32 %v1489_v38 }
 0x26e   : > { %v1517_v49 = vor.u32 1.1754944e-38, %v1516_v55  ;;  %vm1515_vm3 = vcmp.eq.f32.partialorder %v1514_v17, 8.507059e+37 }
 0x26f   : > { %v1902_v41 = vpop.eup %1901 }
 0x270   : > { %v1491_v39 = vmul.f32 %v1902_v41, %v1488_v37  ;;  %vm1496_vm11 = vweird.f32 %v1902_v41 }
 0x271   : > { %vm1497_vm13 = vmor %vm1495_vm12, %vm1496_vm11  ;;  %vm2610_vm11 = vcmp.ge.s32.totalorder %v209_v21, 48  ;;  %vm1550_vm12 = vcmp.lt.s32.totalorder %v209_v21, 64 }
 0x272   : > { %v1492_v60 = vsub.f32 1.0, %v1491_v39  ;;  %v1904_v45 = vpop.eup %1903 }
 0x273   : > { %v1506_v36 = vmul.f32 %v1904_v45, %v1489_v38  ;;  %vm1511_vm15 = vweird.f32 %v1904_v45 }
 0x274   : > { %v1493_v46 = vmul.f32 %v1902_v41, %v1492_v60  ;;  %vm1512_vm2 = vmor %vm1510_vm1, %vm1511_vm15  ;;  %vm2623_vm15 = vcmp.lt.s32.totalorder %v209_v21, 80  ;;  %vm2628_vm1 = vcmp.ge.s32.totalorder %v209_v21, 80 }
 0x275   : > { %v1507_v42 = vsub.f32 1.0, %v1506_v36 }
 0x276   : > { %v1494_v50 = vadd.f32 %v1902_v41, %v1493_v46 }
 0x277   : > { %v1508_v58 = vmul.f32 %v1904_v45, %v1507_v42 }
 0x278   : > { %v1498_v54 = vsel %vm1497_vm13, %v1902_v41, %v1494_v50  ;;  %vm1551_vm13 = vmand %vm2610_vm11, %vm1550_vm12 }
 0x279   : > { %v1503_v43 = vsel %vm1500_vm14, %v1502_v51, %v1498_v54  ;;  %v1509_v59 = vadd.f32 %v1904_v45, %v1508_v58  ;;  %vm2618_vm14 = vcmp.ge.s32.totalorder %v209_v21, 64 }
 0x27a   : > { %1520 = vst.msk [vmem:[#allocation3] sm:$0xff] %vm471_vm9, %v1503_v43 }
 0x27b   : > { %v1513_v61 = vsel %vm1512_vm2, %v1904_v45, %v1509_v59  ;;  %vm1568_vm2 = vcmp.lt.s32.totalorder %v209_v21, 96 }
 0x27c   : > { %v1518_v5 = vsel %vm1515_vm3, %v1517_v49, %v1513_v61  ;;  %vm1560_vm3 = vmand %vm2618_vm14, %vm2623_vm15 }
 0x27d   : > { %1521 = vst.msk [vmem:[#allocation3 + $0x8] sm:$0xff] %vm471_vm9, %v1518_v5  ;;  %vm1541_vm9 = vcmp.lt.s32.totalorder %v209_v21, 48 }
 0x27e   : > { %vm1542_vm10 = vmand %vm1540_vm8, %vm1541_vm9  ;;  %vm1585_vm8 = vcmp.ge.s32.totalorder %v209_v21, 112  ;;  %vm1586_vm9 = vcmp.lt.s32.totalorder %v209_v21, 128 }
 0x281   : > { %v1535_v62 = vld [vmem:[#allocation3 + $0x2] sm:$0x1]  ;;  %v1526_v48 = vld [vmem:[#allocation3 + $0x1] sm:$0x1]  ;;  %v1522_v63 = vld [vmem:[#allocation3] sm:$0x1] }
 0x282   : > { %1537 = vrot.lane.b32.xlu1 %v1535_v62, %s1948_s30  ;;  %1528 = vrot.lane.b32.xlu2 %v1526_v48, %s1949_s3  ;;  %1525 = vst.msk [vmem:[#allocation4] sm:$0x1] %vm1523_vm4, %v1522_v63  ;;  %v1544_v9 = vld [vmem:[#allocation3 + $0x3] sm:$0x1]  ;;  %v1562_v3 = vld [vmem:[#allocation3 + $0x5] sm:$0x1] }
 0x283   : > { %v1553_v11 = vld [vmem:[#allocation3 + $0x4] sm:$0x1]  ;;  %v1571_v14 = vld [vmem:[#allocation3 + $0x6] sm:$0x1]  ;;  %v1580_v2 = vld [vmem:[#allocation3 + $0x7] sm:$0x1] }
 0x284   : > { %v1591_v0 = vld [vmem:[#allocation3 + $0x9] sm:$0x1]  ;;  %v1589_v53 = vld [vmem:[#allocation3 + $0x8] sm:$0x1]  ;;  %v1603_v4 = vld [vmem:[#allocation3 + $0xb] sm:$0x1] }
 0x285   : > { %1593 = vrot.lane.b32.xlu0 %v1591_v0, %s1949_s3  ;;  %v1597_v8 = vld [vmem:[#allocation3 + $0xa] sm:$0x1]  ;;  %1590 = vst.msk [vmem:[#allocation4 + $0x1] sm:$0x1] %vm1523_vm4, %v1589_v53  ;;  %v1609_v52 = vld [vmem:[#allocation3 + $0xc] sm:$0x1]  ;;  %vm1569_vm4 = vmand %vm2628_vm1, %vm1568_vm2 }
 0x286   : > { %v1621_v13 = vld [vmem:[#allocation3 + $0xe] sm:$0x1]  ;;  %v1615_v57 = vld [vmem:[#allocation3 + $0xd] sm:$0x1]  ;;  %v1627_v6 = vld [vmem:[#allocation3 + $0xf] sm:$0x1] }
 0x28a   : > { %1605 = vrot.lane.b32.xlu1 %v1603_v4, %s1950_s20  ;;  %1599 = vrot.lane.b32.xlu2 %v1597_v8, %s1948_s30 }
 0x28d   : > { %1546 = vrot.lane.b32.xlu0 %v1544_v9, %s1950_s20 }
 0x292   : > { %1564 = vrot.lane.b32.xlu1 %v1562_v3, %s1951_s4  ;;  %1555 = vrot.lane.b32.xlu2 %v1553_v11, %s1952_s21 }
 0x295   : > { %1611 = vrot.lane.b32.xlu0 %v1609_v52, %s1952_s21 }
 0x29a   : > { %1623 = vrot.lane.b32.xlu1 %v1621_v13, %s1953_s22  ;;  %1617 = vrot.lane.b32.xlu2 %v1615_v57, %s1951_s4 }
 0x29d   : > { %1573 = vrot.lane.b32.xlu0 %v1571_v14, %s1953_s22 }
 0x2a2   : > { %1582 = vrot.lane.b32.xlu2 %v1580_v2, %s1954_s23 }
 0x2a5   : > { %1629 = vrot.lane.b32.xlu0 %v1627_v6, %s1954_s23 }
 0x2dc   : > { %v1529_v1 = vpop.permute.xlu2 %1528 }
 0x2dd   : > { %1534 = vst.msk [vmem:[#allocation4] sm:$0x1] %vm1533_vm7, %v1529_v1 }
 0x2e4   : > { %v1600_v15 = vpop.permute.xlu2 %1599 }
 0x2ec   : > { %v1556_v22 = vpop.permute.xlu2 %1555 }
 0x2f4   : > { %v1538_v18 = vpop.permute.xlu1 %1537  ;;  %v1618_v28 = vpop.permute.xlu2 %1617 }
 0x2f5   : > { %1543 = vst.msk [vmem:[#allocation4] sm:$0x1] %vm1542_vm10, %v1538_v18 }
 0x2f7   : > { %v1594_v7 = vpop.permute.xlu0 %1593 }
 0x2f8   : > { %1596 = vst.msk [vmem:[#allocation4 + $0x1] sm:$0x1] %vm1533_vm7, %v1594_v7  ;;  %vm1578_vm7 = vmand %vm1576_vm5, %vm1577_vm6 }
 0x2f9   : > { %1602 = vst.msk [vmem:[#allocation4 + $0x1] sm:$0x1] %vm1542_vm10, %v1600_v15  ;;  %vm1587_vm10 = vmand %vm1585_vm8, %vm1586_vm9 }
 0x2fc   : > { %v1606_v56 = vpop.permute.xlu1 %1605  ;;  %v1583_v25 = vpop.permute.xlu2 %1582 }
 0x2fd   : > { %1608 = vst.msk [vmem:[#allocation4 + $0x1] sm:$0x1] %vm1551_vm13, %v1606_v56 }
 0x2ff   : > { %v1547_v10 = vpop.permute.xlu0 %1546 }
 0x300   : > { %1552 = vst.msk [vmem:[#allocation4] sm:$0x1] %vm1551_vm13, %v1547_v10 }
 0x301   : > { %1561 = vst.msk [vmem:[#allocation4] sm:$0x1] %vm1560_vm3, %v1556_v22 }
 0x304   : > { %v1565_v26 = vpop.permute.xlu1 %1564 }
 0x305   : > { %1570 = vst.msk [vmem:[#allocation4] sm:$0x1] %vm1569_vm4, %v1565_v26 }
 0x307   : > { %v1612_v29 = vpop.permute.xlu0 %1611 }
 0x308   : > { %1614 = vst.msk [vmem:[#allocation4 + $0x1] sm:$0x1] %vm1560_vm3, %v1612_v29 }
 0x309   : > { %1620 = vst.msk [vmem:[#allocation4 + $0x1] sm:$0x1] %vm1569_vm4, %v1618_v28 }
 0x30c   : > { %v1624_v30 = vpop.permute.xlu1 %1623 }
 0x30d   : > { %1626 = vst.msk [vmem:[#allocation4 + $0x1] sm:$0x1] %vm1578_vm7, %v1624_v30 }
 0x30f   : > { %v1574_v40 = vpop.permute.xlu0 %1573 }
 0x310   : > { %1579 = vst.msk [vmem:[#allocation4] sm:$0x1] %vm1578_vm7, %v1574_v40 }
 0x311   : > { %1588 = vst.msk [vmem:[#allocation4] sm:$0x1] %vm1587_vm10, %v1583_v25 }
 0x317   : > { %v1630_v16 = vpop.permute.xlu0 %1629 }
 0x318   : > { %1632 = vst.msk [vmem:[#allocation4 + $0x1] sm:$0x1] %vm1587_vm10, %v1630_v16 }
 0x31f   : > { %v1633_v23 = vld [vmem:[#allocation4] sm:$0x3] }
 0x320   : > { %v1637_v27 = vperm.slane %v1633_v23, 1  ;;  %v1636_v33 = vperm.slane %v1633_v23, 0 }
 0x322   : > { %v1638_v34 = vrot.slane %v1637_v27, 4 }
 0x324   : > { %v1639_v35 = vsel %vm165_vm0, %v1636_v33, %v1638_v34 }
 0x325   : > { %v1641_v21 = vmul.f32 %v1639_v35, %v1634_v32 }
 0x327   : > { %1642 = vst [vmem:[%s157_s26] sm:$0xff] %v1641_v21 }
 0x328 PF: > { %s13_s9 = sadd.s32 1, %s1930_s9  }
 0x329   : > { %p10_p7 = scmp.ge.s32.totalorder %s13_s9, 4  }
 0x32b   :  { %12 = sbr.rel (!%p10_p7) target bundleno = 1 (0x1), region = 65 }
 0x330   :  { %1664 = vsyncpa [#allocation7], 1 }
 0x331   :  { %1666 = vsyncpa [#allocation7 + $0x1], 1 }

</bundles_post_ra>
